<compile_context>
chip_gen: v5e
topology: v5e:2x2
jax: 0.10.0
libtpu: 0.0.40
codegen_flags: <defaults>
</compile_context>

<pallas_src>
import functools
import math
from collections import namedtuple

import jax
import jax.numpy as jnp
from jax.experimental import pallas as pl
from jax.experimental.pallas import tpu as pltpu

Genotype = namedtuple("Genotype", ["down", "up"])

LANE = 128  # TPU vreg lane width; conv outputs are padded to this (lane-dense stores)


# ---------------------------------------------------------------------------
# Pallas kernel: conv as ONE tap-packed MXU dot per (group, batch)
# fused with [InstanceNorm] and [Sigmoid]; groups summed in-kernel.
# ---------------------------------------------------------------------------
def _conv_kernel(x_ref, w_ref, o_ref, *, num_groups, batches_per_block, rows,
                 norm, sigmoid, eps):
    """x_ref: (G, batches*rows, Kc) bf16   (taps packed into Kc = k*k*Cin)
       w_ref: (G, Kc, Np) bf16             (Np = lane-padded Cout)
       o_ref: (batches*rows, Np)           (bf16, or f32 for the final layer)
    """
    inv_n = 1.0 / float(rows)
    for b in range(batches_per_block):          # static; ==1 on the gridded path
        lo = b * rows
        total = None
        for g in range(num_groups):             # static; node-op groups summed
            xs = x_ref[g, lo:lo + rows, :]                       # (rows, Kc) bf16
            acc = jnp.dot(xs, w_ref[g],
                          preferred_element_type=jnp.float32)    # (rows, Np) f32
            if norm:
                # Exact per-(batch, channel) InstanceNorm, two-pass for accuracy.
                mean = jnp.sum(acc, axis=0, keepdims=True) * inv_n
                d = acc - mean                                   # VPU broadcast
                var = jnp.sum(d * d, axis=0, keepdims=True) * inv_n
                acc = d * jax.lax.rsqrt(var + eps)
            total = acc if total is None else total + acc
        if sigmoid:
            total = jax.nn.sigmoid(total)
        o_ref[lo:lo + rows, :] = total.astype(o_ref.dtype)


def fused_conv(xs_list, ws_list, *, kernel_size, stride, relu, norm, sigmoid,
               out_dtype=jnp.bfloat16):
    """sum_g ConvOps_g(x_g): G weight 'groups' fused into one pallas_call."""
    k, s = int(kernel_size), int(stride)
    pad = (k - 1) // 2
    G = len(xs_list)
    B, H, W, Cin = xs_list[0].shape
    Cout = ws_list[0].shape[-1]
    for x, w in zip(xs_list, ws_list):
        assert x.shape == (B, H, W, Cin) and w.shape == (k, k, Cin, Cout)

    Ho = (H + 2 * pad - k) // s + 1
    Wo = (W + 2 * pad - k) // s + 1
    R = Ho * Wo                      # rows per batch (every row is a valid output)
    M = B * R                        # batch folded into the matmul row dim
    Kc = k * k * Cin                 # taps packed into the contraction dim
    Np = -(-Cout // LANE) * LANE     # lane-dense output width (unmasked stores)

    # Tap-packed activations: (G, M, Kc) bf16.  ReLU is applied ONCE per source
    # element (it commutes with patch extraction) and fuses into the XLA copy
    # that builds the patches.
    xg = []
    for x in xs_list:
        x = x.astype(jnp.bfloat16)
        if relu:
            x = jnp.maximum(x, 0)
        xp = jnp.pad(x, ((0, 0), (pad, pad), (pad, pad), (0, 0)))
        taps = [xp[:, i:i + s * (Ho - 1) + 1:s, j:j + s * (Wo - 1) + 1:s, :]
                for i in range(k) for j in range(k)]
        pat = taps[0] if len(taps) == 1 else jnp.concatenate(taps, axis=-1)
        xg.append(pat.reshape(M, Kc))
    x_stack = jnp.stack(xg, axis=0)                              # (G, M, Kc) bf16

    # Weights: (G, Kc, Np) bf16; tap-major flattening matches the patch layout.
    wg = []
    for w in ws_list:
        w2 = w.reshape(Kc, Cout)
        if Np > Cout:
            w2 = jnp.pad(w2, ((0, 0), (0, Np - Cout)))
        wg.append(w2)
    w_stack = jnp.stack(wg, axis=0).astype(jnp.bfloat16)         # (G, Kc, Np) bf16

    vmem_bytes = 32 * 1024 * 1024    # raise v5e's 16 MiB scoped default; safe on all chips
    if R % 8 == 0:
        # Batch as a "parallel" 1-D grid axis: blocks are fully independent
        # (InstanceNorm stats are per batch), so v7x's dual TC splits the grid
        # and per-step VMEM stays tiny.  Weight block index is constant -> no
        # re-DMA between steps.
        kernel = functools.partial(
            _conv_kernel, num_groups=G, batches_per_block=1, rows=R,
            norm=norm, sigmoid=sigmoid, eps=1e-5)
        out = pl.pallas_call(
            kernel,
            grid=(B,),
            in_specs=[pl.BlockSpec((G, R, Kc), lambda b: (0, b, 0)),
                      pl.BlockSpec((G, Kc, Np), lambda b: (0, 0, 0))],
            out_specs=pl.BlockSpec((R, Np), lambda b: (b, 0)),
            out_shape=jax.ShapeDtypeStruct((M, Np), out_dtype),
            compiler_params=pltpu.CompilerParams(
                dimension_semantics=("parallel",),
                vmem_limit_bytes=vmem_bytes),
        )(x_stack, w_stack)
    else:
        # Fallback (R not sublane-aligned): single whole-array step, batch loop
        # inside the kernel.  Not hit at the shapes in this script.
        kernel = functools.partial(
            _conv_kernel, num_groups=G, batches_per_block=B, rows=R,
            norm=norm, sigmoid=sigmoid, eps=1e-5)
        out = pl.pallas_call(
            kernel,
            out_shape=jax.ShapeDtypeStruct((M, Np), out_dtype),
            compiler_params=pltpu.CompilerParams(vmem_limit_bytes=vmem_bytes),
        )(x_stack, w_stack)

    return out.reshape(B, Ho, Wo, Np)[:, :, :, :Cout]


def conv_ops(xs_list, ws_list, *, kernel_size, stride=1, ops_order,
             sigmoid=False, out_dtype=jnp.bfloat16):
    """ConvOps: [ReLU ->] Conv(no bias, pad=(k-1)//2) [-> InstanceNorm]; groups summed."""
    relu = ops_order.startswith("act")
    norm = ops_order.endswith("norm")
    return fused_conv(xs_list, ws_list, kernel_size=kernel_size, stride=stride,
                      relu=relu, norm=norm, sigmoid=sigmoid, out_dtype=out_dtype)


# ---------------------------------------------------------------------------
# Parameter init (deterministic) mirroring SearchedNet.__init__
# ---------------------------------------------------------------------------
def _init_conv(key, kh, kw, cin, cout):
    scale = 1.0 / math.sqrt(kh * kw * cin)
    return jax.random.normal(key, (kh, kw, cin, cout), jnp.float32) * scale


def _init_cell(key, c0, c1, c_node, genolist):
    ks = jax.random.split(key, 2 + len(genolist))
    p = {
        "pre0": _init_conv(ks[0], 1, 1, c0, c_node),
        "pre1": _init_conv(ks[1], 1, 1, c1, c_node),
        "ops": [],
    }
    for idx, (name, _) in enumerate(genolist):
        if name == "identity":
            p["ops"].append(None)
        else:
            p["ops"].append(_init_conv(ks[2 + idx], 3, 3, c_node, c_node))
    return p


def init_net(key, in_channels, init_n_kernels, out_channels, depth, n_nodes,
             channel_change, gene):
    keys = iter(jax.random.split(key, 64))
    params = {}
    c0 = c1 = n_nodes * init_n_kernels
    c_node = init_n_kernels
    params["stem0"] = _init_conv(next(keys), 1, 1, in_channels, c0)
    params["stem1"] = _init_conv(next(keys), 3, 3, in_channels, c1)
    params["down_cells"] = []
    down_channels = [c0, c1]
    for _ in range(depth):
        c_node = 2 * c_node if channel_change else c_node
        params["down_cells"].append(_init_cell(next(keys), c0, c1, c_node, gene.down))
        c0, c1 = c1, n_nodes * c_node
        down_channels.append(c1)
    down_channels.pop()
    params["up_cells"] = []
    for _ in range(depth + 1):
        c0 = down_channels.pop()
        params["up_cells"].append(_init_cell(next(keys), c0, c1, c_node, gene.up))
        c1 = n_nodes * c_node
        c_node = c_node // 2 if channel_change else c_node
    params["last"] = _init_conv(next(keys), 1, 1, c1, out_channels)
    return params


# ---------------------------------------------------------------------------
# Forward pass (mirrors SearchedCell.forward / SearchedNet.forward)
# ---------------------------------------------------------------------------
def cell_forward(p, genolist, n_nodes, x0, x1, downward):
    x0 = conv_ops([x0], [p["pre0"]], kernel_size=1, stride=2 if downward else 1,
                  ops_order="act_weight_norm")
    x1 = conv_ops([x1], [p["pre1"]], kernel_size=1, stride=1,
                  ops_order="act_weight_norm")
    xs = [x0, x1]
    i = 0
    for _ in range(n_nodes):
        convs, idents = [], []
        for _ in range(2):
            name, inp = genolist[i]
            w = p["ops"][i]
            xin = xs[inp]
            if name == "identity":
                idents.append(xin)
            elif name == "conv":
                convs.append((xin, w, 1))
            elif name == "down_conv":
                convs.append((xin, w, 2))
            elif name == "up_conv":
                # TODO(synk): fold the 2x NN upsample into the patch indexing.
                xin = jnp.repeat(jnp.repeat(xin, 2, axis=1), 2, axis=2)
                convs.append((xin, w, 1))
            else:
                raise ValueError(name)
            i += 1
        out = None
        if (len(convs) == 2 and convs[0][0].shape == convs[1][0].shape
                and convs[0][2] == convs[1][2]
                and convs[0][1].shape == convs[1][1].shape):
            # Fuse this node's two conv ops into ONE kernel call (summed in-kernel).
            out = conv_ops([convs[0][0], convs[1][0]],
                           [convs[0][1], convs[1][1]],
                           kernel_size=3, stride=convs[0][2],
                           ops_order="act_weight_norm")
        else:
            for (xin, w, s) in convs:
                r = conv_ops([xin], [w], kernel_size=3, stride=s,
                             ops_order="act_weight_norm")
                out = r if out is None else out + r
        for xi in idents:
            out = xi if out is None else out + xi
        xs.append(out)
    return jnp.concatenate(xs[-n_nodes:], axis=-1)   # torch.cat(dim=1) in NHWC


def net_forward(params, x, gene, n_nodes):
    s0 = conv_ops([x], [params["stem0"]], kernel_size=1, stride=1,
                  ops_order="weight_norm")
    s1 = conv_ops([x], [params["stem1"]], kernel_size=3, stride=2,
                  ops_order="weight_norm")
    down_outputs = [s0, s1]
    for cp in params["down_cells"]:
        s0, s1 = s1, cell_forward(cp, gene.down, n_nodes, s0, s1, downward=True)
        down_outputs.append(s1)
    down_outputs.pop()
    for cp in params["up_cells"]:
        s0 = down_outputs.pop()
        s1 = cell_forward(cp, gene.up, n_nodes, s0, s1, downward=False)
    # last_conv: 1x1 conv (ops_order='weight', dropout eval-mode) + Sigmoid, fused.
    return conv_ops([s1], [params["last"]], kernel_size=1, stride=1,
                    ops_order="weight", sigmoid=True, out_dtype=jnp.float32)


# ---------------------------------------------------------------------------
if __name__ == "__main__":
    key = jax.random.PRNGKey(0)
    k_param, k_x = jax.random.split(key)

    B, Cin, H, W = 2, 4, 16, 16
    n_nodes = 2
    gene = Genotype(
        down=[("down_conv", 0), ("down_conv", 1), ("conv", 2), ("identity", 2)],
        up=[("up_conv", 1), ("conv", 0), ("conv", 2), ("identity", 2)],
    )
    params = init_net(k_param, in_channels=Cin, init_n_kernels=4, out_channels=3,
                      depth=1, n_nodes=n_nodes, channel_change=False, gene=gene)

    x_nchw = jax.random.normal(k_x, (B, Cin, H, W), jnp.float32)
    x = jnp.transpose(x_nchw, (0, 2, 3, 1))   # NCHW -> NHWC

    fwd = jax.jit(functools.partial(net_forward, gene=gene, n_nodes=n_nodes))
    out = fwd(params, x)
    out_nchw = jnp.transpose(out, (0, 3, 1, 2))  # NHWC -> NCHW
    jax.block_until_ready(out_nchw)

    assert out_nchw.shape == (B, 3, H, W), out_nchw.shape
    assert bool(jnp.all((out_nchw >= 0.0) & (out_nchw <= 1.0)))  # sigmoid output
    print("KERNEL_OK")
</pallas_src>

<mosaic_0001>
module attributes {stable_mosaic.version = 11 : i64} {
  func.func @_conv_kernel(%arg0: i32, %arg1: memref<1x64x8xbf16, #tpu.memory_space<vmem>>, %arg2: memref<1x8x128xbf16, #tpu.memory_space<vmem>>, %arg3: memref<64x128xbf16, #tpu.memory_space<vmem>>) attributes {dimension_semantics = [#tpu.dimension_semantics<parallel>], iteration_bounds = array<i64: 2>, scalar_prefetch = 0 : i64, scratch_operands = 0 : i64, tpu.core_type = #tpu.core_type<tc>, window_params = [{transform_indices = @transform_0, window_bounds = array<i64: 1, 64, 8>}, {pipeline_mode = #tpu.pipeline_mode<synchronous>, transform_indices = @transform_1, window_bounds = array<i64: 1, 8, 128>}, {transform_indices = @transform_2, window_bounds = array<i64: 64, 128>}]} {
    %c0 = arith.constant 0 : index
    %c0_0 = arith.constant 0 : index
    %c0_1 = arith.constant 0 : index
    %0 = vector.load %arg1[%c0, %c0_0, %c0_1] : memref<1x64x8xbf16, #tpu.memory_space<vmem>>, vector<1x64x8xbf16>
    %1 = vector.shape_cast %0 : vector<1x64x8xbf16> to vector<64x8xbf16>
    %c0_2 = arith.constant 0 : index
    %c0_3 = arith.constant 0 : index
    %c0_4 = arith.constant 0 : index
    %2 = vector.load %arg2[%c0_2, %c0_3, %c0_4] : memref<1x8x128xbf16, #tpu.memory_space<vmem>>, vector<1x8x128xbf16>
    %3 = vector.shape_cast %2 : vector<1x8x128xbf16> to vector<8x128xbf16>
    %cst = arith.constant dense<0.000000e+00> : vector<64x128xf32>
    %4 = tpu.matmul %1, %3, %cst {dimension_numbers = #tpu.dot_dimension_numbers<[1], [0], [0], [1], [0, 0, 1, 1], [], []>} : vector<64x8xbf16>, vector<8x128xbf16>, vector<64x128xf32> -> vector<64x128xf32>
    %cst_5 = arith.constant dense<0.000000e+00> : vector<128xf32>
    %5 = vector.multi_reduction <add>, %4, %cst_5 [0] : vector<64x128xf32> to vector<128xf32>
    %6 = vector.shape_cast %5 : vector<128xf32> to vector<1x128xf32>
    %cst_6 = arith.constant 1.562500e-02 : f32
    %7 = vector.broadcast %cst_6 : f32 to vector<1x128xf32>
    %8 = arith.mulf %6, %7 : vector<1x128xf32>
    %9 = vector.broadcast %8 : vector<1x128xf32> to vector<64x128xf32>
    %10 = arith.subf %4, %9 : vector<64x128xf32>
    %11 = arith.mulf %10, %10 : vector<64x128xf32>
    %cst_7 = arith.constant dense<0.000000e+00> : vector<128xf32>
    %12 = vector.multi_reduction <add>, %11, %cst_7 [0] : vector<64x128xf32> to vector<128xf32>
    %13 = vector.shape_cast %12 : vector<128xf32> to vector<1x128xf32>
    %cst_8 = arith.constant 1.562500e-02 : f32
    %14 = vector.broadcast %cst_8 : f32 to vector<1x128xf32>
    %15 = arith.mulf %13, %14 : vector<1x128xf32>
    %cst_9 = arith.constant 9.99999974E-6 : f32
    %16 = vector.broadcast %cst_9 : f32 to vector<1x128xf32>
    %17 = arith.addf %15, %16 : vector<1x128xf32>
    %18 = math.rsqrt %17 : vector<1x128xf32>
    %19 = vector.broadcast %18 : vector<1x128xf32> to vector<64x128xf32>
    %20 = arith.mulf %10, %19 : vector<64x128xf32>
    %21 = arith.truncf %20 : vector<64x128xf32> to vector<64x128xbf16>
    %c0_10 = arith.constant 0 : index
    %c0_11 = arith.constant 0 : index
    %22 = vector.load %arg3[%c0_10, %c0_11] : memref<64x128xbf16, #tpu.memory_space<vmem>>, vector<64x128xbf16>
    tpu.vector_store %arg3[%c0_10, %c0_11], %21 {strides = array<i32>} : memref<64x128xbf16, #tpu.memory_space<vmem>>, vector<64x128xbf16>,
    return
  }
  func.func @transform_0(%arg0: i32) -> (i32, i32, i32) {
    %c0_i32 = arith.constant 0 : i32
    %c0_i32_0 = arith.constant 0 : i32
    %c0_i32_1 = arith.constant 0 : i32
    return %c0_i32, %arg0, %c0_i32_0 : i32, i32, i32
  }
  func.func @transform_1(%arg0: i32) -> (i32, i32, i32) {
    %c0_i32 = arith.constant 0 : i32
    %c0_i32_0 = arith.constant 0 : i32
    %c0_i32_1 = arith.constant 0 : i32
    %c0_i32_2 = arith.constant 0 : i32
    return %c0_i32, %c0_i32_0, %c0_i32_1 : i32, i32, i32
  }
  func.func @transform_2(%arg0: i32) -> (i32, i32) {
    %c0_i32 = arith.constant 0 : i32
    %c0_i32_0 = arith.constant 0 : i32
    return %arg0, %c0_i32 : i32, i32
  }
}

module attributes {stable_mosaic.version = 11 : i64} {
  func.func @_conv_kernel(%arg0: i32, %arg1: memref<1x64x36xbf16, #tpu.memory_space<vmem>>, %arg2: memref<1x36x128xbf16, #tpu.memory_space<vmem>>, %arg3: memref<64x128xbf16, #tpu.memory_space<vmem>>) attributes {dimension_semantics = [#tpu.dimension_semantics<parallel>], iteration_bounds = array<i64: 2>, scalar_prefetch = 0 : i64, scratch_operands = 0 : i64, tpu.core_type = #tpu.core_type<tc>, window_params = [{transform_indices = @transform_0, window_bounds = array<i64: 1, 64, 36>}, {pipeline_mode = #tpu.pipeline_mode<synchronous>, transform_indices = @transform_1, window_bounds = array<i64: 1, 36, 128>}, {transform_indices = @transform_2, window_bounds = array<i64: 64, 128>}]} {
    %c0 = arith.constant 0 : index
    %c0_0 = arith.constant 0 : index
    %c0_1 = arith.constant 0 : index
    %0 = vector.load %arg1[%c0, %c0_0, %c0_1] : memref<1x64x36xbf16, #tpu.memory_space<vmem>>, vector<1x64x36xbf16>
    %1 = vector.shape_cast %0 : vector<1x64x36xbf16> to vector<64x36xbf16>
    %c0_2 = arith.constant 0 : index
    %c0_3 = arith.constant 0 : index
    %c0_4 = arith.constant 0 : index
    %2 = vector.load %arg2[%c0_2, %c0_3, %c0_4] : memref<1x36x128xbf16, #tpu.memory_space<vmem>>, vector<1x36x128xbf16>
    %3 = vector.shape_cast %2 : vector<1x36x128xbf16> to vector<36x128xbf16>
    %cst = arith.constant dense<0.000000e+00> : vector<64x128xf32>
    %4 = tpu.matmul %1, %3, %cst {dimension_numbers = #tpu.dot_dimension_numbers<[1], [0], [0], [1], [0, 0, 1, 1], [], []>} : vector<64x36xbf16>, vector<36x128xbf16>, vector<64x128xf32> -> vector<64x128xf32>
    %cst_5 = arith.constant dense<0.000000e+00> : vector<128xf32>
    %5 = vector.multi_reduction <add>, %4, %cst_5 [0] : vector<64x128xf32> to vector<128xf32>
    %6 = vector.shape_cast %5 : vector<128xf32> to vector<1x128xf32>
    %cst_6 = arith.constant 1.562500e-02 : f32
    %7 = vector.broadcast %cst_6 : f32 to vector<1x128xf32>
    %8 = arith.mulf %6, %7 : vector<1x128xf32>
    %9 = vector.broadcast %8 : vector<1x128xf32> to vector<64x128xf32>
    %10 = arith.subf %4, %9 : vector<64x128xf32>
    %11 = arith.mulf %10, %10 : vector<64x128xf32>
    %cst_7 = arith.constant dense<0.000000e+00> : vector<128xf32>
    %12 = vector.multi_reduction <add>, %11, %cst_7 [0] : vector<64x128xf32> to vector<128xf32>
    %13 = vector.shape_cast %12 : vector<128xf32> to vector<1x128xf32>
    %cst_8 = arith.constant 1.562500e-02 : f32
    %14 = vector.broadcast %cst_8 : f32 to vector<1x128xf32>
    %15 = arith.mulf %13, %14 : vector<1x128xf32>
    %cst_9 = arith.constant 9.99999974E-6 : f32
    %16 = vector.broadcast %cst_9 : f32 to vector<1x128xf32>
    %17 = arith.addf %15, %16 : vector<1x128xf32>
    %18 = math.rsqrt %17 : vector<1x128xf32>
    %19 = vector.broadcast %18 : vector<1x128xf32> to vector<64x128xf32>
    %20 = arith.mulf %10, %19 : vector<64x128xf32>
    %21 = arith.truncf %20 : vector<64x128xf32> to vector<64x128xbf16>
    %c0_10 = arith.constant 0 : index
    %c0_11 = arith.constant 0 : index
    %22 = vector.load %arg3[%c0_10, %c0_11] : memref<64x128xbf16, #tpu.memory_space<vmem>>, vector<64x128xbf16>
    tpu.vector_store %arg3[%c0_10, %c0_11], %21 {strides = array<i32>} : memref<64x128xbf16, #tpu.memory_space<vmem>>, vector<64x128xbf16>,
    return
  }
  func.func @transform_0(%arg0: i32) -> (i32, i32, i32) {
    %c0_i32 = arith.constant 0 : i32
    %c0_i32_0 = arith.constant 0 : i32
    %c0_i32_1 = arith.constant 0 : i32
    return %c0_i32, %arg0, %c0_i32_0 : i32, i32, i32
  }
  func.func @transform_1(%arg0: i32) -> (i32, i32, i32) {
    %c0_i32 = arith.constant 0 : i32
    %c0_i32_0 = arith.constant 0 : i32
    %c0_i32_1 = arith.constant 0 : i32
    %c0_i32_2 = arith.constant 0 : i32
    return %c0_i32, %c0_i32_0, %c0_i32_1 : i32, i32, i32
  }
  func.func @transform_2(%arg0: i32) -> (i32, i32) {
    %c0_i32 = arith.constant 0 : i32
    %c0_i32_0 = arith.constant 0 : i32
    return %arg0, %c0_i32 : i32, i32
  }
}

module attributes {stable_mosaic.version = 11 : i64} {
  func.func @_conv_kernel(%arg0: i32, %arg1: memref<1x256x4xbf16, #tpu.memory_space<vmem>>, %arg2: memref<1x4x128xbf16, #tpu.memory_space<vmem>>, %arg3: memref<256x128xbf16, #tpu.memory_space<vmem>>) attributes {dimension_semantics = [#tpu.dimension_semantics<parallel>], iteration_bounds = array<i64: 2>, scalar_prefetch = 0 : i64, scratch_operands = 0 : i64, tpu.core_type = #tpu.core_type<tc>, window_params = [{transform_indices = @transform_0, window_bounds = array<i64: 1, 256, 4>}, {pipeline_mode = #tpu.pipeline_mode<synchronous>, transform_indices = @transform_1, window_bounds = array<i64: 1, 4, 128>}, {transform_indices = @transform_2, window_bounds = array<i64: 256, 128>}]} {
    %c0 = arith.constant 0 : index
    %c0_0 = arith.constant 0 : index
    %c0_1 = arith.constant 0 : index
    %0 = vector.load %arg1[%c0, %c0_0, %c0_1] : memref<1x256x4xbf16, #tpu.memory_space<vmem>>, vector<1x256x4xbf16>
    %1 = vector.shape_cast %0 : vector<1x256x4xbf16> to vector<256x4xbf16>
    %c0_2 = arith.constant 0 : index
    %c0_3 = arith.constant 0 : index
    %c0_4 = arith.constant 0 : index
    %2 = vector.load %arg2[%c0_2, %c0_3, %c0_4] : memref<1x4x128xbf16, #tpu.memory_space<vmem>>, vector<1x4x128xbf16>
    %3 = vector.shape_cast %2 : vector<1x4x128xbf16> to vector<4x128xbf16>
    %cst = arith.constant dense<0.000000e+00> : vector<256x128xf32>
    %4 = tpu.matmul %1, %3, %cst {dimension_numbers = #tpu.dot_dimension_numbers<[1], [0], [0], [1], [0, 0, 1, 1], [], []>} : vector<256x4xbf16>, vector<4x128xbf16>, vector<256x128xf32> -> vector<256x128xf32>
    %cst_5 = arith.constant dense<0.000000e+00> : vector<128xf32>
    %5 = vector.multi_reduction <add>, %4, %cst_5 [0] : vector<256x128xf32> to vector<128xf32>
    %6 = vector.shape_cast %5 : vector<128xf32> to vector<1x128xf32>
    %cst_6 = arith.constant 3.906250e-03 : f32
    %7 = vector.broadcast %cst_6 : f32 to vector<1x128xf32>
    %8 = arith.mulf %6, %7 : vector<1x128xf32>
    %9 = vector.broadcast %8 : vector<1x128xf32> to vector<256x128xf32>
    %10 = arith.subf %4, %9 : vector<256x128xf32>
    %11 = arith.mulf %10, %10 : vector<256x128xf32>
    %cst_7 = arith.constant dense<0.000000e+00> : vector<128xf32>
    %12 = vector.multi_reduction <add>, %11, %cst_7 [0] : vector<256x128xf32> to vector<128xf32>
    %13 = vector.shape_cast %12 : vector<128xf32> to vector<1x128xf32>
    %cst_8 = arith.constant 3.906250e-03 : f32
    %14 = vector.broadcast %cst_8 : f32 to vector<1x128xf32>
    %15 = arith.mulf %13, %14 : vector<1x128xf32>
    %cst_9 = arith.constant 9.99999974E-6 : f32
    %16 = vector.broadcast %cst_9 : f32 to vector<1x128xf32>
    %17 = arith.addf %15, %16 : vector<1x128xf32>
    %18 = math.rsqrt %17 : vector<1x128xf32>
    %19 = vector.broadcast %18 : vector<1x128xf32> to vector<256x128xf32>
    %20 = arith.mulf %10, %19 : vector<256x128xf32>
    %21 = arith.truncf %20 : vector<256x128xf32> to vector<256x128xbf16>
    %c0_10 = arith.constant 0 : index
    %c0_11 = arith.constant 0 : index
    %22 = vector.load %arg3[%c0_10, %c0_11] : memref<256x128xbf16, #tpu.memory_space<vmem>>, vector<256x128xbf16>
    tpu.vector_store %arg3[%c0_10, %c0_11], %21 {strides = array<i32>} : memref<256x128xbf16, #tpu.memory_space<vmem>>, vector<256x128xbf16>,
    return
  }
  func.func @transform_0(%arg0: i32) -> (i32, i32, i32) {
    %c0_i32 = arith.constant 0 : i32
    %c0_i32_0 = arith.constant 0 : i32
    %c0_i32_1 = arith.constant 0 : i32
    return %c0_i32, %arg0, %c0_i32_0 : i32, i32, i32
  }
  func.func @transform_1(%arg0: i32) -> (i32, i32, i32) {
    %c0_i32 = arith.constant 0 : i32
    %c0_i32_0 = arith.constant 0 : i32
    %c0_i32_1 = arith.constant 0 : i32
    %c0_i32_2 = arith.constant 0 : i32
    return %c0_i32, %c0_i32_0, %c0_i32_1 : i32, i32, i32
  }
  func.func @transform_2(%arg0: i32) -> (i32, i32) {
    %c0_i32 = arith.constant 0 : i32
    %c0_i32_0 = arith.constant 0 : i32
    return %arg0, %c0_i32 : i32, i32
  }
}

module attributes {stable_mosaic.version = 11 : i64} {
  func.func @_conv_kernel(%arg0: i32, %arg1: memref<2x16x36xbf16, #tpu.memory_space<vmem>>, %arg2: memref<2x36x128xbf16, #tpu.memory_space<vmem>>, %arg3: memref<16x128xbf16, #tpu.memory_space<vmem>>) attributes {dimension_semantics = [#tpu.dimension_semantics<parallel>], iteration_bounds = array<i64: 2>, scalar_prefetch = 0 : i64, scratch_operands = 0 : i64, tpu.core_type = #tpu.core_type<tc>, window_params = [{transform_indices = @transform_0, window_bounds = array<i64: 2, 16, 36>}, {pipeline_mode = #tpu.pipeline_mode<synchronous>, transform_indices = @transform_1, window_bounds = array<i64: 2, 36, 128>}, {transform_indices = @transform_2, window_bounds = array<i64: 16, 128>}]} {
    %c0 = arith.constant 0 : index
    %c0_0 = arith.constant 0 : index
    %c0_1 = arith.constant 0 : index
    %0 = vector.load %arg1[%c0, %c0_0, %c0_1] : memref<2x16x36xbf16, #tpu.memory_space<vmem>>, vector<1x16x36xbf16>
    %1 = vector.shape_cast %0 : vector<1x16x36xbf16> to vector<16x36xbf16>
    %c0_2 = arith.constant 0 : index
    %c0_3 = arith.constant 0 : index
    %c0_4 = arith.constant 0 : index
    %2 = vector.load %arg2[%c0_2, %c0_3, %c0_4] : memref<2x36x128xbf16, #tpu.memory_space<vmem>>, vector<1x36x128xbf16>
    %3 = vector.shape_cast %2 : vector<1x36x128xbf16> to vector<36x128xbf16>
    %cst = arith.constant dense<0.000000e+00> : vector<16x128xf32>
    %4 = tpu.matmul %1, %3, %cst {dimension_numbers = #tpu.dot_dimension_numbers<[1], [0], [0], [1], [0, 0, 1, 1], [], []>} : vector<16x36xbf16>, vector<36x128xbf16>, vector<16x128xf32> -> vector<16x128xf32>
    %cst_5 = arith.constant dense<0.000000e+00> : vector<128xf32>
    %5 = vector.multi_reduction <add>, %4, %cst_5 [0] : vector<16x128xf32> to vector<128xf32>
    %6 = vector.shape_cast %5 : vector<128xf32> to vector<1x128xf32>
    %cst_6 = arith.constant 6.250000e-02 : f32
    %7 = vector.broadcast %cst_6 : f32 to vector<1x128xf32>
    %8 = arith.mulf %6, %7 : vector<1x128xf32>
    %9 = vector.broadcast %8 : vector<1x128xf32> to vector<16x128xf32>
    %10 = arith.subf %4, %9 : vector<16x128xf32>
    %11 = arith.mulf %10, %10 : vector<16x128xf32>
    %cst_7 = arith.constant dense<0.000000e+00> : vector<128xf32>
    %12 = vector.multi_reduction <add>, %11, %cst_7 [0] : vector<16x128xf32> to vector<128xf32>
    %13 = vector.shape_cast %12 : vector<128xf32> to vector<1x128xf32>
    %cst_8 = arith.constant 6.250000e-02 : f32
    %14 = vector.broadcast %cst_8 : f32 to vector<1x128xf32>
    %15 = arith.mulf %13, %14 : vector<1x128xf32>
    %cst_9 = arith.constant 9.99999974E-6 : f32
    %16 = vector.broadcast %cst_9 : f32 to vector<1x128xf32>
    %17 = arith.addf %15, %16 : vector<1x128xf32>
    %18 = math.rsqrt %17 : vector<1x128xf32>
    %19 = vector.broadcast %18 : vector<1x128xf32> to vector<16x128xf32>
    %20 = arith.mulf %10, %19 : vector<16x128xf32>
    %c1 = arith.constant 1 : index
    %c0_10 = arith.constant 0 : index
    %c0_11 = arith.constant 0 : index
    %21 = vector.load %arg1[%c1, %c0_10, %c0_11] : memref<2x16x36xbf16, #tpu.memory_space<vmem>>, vector<1x16x36xbf16>
    %22 = vector.shape_cast %21 : vector<1x16x36xbf16> to vector<16x36xbf16>
    %c1_12 = arith.constant 1 : index
    %c0_13 = arith.constant 0 : index
    %c0_14 = arith.constant 0 : index
    %23 = vector.load %arg2[%c1_12, %c0_13, %c0_14] : memref<2x36x128xbf16, #tpu.memory_space<vmem>>, vector<1x36x128xbf16>
    %24 = vector.shape_cast %23 : vector<1x36x128xbf16> to vector<36x128xbf16>
    %cst_15 = arith.constant dense<0.000000e+00> : vector<16x128xf32>
    %25 = tpu.matmul %22, %24, %cst_15 {dimension_numbers = #tpu.dot_dimension_numbers<[1], [0], [0], [1], [0, 0, 1, 1], [], []>} : vector<16x36xbf16>, vector<36x128xbf16>, vector<16x128xf32> -> vector<16x128xf32>
    %cst_16 = arith.constant dense<0.000000e+00> : vector<128xf32>
    %26 = vector.multi_reduction <add>, %25, %cst_16 [0] : vector<16x128xf32> to vector<128xf32>
    %27 = vector.shape_cast %26 : vector<128xf32> to vector<1x128xf32>
    %cst_17 = arith.constant 6.250000e-02 : f32
    %28 = vector.broadcast %cst_17 : f32 to vector<1x128xf32>
    %29 = arith.mulf %27, %28 : vector<1x128xf32>
    %30 = vector.broadcast %29 : vector<1x128xf32> to vector<16x128xf32>
    %31 = arith.subf %25, %30 : vector<16x128xf32>
    %32 = arith.mulf %31, %31 : vector<16x128xf32>
    %cst_18 = arith.constant dense<0.000000e+00> : vector<128xf32>
    %33 = vector.multi_reduction <add>, %32, %cst_18 [0] : vector<16x128xf32> to vector<128xf32>
    %34 = vector.shape_cast %33 : vector<128xf32> to vector<1x128xf32>
    %cst_19 = arith.constant 6.250000e-02 : f32
    %35 = vector.broadcast %cst_19 : f32 to vector<1x128xf32>
    %36 = arith.mulf %34, %35 : vector<1x128xf32>
    %cst_20 = arith.constant 9.99999974E-6 : f32
    %37 = vector.broadcast %cst_20 : f32 to vector<1x128xf32>
    %38 = arith.addf %36, %37 : vector<1x128xf32>
    %39 = math.rsqrt %38 : vector<1x128xf32>
    %40 = vector.broadcast %39 : vector<1x128xf32> to vector<16x128xf32>
    %41 = arith.mulf %31, %40 : vector<16x128xf32>
    %42 = arith.addf %20, %41 : vector<16x128xf32>
    %43 = arith.truncf %42 : vector<16x128xf32> to vector<16x128xbf16>
    %c0_21 = arith.constant 0 : index
    %c0_22 = arith.constant 0 : index
    %44 = vector.load %arg3[%c0_21, %c0_22] : memref<16x128xbf16, #tpu.memory_space<vmem>>, vector<16x128xbf16>
    tpu.vector_store %arg3[%c0_21, %c0_22], %43 {strides = array<i32>} : memref<16x128xbf16, #tpu.memory_space<vmem>>, vector<16x128xbf16>,
    return
  }
  func.func @transform_0(%arg0: i32) -> (i32, i32, i32) {
    %c0_i32 = arith.constant 0 : i32
    %c0_i32_0 = arith.constant 0 : i32
    %c0_i32_1 = arith.constant 0 : i32
    return %c0_i32, %arg0, %c0_i32_0 : i32, i32, i32
  }
  func.func @transform_1(%arg0: i32) -> (i32, i32, i32) {
    %c0_i32 = arith.constant 0 : i32
    %c0_i32_0 = arith.constant 0 : i32
    %c0_i32_1 = arith.constant 0 : i32
    %c0_i32_2 = arith.constant 0 : i32
    return %c0_i32, %c0_i32_0, %c0_i32_1 : i32, i32, i32
  }
  func.func @transform_2(%arg0: i32) -> (i32, i32) {
    %c0_i32 = arith.constant 0 : i32
    %c0_i32_0 = arith.constant 0 : i32
    return %arg0, %c0_i32 : i32, i32
  }
}

module attributes {stable_mosaic.version = 11 : i64} {
  func.func @_conv_kernel(%arg0: i32, %arg1: memref<1x16x36xbf16, #tpu.memory_space<vmem>>, %arg2: memref<1x36x128xbf16, #tpu.memory_space<vmem>>, %arg3: memref<16x128xbf16, #tpu.memory_space<vmem>>) attributes {dimension_semantics = [#tpu.dimension_semantics<parallel>], iteration_bounds = array<i64: 2>, scalar_prefetch = 0 : i64, scratch_operands = 0 : i64, tpu.core_type = #tpu.core_type<tc>, window_params = [{transform_indices = @transform_0, window_bounds = array<i64: 1, 16, 36>}, {pipeline_mode = #tpu.pipeline_mode<synchronous>, transform_indices = @transform_1, window_bounds = array<i64: 1, 36, 128>}, {transform_indices = @transform_2, window_bounds = array<i64: 16, 128>}]} {
    %c0 = arith.constant 0 : index
    %c0_0 = arith.constant 0 : index
    %c0_1 = arith.constant 0 : index
    %0 = vector.load %arg1[%c0, %c0_0, %c0_1] : memref<1x16x36xbf16, #tpu.memory_space<vmem>>, vector<1x16x36xbf16>
    %1 = vector.shape_cast %0 : vector<1x16x36xbf16> to vector<16x36xbf16>
    %c0_2 = arith.constant 0 : index
    %c0_3 = arith.constant 0 : index
    %c0_4 = arith.constant 0 : index
    %2 = vector.load %arg2[%c0_2, %c0_3, %c0_4] : memref<1x36x128xbf16, #tpu.memory_space<vmem>>, vector<1x36x128xbf16>
    %3 = vector.shape_cast %2 : vector<1x36x128xbf16> to vector<36x128xbf16>
    %cst = arith.constant dense<0.000000e+00> : vector<16x128xf32>
    %4 = tpu.matmul %1, %3, %cst {dimension_numbers = #tpu.dot_dimension_numbers<[1], [0], [0], [1], [0, 0, 1, 1], [], []>} : vector<16x36xbf16>, vector<36x128xbf16>, vector<16x128xf32> -> vector<16x128xf32>
    %cst_5 = arith.constant dense<0.000000e+00> : vector<128xf32>
    %5 = vector.multi_reduction <add>, %4, %cst_5 [0] : vector<16x128xf32> to vector<128xf32>
    %6 = vector.shape_cast %5 : vector<128xf32> to vector<1x128xf32>
    %cst_6 = arith.constant 6.250000e-02 : f32
    %7 = vector.broadcast %cst_6 : f32 to vector<1x128xf32>
    %8 = arith.mulf %6, %7 : vector<1x128xf32>
    %9 = vector.broadcast %8 : vector<1x128xf32> to vector<16x128xf32>
    %10 = arith.subf %4, %9 : vector<16x128xf32>
    %11 = arith.mulf %10, %10 : vector<16x128xf32>
    %cst_7 = arith.constant dense<0.000000e+00> : vector<128xf32>
    %12 = vector.multi_reduction <add>, %11, %cst_7 [0] : vector<16x128xf32> to vector<128xf32>
    %13 = vector.shape_cast %12 : vector<128xf32> to vector<1x128xf32>
    %cst_8 = arith.constant 6.250000e-02 : f32
    %14 = vector.broadcast %cst_8 : f32 to vector<1x128xf32>
    %15 = arith.mulf %13, %14 : vector<1x128xf32>
    %cst_9 = arith.constant 9.99999974E-6 : f32
    %16 = vector.broadcast %cst_9 : f32 to vector<1x128xf32>
    %17 = arith.addf %15, %16 : vector<1x128xf32>
    %18 = math.rsqrt %17 : vector<1x128xf32>
    %19 = vector.broadcast %18 : vector<1x128xf32> to vector<16x128xf32>
    %20 = arith.mulf %10, %19 : vector<16x128xf32>
    %21 = arith.truncf %20 : vector<16x128xf32> to vector<16x128xbf16>
    %c0_10 = arith.constant 0 : index
    %c0_11 = arith.constant 0 : index
    %22 = vector.load %arg3[%c0_10, %c0_11] : memref<16x128xbf16, #tpu.memory_space<vmem>>, vector<16x128xbf16>
    tpu.vector_store %arg3[%c0_10, %c0_11], %21 {strides = array<i32>} : memref<16x128xbf16, #tpu.memory_space<vmem>>, vector<16x128xbf16>,
    return
  }
  func.func @transform_0(%arg0: i32) -> (i32, i32, i32) {
    %c0_i32 = arith.constant 0 : i32
    %c0_i32_0 = arith.constant 0 : i32
    %c0_i32_1 = arith.constant 0 : i32
    return %c0_i32, %arg0, %c0_i32_0 : i32, i32, i32
  }
  func.func @transform_1(%arg0: i32) -> (i32, i32, i32) {
    %c0_i32 = arith.constant 0 : i32
    %c0_i32_0 = arith.constant 0 : i32
    %c0_i32_1 = arith.constant 0 : i32
    %c0_i32_2 = arith.constant 0 : i32
    return %c0_i32, %c0_i32_0, %c0_i32_1 : i32, i32, i32
  }
  func.func @transform_2(%arg0: i32) -> (i32, i32) {
    %c0_i32 = arith.constant 0 : i32
    %c0_i32_0 = arith.constant 0 : i32
    return %arg0, %c0_i32 : i32, i32
  }
}

module attributes {stable_mosaic.version = 11 : i64} {
  func.func @_conv_kernel(%arg0: i32, %arg1: memref<1x16x8xbf16, #tpu.memory_space<vmem>>, %arg2: memref<1x8x128xbf16, #tpu.memory_space<vmem>>, %arg3: memref<16x128xbf16, #tpu.memory_space<vmem>>) attributes {dimension_semantics = [#tpu.dimension_semantics<parallel>], iteration_bounds = array<i64: 2>, scalar_prefetch = 0 : i64, scratch_operands = 0 : i64, tpu.core_type = #tpu.core_type<tc>, window_params = [{transform_indices = @transform_0, window_bounds = array<i64: 1, 16, 8>}, {pipeline_mode = #tpu.pipeline_mode<synchronous>, transform_indices = @transform_1, window_bounds = array<i64: 1, 8, 128>}, {transform_indices = @transform_2, window_bounds = array<i64: 16, 128>}]} {
    %c0 = arith.constant 0 : index
    %c0_0 = arith.constant 0 : index
    %c0_1 = arith.constant 0 : index
    %0 = vector.load %arg1[%c0, %c0_0, %c0_1] : memref<1x16x8xbf16, #tpu.memory_space<vmem>>, vector<1x16x8xbf16>
    %1 = vector.shape_cast %0 : vector<1x16x8xbf16> to vector<16x8xbf16>
    %c0_2 = arith.constant 0 : index
    %c0_3 = arith.constant 0 : index
    %c0_4 = arith.constant 0 : index
    %2 = vector.load %arg2[%c0_2, %c0_3, %c0_4] : memref<1x8x128xbf16, #tpu.memory_space<vmem>>, vector<1x8x128xbf16>
    %3 = vector.shape_cast %2 : vector<1x8x128xbf16> to vector<8x128xbf16>
    %cst = arith.constant dense<0.000000e+00> : vector<16x128xf32>
    %4 = tpu.matmul %1, %3, %cst {dimension_numbers = #tpu.dot_dimension_numbers<[1], [0], [0], [1], [0, 0, 1, 1], [], []>} : vector<16x8xbf16>, vector<8x128xbf16>, vector<16x128xf32> -> vector<16x128xf32>
    %cst_5 = arith.constant dense<0.000000e+00> : vector<128xf32>
    %5 = vector.multi_reduction <add>, %4, %cst_5 [0] : vector<16x128xf32> to vector<128xf32>
    %6 = vector.shape_cast %5 : vector<128xf32> to vector<1x128xf32>
    %cst_6 = arith.constant 6.250000e-02 : f32
    %7 = vector.broadcast %cst_6 : f32 to vector<1x128xf32>
    %8 = arith.mulf %6, %7 : vector<1x128xf32>
    %9 = vector.broadcast %8 : vector<1x128xf32> to vector<16x128xf32>
    %10 = arith.subf %4, %9 : vector<16x128xf32>
    %11 = arith.mulf %10, %10 : vector<16x128xf32>
    %cst_7 = arith.constant dense<0.000000e+00> : vector<128xf32>
    %12 = vector.multi_reduction <add>, %11, %cst_7 [0] : vector<16x128xf32> to vector<128xf32>
    %13 = vector.shape_cast %12 : vector<128xf32> to vector<1x128xf32>
    %cst_8 = arith.constant 6.250000e-02 : f32
    %14 = vector.broadcast %cst_8 : f32 to vector<1x128xf32>
    %15 = arith.mulf %13, %14 : vector<1x128xf32>
    %cst_9 = arith.constant 9.99999974E-6 : f32
    %16 = vector.broadcast %cst_9 : f32 to vector<1x128xf32>
    %17 = arith.addf %15, %16 : vector<1x128xf32>
    %18 = math.rsqrt %17 : vector<1x128xf32>
    %19 = vector.broadcast %18 : vector<1x128xf32> to vector<16x128xf32>
    %20 = arith.mulf %10, %19 : vector<16x128xf32>
    %21 = arith.truncf %20 : vector<16x128xf32> to vector<16x128xbf16>
    %c0_10 = arith.constant 0 : index
    %c0_11 = arith.constant 0 : index
    %22 = vector.load %arg3[%c0_10, %c0_11] : memref<16x128xbf16, #tpu.memory_space<vmem>>, vector<16x128xbf16>
    tpu.vector_store %arg3[%c0_10, %c0_11], %21 {strides = array<i32>} : memref<16x128xbf16, #tpu.memory_space<vmem>>, vector<16x128xbf16>,
    return
  }
  func.func @transform_0(%arg0: i32) -> (i32, i32, i32) {
    %c0_i32 = arith.constant 0 : i32
    %c0_i32_0 = arith.constant 0 : i32
    %c0_i32_1 = arith.constant 0 : i32
    return %c0_i32, %arg0, %c0_i32_0 : i32, i32, i32
  }
  func.func @transform_1(%arg0: i32) -> (i32, i32, i32) {
    %c0_i32 = arith.constant 0 : i32
    %c0_i32_0 = arith.constant 0 : i32
    %c0_i32_1 = arith.constant 0 : i32
    %c0_i32_2 = arith.constant 0 : i32
    return %c0_i32, %c0_i32_0, %c0_i32_1 : i32, i32, i32
  }
  func.func @transform_2(%arg0: i32) -> (i32, i32) {
    %c0_i32 = arith.constant 0 : i32
    %c0_i32_0 = arith.constant 0 : i32
    return %arg0, %c0_i32 : i32, i32
  }
}

module attributes {stable_mosaic.version = 11 : i64} {
  func.func @_conv_kernel(%arg0: i32, %arg1: memref<2x64x36xbf16, #tpu.memory_space<vmem>>, %arg2: memref<2x36x128xbf16, #tpu.memory_space<vmem>>, %arg3: memref<64x128xbf16, #tpu.memory_space<vmem>>) attributes {dimension_semantics = [#tpu.dimension_semantics<parallel>], iteration_bounds = array<i64: 2>, scalar_prefetch = 0 : i64, scratch_operands = 0 : i64, tpu.core_type = #tpu.core_type<tc>, window_params = [{transform_indices = @transform_0, window_bounds = array<i64: 2, 64, 36>}, {pipeline_mode = #tpu.pipeline_mode<synchronous>, transform_indices = @transform_1, window_bounds = array<i64: 2, 36, 128>}, {transform_indices = @transform_2, window_bounds = array<i64: 64, 128>}]} {
    %c0 = arith.constant 0 : index
    %c0_0 = arith.constant 0 : index
    %c0_1 = arith.constant 0 : index
    %0 = vector.load %arg1[%c0, %c0_0, %c0_1] : memref<2x64x36xbf16, #tpu.memory_space<vmem>>, vector<1x64x36xbf16>
    %1 = vector.shape_cast %0 : vector<1x64x36xbf16> to vector<64x36xbf16>
    %c0_2 = arith.constant 0 : index
    %c0_3 = arith.constant 0 : index
    %c0_4 = arith.constant 0 : index
    %2 = vector.load %arg2[%c0_2, %c0_3, %c0_4] : memref<2x36x128xbf16, #tpu.memory_space<vmem>>, vector<1x36x128xbf16>
    %3 = vector.shape_cast %2 : vector<1x36x128xbf16> to vector<36x128xbf16>
    %cst = arith.constant dense<0.000000e+00> : vector<64x128xf32>
    %4 = tpu.matmul %1, %3, %cst {dimension_numbers = #tpu.dot_dimension_numbers<[1], [0], [0], [1], [0, 0, 1, 1], [], []>} : vector<64x36xbf16>, vector<36x128xbf16>, vector<64x128xf32> -> vector<64x128xf32>
    %cst_5 = arith.constant dense<0.000000e+00> : vector<128xf32>
    %5 = vector.multi_reduction <add>, %4, %cst_5 [0] : vector<64x128xf32> to vector<128xf32>
    %6 = vector.shape_cast %5 : vector<128xf32> to vector<1x128xf32>
    %cst_6 = arith.constant 1.562500e-02 : f32
    %7 = vector.broadcast %cst_6 : f32 to vector<1x128xf32>
    %8 = arith.mulf %6, %7 : vector<1x128xf32>
    %9 = vector.broadcast %8 : vector<1x128xf32> to vector<64x128xf32>
    %10 = arith.subf %4, %9 : vector<64x128xf32>
    %11 = arith.mulf %10, %10 : vector<64x128xf32>
    %cst_7 = arith.constant dense<0.000000e+00> : vector<128xf32>
    %12 = vector.multi_reduction <add>, %11, %cst_7 [0] : vector<64x128xf32> to vector<128xf32>
    %13 = vector.shape_cast %12 : vector<128xf32> to vector<1x128xf32>
    %cst_8 = arith.constant 1.562500e-02 : f32
    %14 = vector.broadcast %cst_8 : f32 to vector<1x128xf32>
    %15 = arith.mulf %13, %14 : vector<1x128xf32>
    %cst_9 = arith.constant 9.99999974E-6 : f32
    %16 = vector.broadcast %cst_9 : f32 to vector<1x128xf32>
    %17 = arith.addf %15, %16 : vector<1x128xf32>
    %18 = math.rsqrt %17 : vector<1x128xf32>
    %19 = vector.broadcast %18 : vector<1x128xf32> to vector<64x128xf32>
    %20 = arith.mulf %10, %19 : vector<64x128xf32>
    %c1 = arith.constant 1 : index
    %c0_10 = arith.constant 0 : index
    %c0_11 = arith.constant 0 : index
    %21 = vector.load %arg1[%c1, %c0_10, %c0_11] : memref<2x64x36xbf16, #tpu.memory_space<vmem>>, vector<1x64x36xbf16>
    %22 = vector.shape_cast %21 : vector<1x64x36xbf16> to vector<64x36xbf16>
    %c1_12 = arith.constant 1 : index
    %c0_13 = arith.constant 0 : index
    %c0_14 = arith.constant 0 : index
    %23 = vector.load %arg2[%c1_12, %c0_13, %c0_14] : memref<2x36x128xbf16, #tpu.memory_space<vmem>>, vector<1x36x128xbf16>
    %24 = vector.shape_cast %23 : vector<1x36x128xbf16> to vector<36x128xbf16>
    %cst_15 = arith.constant dense<0.000000e+00> : vector<64x128xf32>
    %25 = tpu.matmul %22, %24, %cst_15 {dimension_numbers = #tpu.dot_dimension_numbers<[1], [0], [0], [1], [0, 0, 1, 1], [], []>} : vector<64x36xbf16>, vector<36x128xbf16>, vector<64x128xf32> -> vector<64x128xf32>
    %cst_16 = arith.constant dense<0.000000e+00> : vector<128xf32>
    %26 = vector.multi_reduction <add>, %25, %cst_16 [0] : vector<64x128xf32> to vector<128xf32>
    %27 = vector.shape_cast %26 : vector<128xf32> to vector<1x128xf32>
    %cst_17 = arith.constant 1.562500e-02 : f32
    %28 = vector.broadcast %cst_17 : f32 to vector<1x128xf32>
    %29 = arith.mulf %27, %28 : vector<1x128xf32>
    %30 = vector.broadcast %29 : vector<1x128xf32> to vector<64x128xf32>
    %31 = arith.subf %25, %30 : vector<64x128xf32>
    %32 = arith.mulf %31, %31 : vector<64x128xf32>
    %cst_18 = arith.constant dense<0.000000e+00> : vector<128xf32>
    %33 = vector.multi_reduction <add>, %32, %cst_18 [0] : vector<64x128xf32> to vector<128xf32>
    %34 = vector.shape_cast %33 : vector<128xf32> to vector<1x128xf32>
    %cst_19 = arith.constant 1.562500e-02 : f32
    %35 = vector.broadcast %cst_19 : f32 to vector<1x128xf32>
    %36 = arith.mulf %34, %35 : vector<1x128xf32>
    %cst_20 = arith.constant 9.99999974E-6 : f32
    %37 = vector.broadcast %cst_20 : f32 to vector<1x128xf32>
    %38 = arith.addf %36, %37 : vector<1x128xf32>
    %39 = math.rsqrt %38 : vector<1x128xf32>
    %40 = vector.broadcast %39 : vector<1x128xf32> to vector<64x128xf32>
    %41 = arith.mulf %31, %40 : vector<64x128xf32>
    %42 = arith.addf %20, %41 : vector<64x128xf32>
    %43 = arith.truncf %42 : vector<64x128xf32> to vector<64x128xbf16>
    %c0_21 = arith.constant 0 : index
    %c0_22 = arith.constant 0 : index
    %44 = vector.load %arg3[%c0_21, %c0_22] : memref<64x128xbf16, #tpu.memory_space<vmem>>, vector<64x128xbf16>
    tpu.vector_store %arg3[%c0_21, %c0_22], %43 {strides = array<i32>} : memref<64x128xbf16, #tpu.memory_space<vmem>>, vector<64x128xbf16>,
    return
  }
  func.func @transform_0(%arg0: i32) -> (i32, i32, i32) {
    %c0_i32 = arith.constant 0 : i32
    %c0_i32_0 = arith.constant 0 : i32
    %c0_i32_1 = arith.constant 0 : i32
    return %c0_i32, %arg0, %c0_i32_0 : i32, i32, i32
  }
  func.func @transform_1(%arg0: i32) -> (i32, i32, i32) {
    %c0_i32 = arith.constant 0 : i32
    %c0_i32_0 = arith.constant 0 : i32
    %c0_i32_1 = arith.constant 0 : i32
    %c0_i32_2 = arith.constant 0 : i32
    return %c0_i32, %c0_i32_0, %c0_i32_1 : i32, i32, i32
  }
  func.func @transform_2(%arg0: i32) -> (i32, i32) {
    %c0_i32 = arith.constant 0 : i32
    %c0_i32_0 = arith.constant 0 : i32
    return %arg0, %c0_i32 : i32, i32
  }
}

module attributes {stable_mosaic.version = 11 : i64} {
  func.func @_conv_kernel(%arg0: i32, %arg1: memref<1x256x8xbf16, #tpu.memory_space<vmem>>, %arg2: memref<1x8x128xbf16, #tpu.memory_space<vmem>>, %arg3: memref<256x128xbf16, #tpu.memory_space<vmem>>) attributes {dimension_semantics = [#tpu.dimension_semantics<parallel>], iteration_bounds = array<i64: 2>, scalar_prefetch = 0 : i64, scratch_operands = 0 : i64, tpu.core_type = #tpu.core_type<tc>, window_params = [{transform_indices = @transform_0, window_bounds = array<i64: 1, 256, 8>}, {pipeline_mode = #tpu.pipeline_mode<synchronous>, transform_indices = @transform_1, window_bounds = array<i64: 1, 8, 128>}, {transform_indices = @transform_2, window_bounds = array<i64: 256, 128>}]} {
    %c0 = arith.constant 0 : index
    %c0_0 = arith.constant 0 : index
    %c0_1 = arith.constant 0 : index
    %0 = vector.load %arg1[%c0, %c0_0, %c0_1] : memref<1x256x8xbf16, #tpu.memory_space<vmem>>, vector<1x256x8xbf16>
    %1 = vector.shape_cast %0 : vector<1x256x8xbf16> to vector<256x8xbf16>
    %c0_2 = arith.constant 0 : index
    %c0_3 = arith.constant 0 : index
    %c0_4 = arith.constant 0 : index
    %2 = vector.load %arg2[%c0_2, %c0_3, %c0_4] : memref<1x8x128xbf16, #tpu.memory_space<vmem>>, vector<1x8x128xbf16>
    %3 = vector.shape_cast %2 : vector<1x8x128xbf16> to vector<8x128xbf16>
    %cst = arith.constant dense<0.000000e+00> : vector<256x128xf32>
    %4 = tpu.matmul %1, %3, %cst {dimension_numbers = #tpu.dot_dimension_numbers<[1], [0], [0], [1], [0, 0, 1, 1], [], []>} : vector<256x8xbf16>, vector<8x128xbf16>, vector<256x128xf32> -> vector<256x128xf32>
    %cst_5 = arith.constant dense<0.000000e+00> : vector<128xf32>
    %5 = vector.multi_reduction <add>, %4, %cst_5 [0] : vector<256x128xf32> to vector<128xf32>
    %6 = vector.shape_cast %5 : vector<128xf32> to vector<1x128xf32>
    %cst_6 = arith.constant 3.906250e-03 : f32
    %7 = vector.broadcast %cst_6 : f32 to vector<1x128xf32>
    %8 = arith.mulf %6, %7 : vector<1x128xf32>
    %9 = vector.broadcast %8 : vector<1x128xf32> to vector<256x128xf32>
    %10 = arith.subf %4, %9 : vector<256x128xf32>
    %11 = arith.mulf %10, %10 : vector<256x128xf32>
    %cst_7 = arith.constant dense<0.000000e+00> : vector<128xf32>
    %12 = vector.multi_reduction <add>, %11, %cst_7 [0] : vector<256x128xf32> to vector<128xf32>
    %13 = vector.shape_cast %12 : vector<128xf32> to vector<1x128xf32>
    %cst_8 = arith.constant 3.906250e-03 : f32
    %14 = vector.broadcast %cst_8 : f32 to vector<1x128xf32>
    %15 = arith.mulf %13, %14 : vector<1x128xf32>
    %cst_9 = arith.constant 9.99999974E-6 : f32
    %16 = vector.broadcast %cst_9 : f32 to vector<1x128xf32>
    %17 = arith.addf %15, %16 : vector<1x128xf32>
    %18 = math.rsqrt %17 : vector<1x128xf32>
    %19 = vector.broadcast %18 : vector<1x128xf32> to vector<256x128xf32>
    %20 = arith.mulf %10, %19 : vector<256x128xf32>
    %21 = arith.truncf %20 : vector<256x128xf32> to vector<256x128xbf16>
    %c0_10 = arith.constant 0 : index
    %c0_11 = arith.constant 0 : index
    %22 = vector.load %arg3[%c0_10, %c0_11] : memref<256x128xbf16, #tpu.memory_space<vmem>>, vector<256x128xbf16>
    tpu.vector_store %arg3[%c0_10, %c0_11], %21 {strides = array<i32>} : memref<256x128xbf16, #tpu.memory_space<vmem>>, vector<256x128xbf16>,
    return
  }
  func.func @transform_0(%arg0: i32) -> (i32, i32, i32) {
    %c0_i32 = arith.constant 0 : i32
    %c0_i32_0 = arith.constant 0 : i32
    %c0_i32_1 = arith.constant 0 : i32
    return %c0_i32, %arg0, %c0_i32_0 : i32, i32, i32
  }
  func.func @transform_1(%arg0: i32) -> (i32, i32, i32) {
    %c0_i32 = arith.constant 0 : i32
    %c0_i32_0 = arith.constant 0 : i32
    %c0_i32_1 = arith.constant 0 : i32
    %c0_i32_2 = arith.constant 0 : i32
    return %c0_i32, %c0_i32_0, %c0_i32_1 : i32, i32, i32
  }
  func.func @transform_2(%arg0: i32) -> (i32, i32) {
    %c0_i32 = arith.constant 0 : i32
    %c0_i32_0 = arith.constant 0 : i32
    return %arg0, %c0_i32 : i32, i32
  }
}

module attributes {stable_mosaic.version = 11 : i64} {
  func.func @_conv_kernel(%arg0: i32, %arg1: memref<2x256x36xbf16, #tpu.memory_space<vmem>>, %arg2: memref<2x36x128xbf16, #tpu.memory_space<vmem>>, %arg3: memref<256x128xbf16, #tpu.memory_space<vmem>>) attributes {dimension_semantics = [#tpu.dimension_semantics<parallel>], iteration_bounds = array<i64: 2>, scalar_prefetch = 0 : i64, scratch_operands = 0 : i64, tpu.core_type = #tpu.core_type<tc>, window_params = [{transform_indices = @transform_0, window_bounds = array<i64: 2, 256, 36>}, {pipeline_mode = #tpu.pipeline_mode<synchronous>, transform_indices = @transform_1, window_bounds = array<i64: 2, 36, 128>}, {transform_indices = @transform_2, window_bounds = array<i64: 256, 128>}]} {
    %c0 = arith.constant 0 : index
    %c0_0 = arith.constant 0 : index
    %c0_1 = arith.constant 0 : index
    %0 = vector.load %arg1[%c0, %c0_0, %c0_1] : memref<2x256x36xbf16, #tpu.memory_space<vmem>>, vector<1x256x36xbf16>
    %1 = vector.shape_cast %0 : vector<1x256x36xbf16> to vector<256x36xbf16>
    %c0_2 = arith.constant 0 : index
    %c0_3 = arith.constant 0 : index
    %c0_4 = arith.constant 0 : index
    %2 = vector.load %arg2[%c0_2, %c0_3, %c0_4] : memref<2x36x128xbf16, #tpu.memory_space<vmem>>, vector<1x36x128xbf16>
    %3 = vector.shape_cast %2 : vector<1x36x128xbf16> to vector<36x128xbf16>
    %cst = arith.constant dense<0.000000e+00> : vector<256x128xf32>
    %4 = tpu.matmul %1, %3, %cst {dimension_numbers = #tpu.dot_dimension_numbers<[1], [0], [0], [1], [0, 0, 1, 1], [], []>} : vector<256x36xbf16>, vector<36x128xbf16>, vector<256x128xf32> -> vector<256x128xf32>
    %cst_5 = arith.constant dense<0.000000e+00> : vector<128xf32>
    %5 = vector.multi_reduction <add>, %4, %cst_5 [0] : vector<256x128xf32> to vector<128xf32>
    %6 = vector.shape_cast %5 : vector<128xf32> to vector<1x128xf32>
    %cst_6 = arith.constant 3.906250e-03 : f32
    %7 = vector.broadcast %cst_6 : f32 to vector<1x128xf32>
    %8 = arith.mulf %6, %7 : vector<1x128xf32>
    %9 = vector.broadcast %8 : vector<1x128xf32> to vector<256x128xf32>
    %10 = arith.subf %4, %9 : vector<256x128xf32>
    %11 = arith.mulf %10, %10 : vector<256x128xf32>
    %cst_7 = arith.constant dense<0.000000e+00> : vector<128xf32>
    %12 = vector.multi_reduction <add>, %11, %cst_7 [0] : vector<256x128xf32> to vector<128xf32>
    %13 = vector.shape_cast %12 : vector<128xf32> to vector<1x128xf32>
    %cst_8 = arith.constant 3.906250e-03 : f32
    %14 = vector.broadcast %cst_8 : f32 to vector<1x128xf32>
    %15 = arith.mulf %13, %14 : vector<1x128xf32>
    %cst_9 = arith.constant 9.99999974E-6 : f32
    %16 = vector.broadcast %cst_9 : f32 to vector<1x128xf32>
    %17 = arith.addf %15, %16 : vector<1x128xf32>
    %18 = math.rsqrt %17 : vector<1x128xf32>
    %19 = vector.broadcast %18 : vector<1x128xf32> to vector<256x128xf32>
    %20 = arith.mulf %10, %19 : vector<256x128xf32>
    %c1 = arith.constant 1 : index
    %c0_10 = arith.constant 0 : index
    %c0_11 = arith.constant 0 : index
    %21 = vector.load %arg1[%c1, %c0_10, %c0_11] : memref<2x256x36xbf16, #tpu.memory_space<vmem>>, vector<1x256x36xbf16>
    %22 = vector.shape_cast %21 : vector<1x256x36xbf16> to vector<256x36xbf16>
    %c1_12 = arith.constant 1 : index
    %c0_13 = arith.constant 0 : index
    %c0_14 = arith.constant 0 : index
    %23 = vector.load %arg2[%c1_12, %c0_13, %c0_14] : memref<2x36x128xbf16, #tpu.memory_space<vmem>>, vector<1x36x128xbf16>
    %24 = vector.shape_cast %23 : vector<1x36x128xbf16> to vector<36x128xbf16>
    %cst_15 = arith.constant dense<0.000000e+00> : vector<256x128xf32>
    %25 = tpu.matmul %22, %24, %cst_15 {dimension_numbers = #tpu.dot_dimension_numbers<[1], [0], [0], [1], [0, 0, 1, 1], [], []>} : vector<256x36xbf16>, vector<36x128xbf16>, vector<256x128xf32> -> vector<256x128xf32>
    %cst_16 = arith.constant dense<0.000000e+00> : vector<128xf32>
    %26 = vector.multi_reduction <add>, %25, %cst_16 [0] : vector<256x128xf32> to vector<128xf32>
    %27 = vector.shape_cast %26 : vector<128xf32> to vector<1x128xf32>
    %cst_17 = arith.constant 3.906250e-03 : f32
    %28 = vector.broadcast %cst_17 : f32 to vector<1x128xf32>
    %29 = arith.mulf %27, %28 : vector<1x128xf32>
    %30 = vector.broadcast %29 : vector<1x128xf32> to vector<256x128xf32>
    %31 = arith.subf %25, %30 : vector<256x128xf32>
    %32 = arith.mulf %31, %31 : vector<256x128xf32>
    %cst_18 = arith.constant dense<0.000000e+00> : vector<128xf32>
    %33 = vector.multi_reduction <add>, %32, %cst_18 [0] : vector<256x128xf32> to vector<128xf32>
    %34 = vector.shape_cast %33 : vector<128xf32> to vector<1x128xf32>
    %cst_19 = arith.constant 3.906250e-03 : f32
    %35 = vector.broadcast %cst_19 : f32 to vector<1x128xf32>
    %36 = arith.mulf %34, %35 : vector<1x128xf32>
    %cst_20 = arith.constant 9.99999974E-6 : f32
    %37 = vector.broadcast %cst_20 : f32 to vector<1x128xf32>
    %38 = arith.addf %36, %37 : vector<1x128xf32>
    %39 = math.rsqrt %38 : vector<1x128xf32>
    %40 = vector.broadcast %39 : vector<1x128xf32> to vector<256x128xf32>
    %41 = arith.mulf %31, %40 : vector<256x128xf32>
    %42 = arith.addf %20, %41 : vector<256x128xf32>
    %43 = arith.truncf %42 : vector<256x128xf32> to vector<256x128xbf16>
    %c0_21 = arith.constant 0 : index
    %c0_22 = arith.constant 0 : index
    %44 = vector.load %arg3[%c0_21, %c0_22] : memref<256x128xbf16, #tpu.memory_space<vmem>>, vector<256x128xbf16>
    tpu.vector_store %arg3[%c0_21, %c0_22], %43 {strides = array<i32>} : memref<256x128xbf16, #tpu.memory_space<vmem>>, vector<256x128xbf16>,
    return
  }
  func.func @transform_0(%arg0: i32) -> (i32, i32, i32) {
    %c0_i32 = arith.constant 0 : i32
    %c0_i32_0 = arith.constant 0 : i32
    %c0_i32_1 = arith.constant 0 : i32
    return %c0_i32, %arg0, %c0_i32_0 : i32, i32, i32
  }
  func.func @transform_1(%arg0: i32) -> (i32, i32, i32) {
    %c0_i32 = arith.constant 0 : i32
    %c0_i32_0 = arith.constant 0 : i32
    %c0_i32_1 = arith.constant 0 : i32
    %c0_i32_2 = arith.constant 0 : i32
    return %c0_i32, %c0_i32_0, %c0_i32_1 : i32, i32, i32
  }
  func.func @transform_2(%arg0: i32) -> (i32, i32) {
    %c0_i32 = arith.constant 0 : i32
    %c0_i32_0 = arith.constant 0 : i32
    return %arg0, %c0_i32 : i32, i32
  }
}

module attributes {stable_mosaic.version = 11 : i64} {
  func.func @_conv_kernel(%arg0: i32, %arg1: memref<1x256x36xbf16, #tpu.memory_space<vmem>>, %arg2: memref<1x36x128xbf16, #tpu.memory_space<vmem>>, %arg3: memref<256x128xbf16, #tpu.memory_space<vmem>>) attributes {dimension_semantics = [#tpu.dimension_semantics<parallel>], iteration_bounds = array<i64: 2>, scalar_prefetch = 0 : i64, scratch_operands = 0 : i64, tpu.core_type = #tpu.core_type<tc>, window_params = [{transform_indices = @transform_0, window_bounds = array<i64: 1, 256, 36>}, {pipeline_mode = #tpu.pipeline_mode<synchronous>, transform_indices = @transform_1, window_bounds = array<i64: 1, 36, 128>}, {transform_indices = @transform_2, window_bounds = array<i64: 256, 128>}]} {
    %c0 = arith.constant 0 : index
    %c0_0 = arith.constant 0 : index
    %c0_1 = arith.constant 0 : index
    %0 = vector.load %arg1[%c0, %c0_0, %c0_1] : memref<1x256x36xbf16, #tpu.memory_space<vmem>>, vector<1x256x36xbf16>
    %1 = vector.shape_cast %0 : vector<1x256x36xbf16> to vector<256x36xbf16>
    %c0_2 = arith.constant 0 : index
    %c0_3 = arith.constant 0 : index
    %c0_4 = arith.constant 0 : index
    %2 = vector.load %arg2[%c0_2, %c0_3, %c0_4] : memref<1x36x128xbf16, #tpu.memory_space<vmem>>, vector<1x36x128xbf16>
    %3 = vector.shape_cast %2 : vector<1x36x128xbf16> to vector<36x128xbf16>
    %cst = arith.constant dense<0.000000e+00> : vector<256x128xf32>
    %4 = tpu.matmul %1, %3, %cst {dimension_numbers = #tpu.dot_dimension_numbers<[1], [0], [0], [1], [0, 0, 1, 1], [], []>} : vector<256x36xbf16>, vector<36x128xbf16>, vector<256x128xf32> -> vector<256x128xf32>
    %cst_5 = arith.constant dense<0.000000e+00> : vector<128xf32>
    %5 = vector.multi_reduction <add>, %4, %cst_5 [0] : vector<256x128xf32> to vector<128xf32>
    %6 = vector.shape_cast %5 : vector<128xf32> to vector<1x128xf32>
    %cst_6 = arith.constant 3.906250e-03 : f32
    %7 = vector.broadcast %cst_6 : f32 to vector<1x128xf32>
    %8 = arith.mulf %6, %7 : vector<1x128xf32>
    %9 = vector.broadcast %8 : vector<1x128xf32> to vector<256x128xf32>
    %10 = arith.subf %4, %9 : vector<256x128xf32>
    %11 = arith.mulf %10, %10 : vector<256x128xf32>
    %cst_7 = arith.constant dense<0.000000e+00> : vector<128xf32>
    %12 = vector.multi_reduction <add>, %11, %cst_7 [0] : vector<256x128xf32> to vector<128xf32>
    %13 = vector.shape_cast %12 : vector<128xf32> to vector<1x128xf32>
    %cst_8 = arith.constant 3.906250e-03 : f32
    %14 = vector.broadcast %cst_8 : f32 to vector<1x128xf32>
    %15 = arith.mulf %13, %14 : vector<1x128xf32>
    %cst_9 = arith.constant 9.99999974E-6 : f32
    %16 = vector.broadcast %cst_9 : f32 to vector<1x128xf32>
    %17 = arith.addf %15, %16 : vector<1x128xf32>
    %18 = math.rsqrt %17 : vector<1x128xf32>
    %19 = vector.broadcast %18 : vector<1x128xf32> to vector<256x128xf32>
    %20 = arith.mulf %10, %19 : vector<256x128xf32>
    %21 = arith.truncf %20 : vector<256x128xf32> to vector<256x128xbf16>
    %c0_10 = arith.constant 0 : index
    %c0_11 = arith.constant 0 : index
    %22 = vector.load %arg3[%c0_10, %c0_11] : memref<256x128xbf16, #tpu.memory_space<vmem>>, vector<256x128xbf16>
    tpu.vector_store %arg3[%c0_10, %c0_11], %21 {strides = array<i32>} : memref<256x128xbf16, #tpu.memory_space<vmem>>, vector<256x128xbf16>,
    return
  }
  func.func @transform_0(%arg0: i32) -> (i32, i32, i32) {
    %c0_i32 = arith.constant 0 : i32
    %c0_i32_0 = arith.constant 0 : i32
    %c0_i32_1 = arith.constant 0 : i32
    return %c0_i32, %arg0, %c0_i32_0 : i32, i32, i32
  }
  func.func @transform_1(%arg0: i32) -> (i32, i32, i32) {
    %c0_i32 = arith.constant 0 : i32
    %c0_i32_0 = arith.constant 0 : i32
    %c0_i32_1 = arith.constant 0 : i32
    %c0_i32_2 = arith.constant 0 : i32
    return %c0_i32, %c0_i32_0, %c0_i32_1 : i32, i32, i32
  }
  func.func @transform_2(%arg0: i32) -> (i32, i32) {
    %c0_i32 = arith.constant 0 : i32
    %c0_i32_0 = arith.constant 0 : i32
    return %arg0, %c0_i32 : i32, i32
  }
}

module attributes {stable_mosaic.version = 11 : i64} {
  func.func @_conv_kernel(%arg0: i32, %arg1: memref<1x256x8xbf16, #tpu.memory_space<vmem>>, %arg2: memref<1x8x128xbf16, #tpu.memory_space<vmem>>, %arg3: memref<256x128xf32, #tpu.memory_space<vmem>>) attributes {dimension_semantics = [#tpu.dimension_semantics<parallel>], iteration_bounds = array<i64: 2>, scalar_prefetch = 0 : i64, scratch_operands = 0 : i64, tpu.core_type = #tpu.core_type<tc>, window_params = [{transform_indices = @transform_0, window_bounds = array<i64: 1, 256, 8>}, {pipeline_mode = #tpu.pipeline_mode<synchronous>, transform_indices = @transform_1, window_bounds = array<i64: 1, 8, 128>}, {transform_indices = @transform_2, window_bounds = array<i64: 256, 128>}]} {
    %c0 = arith.constant 0 : index
    %c0_0 = arith.constant 0 : index
    %c0_1 = arith.constant 0 : index
    %0 = vector.load %arg1[%c0, %c0_0, %c0_1] : memref<1x256x8xbf16, #tpu.memory_space<vmem>>, vector<1x256x8xbf16>
    %1 = vector.shape_cast %0 : vector<1x256x8xbf16> to vector<256x8xbf16>
    %c0_2 = arith.constant 0 : index
    %c0_3 = arith.constant 0 : index
    %c0_4 = arith.constant 0 : index
    %2 = vector.load %arg2[%c0_2, %c0_3, %c0_4] : memref<1x8x128xbf16, #tpu.memory_space<vmem>>, vector<1x8x128xbf16>
    %3 = vector.shape_cast %2 : vector<1x8x128xbf16> to vector<8x128xbf16>
    %cst = arith.constant dense<0.000000e+00> : vector<256x128xf32>
    %4 = tpu.matmul %1, %3, %cst {dimension_numbers = #tpu.dot_dimension_numbers<[1], [0], [0], [1], [0, 0, 1, 1], [], []>} : vector<256x8xbf16>, vector<8x128xbf16>, vector<256x128xf32> -> vector<256x128xf32>
    %5 = arith.negf %4 : vector<256x128xf32>
    %6 = math.exp %5 : vector<256x128xf32>
    %cst_5 = arith.constant 1.000000e+00 : f32
    %7 = vector.broadcast %cst_5 : f32 to vector<256x128xf32>
    %8 = arith.addf %7, %6 : vector<256x128xf32>
    %9 = arith.divf %7, %8 : vector<256x128xf32>
    %c0_6 = arith.constant 0 : index
    %c0_7 = arith.constant 0 : index
    %10 = vector.load %arg3[%c0_6, %c0_7] : memref<256x128xf32, #tpu.memory_space<vmem>>, vector<256x128xf32>
    tpu.vector_store %arg3[%c0_6, %c0_7], %9 {strides = array<i32>} : memref<256x128xf32, #tpu.memory_space<vmem>>, vector<256x128xf32>,
    return
  }
  func.func @transform_0(%arg0: i32) -> (i32, i32, i32) {
    %c0_i32 = arith.constant 0 : i32
    %c0_i32_0 = arith.constant 0 : i32
    %c0_i32_1 = arith.constant 0 : i32
    return %c0_i32, %arg0, %c0_i32_0 : i32, i32, i32
  }
  func.func @transform_1(%arg0: i32) -> (i32, i32, i32) {
    %c0_i32 = arith.constant 0 : i32
    %c0_i32_0 = arith.constant 0 : i32
    %c0_i32_1 = arith.constant 0 : i32
    %c0_i32_2 = arith.constant 0 : i32
    return %c0_i32, %c0_i32_0, %c0_i32_1 : i32, i32, i32
  }
  func.func @transform_2(%arg0: i32) -> (i32, i32) {
    %c0_i32 = arith.constant 0 : i32
    %c0_i32_0 = arith.constant 0 : i32
    return %arg0, %c0_i32 : i32, i32
  }
}

</mosaic_0001>

<bundles_post_ra>
// kernel: net_forward.16
= control target key start
LH: loop header
LB: loop body
LE: loop exit
PB: predicated region body
PF: predicated region fallthrough
CT: control target
= control target key end

     0   :  { %s487_s9 = smov 0   ;;  %s520_s0 = inlined_call_operand.vmem [shape: bf16[1,128,36], index: 0, kind: input, shape index: {}]   ;;  %s521_s1 = inlined_call_operand.vmem [shape: bf16[1,36,128], index: 1, kind: input, shape index: {}]   ;;  %s522_s2 = inlined_call_operand.vmem [shape: bf16[128,128], index: 2, kind: output, shape index: {}]  }
   0x1 LB: > { %s377_s10 = sadd.s32 4294967295, %s470_s9   ;;  %p381_p0 = scmp.ge.s32.totalorder %s470_s9, 1  ;;  %s470_s9 = sphi %s487_s9, %s12_s9  }
   0x2   : > { %p113_p1 = scmp.lt.s32.totalorder %s470_s9, 3 }
   0x4   : > { %p114_p2 = pnand %p381_p0, %p113_p1 }
   0x5   : > { %s382_s13 = sshll.u32 (!%p114_p2), %s377_s10, 3 }
   0x6   : > { %117 = sbr.rel (%p114_p2) target bundleno = 250 (0xfa), region = 28  ;;  %p136_p3 = scmp.lt.s32.totalorder (!%p114_p2), %s382_s13, 15 }
   0xb   : > { %v160_v0 = vld [vmem:[%s521_s1 + $0x10] sm:$0x3]  ;;  %vm209_vm0 = vcmask 1041408   ;;  %s524_s13 = smov (!%p136_p3, %s382_s13), 15  ;;  %v421_v4 = vld [vmem:[%s521_s1 + $0x8] sm:$0xff]  ;;  %v420_v5 = vld [vmem:[%s521_s1] sm:$0xff] }
   0xc   : > { %v190_v1 = vunpack.c.l.b16 %v160_v0  ;;  %s383_s16 = sshll.u32 %s524_s13, 2  ;;  %vm196_vm1 = vcmask 293888  }
   0xd   : > { %s139_s21 = scalar_lea.vmem %s520_s0, %s383_s16  ;;  %s145_s24 = scalar_lea.vmem %s522_s2, %s383_s16 }
   0xe   : > { %v193_v2 = vpack.c.b16 %v190_v1, %v190_v1  ;;  %v416_v6 = vld [vmem:[%s139_s21] sm:$0xff]  ;;  %v417_v7 = vld [vmem:[%s139_s21 + $0x8] sm:$0xff]  ;;  %v418_v8 = vld [vmem:[%s139_s21 + $0x10] sm:$0xff] }
   0xf   : > { %v419_v9 = vld [vmem:[%s139_s21 + $0x18] sm:$0xff] }
  0x10   : > { %v211_v3 = vsel %vm209_vm0, %v193_v2, 0 }
  0x11   : > { %218 = vmatpush.bf16.msra.mxu0 %v211_v3  ;;  %445 = vmatpush.bf16.msra.mxu1 %v211_v3 }
  0x12   : > { %446 = vmatpush.bf16.msra.mxu2 %v211_v3  ;;  %447 = vmatpush.bf16.msra.mxu3 %v211_v3 }
  0x15   : > { %219 = vmatpush.bf16.msra.mxu0 %v421_v4  ;;  %448 = vmatpush.bf16.msra.mxu1 %v421_v4 }
  0x16   : > { %449 = vmatpush.bf16.msra.mxu2 %v421_v4  ;;  %450 = vmatpush.bf16.msra.mxu3 %v421_v4 }
  0x19   : > { %220 = vmatpush.bf16.msra.mxu0 %v420_v5  ;;  %451 = vmatpush.bf16.msra.mxu1 %v420_v5 }
  0x1a   : > { %452 = vmatpush.bf16.msra.mxu2 %v420_v5  ;;  %453 = vmatpush.bf16.msra.mxu3 %v420_v5 }
  0x1c   : > { %410 = vmatmul.msk.bf16.vlgmr.msra.gmra.mxu0 %vm196_vm1, %v416_v6  ;;  %411 = vmatmul.msk.bf16.vlgmr.msra.gmra.mxu1 %vm196_vm1, %v417_v7 }
  0x1d   : > { %412 = vmatmul.msk.bf16.vlgmr.msra.gmra.mxu2 %vm196_vm1, %v418_v8  ;;  %413 = vmatmul.msk.bf16.vlgmr.msra.gmra.mxu3 %vm196_vm1, %v419_v9 }
  0x99   : > { %v222_v10 = vpop.f32.mrf.mxu0  ;;  %v227_v11 = vpop.f32.mrf.mxu1 }
  0xa0   : > { %v232_v12 = vpop.f32.mrf.mxu2  ;;  %v237_v15 = vpop.f32.mrf.mxu3 }
  0xa1   : > { %v224_v13 = vpop.f32.mrf.mxu0  ;;  %v229_v17 = vpop.f32.mrf.mxu1 }
  0xa2   : > { %v242_v14 = vadd.f32 %v224_v13, %v222_v10 }
  0xa4   : > { %v243_v16 = vadd.f32 %v242_v14, %v227_v11 }
  0xa6   : > { %v244_v18 = vadd.f32 %v243_v16, %v229_v17 }
  0xa8   : > { %v245_v19 = vadd.f32 %v244_v18, %v232_v12  ;;  %v234_v20 = vpop.f32.mrf.mxu2  ;;  %v239_v23 = vpop.f32.mrf.mxu3 }
  0xaa   : > { %v246_v21 = vadd.f32 %v245_v19, %v234_v20 }
  0xac   : > { %v247_v22 = vadd.f32 %v246_v21, %v237_v15 }
  0xae   : > { %v248_v24 = vadd.f32 %v247_v22, %v239_v23 }
  0xb0   : > { %v249_v25 = vrot.slane %v248_v24, 4 }
  0xb2   : > { %v250_v26 = vadd.f32 %v249_v25, %v248_v24 }
  0xb4   : > { %v251_v27 = vrot.slane %v250_v26, 2 }
  0xb6   : > { %v252_v28 = vadd.f32 %v251_v27, %v250_v26 }
  0xb8   : > { %v253_v29 = vrot.slane %v252_v28, 1 }
  0xba   : > { %v254_v30 = vadd.f32 %v253_v29, %v252_v28 }
  0xbc   : > { %v255_v31 = vmul.f32 0.015625, %v254_v30 }
  0xbe   : > { %v256_v32 = vsub.f32 %v222_v10, %v255_v31  ;;  %v257_v33 = vsub.f32 %v224_v13, %v255_v31  ;;  %v258_v34 = vsub.f32 %v227_v11, %v255_v31  ;;  %v259_v35 = vsub.f32 %v229_v17, %v255_v31 }
  0xbf   : > { %v260_v38 = vsub.f32 %v232_v12, %v255_v31  ;;  %v261_v41 = vsub.f32 %v234_v20, %v255_v31  ;;  %v262_v44 = vsub.f32 %v237_v15, %v255_v31  ;;  %v263_v47 = vsub.f32 %v239_v23, %v255_v31 }
  0xc0   : > { %v264_v36 = vmul.f32 %v256_v32, %v256_v32  ;;  %v265_v37 = vmul.f32 %v257_v33, %v257_v33  ;;  %v266_v39 = vmul.f32 %v258_v34, %v258_v34  ;;  %v267_v42 = vmul.f32 %v259_v35, %v259_v35 }
  0xc1   : > { %v268_v45 = vmul.f32 %v260_v38, %v260_v38  ;;  %v269_v48 = vmul.f32 %v261_v41, %v261_v41  ;;  %v270_v50 = vmul.f32 %v262_v44, %v262_v44  ;;  %v271_v52 = vmul.f32 %v263_v47, %v263_v47 }
  0xc2   : > { %v272_v40 = vadd.f32 %v265_v37, %v264_v36 }
  0xc4   : > { %v273_v43 = vadd.f32 %v272_v40, %v266_v39 }
  0xc6   : > { %v274_v46 = vadd.f32 %v273_v43, %v267_v42 }
  0xc8   : > { %v275_v49 = vadd.f32 %v274_v46, %v268_v45 }
  0xca   : > { %v276_v51 = vadd.f32 %v275_v49, %v269_v48 }
  0xcc   : > { %v277_v53 = vadd.f32 %v276_v51, %v270_v50 }
  0xce   : > { %v278_v54 = vadd.f32 %v277_v53, %v271_v52 }
  0xd0   : > { %v279_v55 = vrot.slane %v278_v54, 4 }
  0xd2   : > { %v280_v56 = vadd.f32 %v279_v55, %v278_v54 }
  0xd4   : > { %v281_v57 = vrot.slane %v280_v56, 2 }
  0xd6   : > { %v282_v58 = vadd.f32 %v281_v57, %v280_v56 }
  0xd8   : > { %v283_v59 = vrot.slane %v282_v58, 1 }
  0xda   : > { %v284_v60 = vadd.f32 %v283_v59, %v282_v58 }
  0xdc   : > { %v285_v61 = vmul.f32 0.015625, %v284_v60 }
  0xde   : > { %v286_v62 = vadd.f32 1e-05, %v285_v61 }
  0xe0   : > { %462 = vrsqrt.f32 %v286_v62  ;;  %vm293_vm3 = vweird.f32 %v286_v62 }
  0xe6   : > { %v463_v63 = vpop.eup %462 }
  0xe7   : > { %v288_v0 = vmul.f32 %v463_v63, %v286_v62  ;;  %vm294_vm2 = vweird.f32 %v463_v63 }
  0xe8   : > { %vm295_vm4 = vmor %vm293_vm3, %vm294_vm2 }
  0xe9   : > { %v289_v1 = vmul.f32 %v463_v63, %v288_v0 }
  0xeb   : > { %v290_v2 = vmul.f32 0.5, %v289_v1 }
  0xed   : > { %v291_v3 = vsub.f32 1.5, %v290_v2 }
  0xef   : > { %v292_v4 = vmul.f32 %v463_v63, %v291_v3 }
  0xf1   : > { %v296_v5 = vsel %vm295_vm4, %v463_v63, %v292_v4 }
  0xf2   : > { %v297_v6 = vmul.f32 %v296_v5, %v256_v32  ;;  %v298_v7 = vmul.f32 %v296_v5, %v257_v33  ;;  %v299_v8 = vmul.f32 %v296_v5, %v258_v34  ;;  %v300_v9 = vmul.f32 %v296_v5, %v259_v35 }
  0xf3   : > { %v301_v10 = vmul.f32 %v296_v5, %v260_v38  ;;  %v302_v11 = vmul.f32 %v296_v5, %v261_v41  ;;  %v303_v12 = vmul.f32 %v296_v5, %v262_v44  ;;  %v304_v13 = vmul.f32 %v296_v5, %v263_v47 }
  0xf4   : > { %v425_v14 = vpack.c.bf16 %v298_v7, %v297_v6  ;;  %v430_v15 = vpack.c.bf16 %v300_v9, %v299_v8 }
  0xf5   : > { %v435_v16 = vpack.c.bf16 %v302_v11, %v301_v10  ;;  %v440_v17 = vpack.c.bf16 %v304_v13, %v303_v12 }
  0xf6   : > { %426 = vst [vmem:[%s145_s24] sm:$0xff] %v425_v14  }
  0xf7   : > { %442 = vst [vmem:[%s145_s24 + $0x8] sm:$0xff] %v430_v15  }
  0xf8   : > { %443 = vst [vmem:[%s145_s24 + $0x10] sm:$0xff] %v435_v16  }
  0xf9   : > { %444 = vst [vmem:[%s145_s24 + $0x18] sm:$0xff] %v440_v17  }
  0xfa PF: > { %s12_s9 = sadd.s32 1, %s470_s9  }
  0xfb   : > { %p9_p4 = scmp.ge.s32.totalorder %s12_s9, 4  }
  0xfd   :  { %11 = sbr.rel (!%p9_p4) target bundleno = 1 (0x1), region = 58 }

// kernel: net_forward.18
= control target key start
LH: loop header
LB: loop body
LE: loop exit
PB: predicated region body
PF: predicated region fallthrough
CT: control target
= control target key end

     0   :  { %s452_s9 = smov 0   ;;  %s479_s0 = inlined_call_operand.vmem [shape: bf16[1,128,8], index: 0, kind: input, shape index: {}]   ;;  %s480_s1 = inlined_call_operand.vmem [shape: bf16[1,8,128], index: 1, kind: input, shape index: {}]   ;;  %s481_s2 = inlined_call_operand.vmem [shape: bf16[128,128], index: 2, kind: output, shape index: {}]  }
   0x1 LB: > { %s358_s10 = sadd.s32 4294967295, %s435_s9   ;;  %p362_p0 = scmp.ge.s32.totalorder %s435_s9, 1  ;;  %s435_s9 = sphi %s452_s9, %s12_s9  }
   0x2   : > { %p113_p1 = scmp.lt.s32.totalorder %s435_s9, 3 }
   0x4   : > { %p114_p2 = pnand %p362_p0, %p113_p1 }
   0x5   : > { %s363_s13 = sshll.u32 (!%p114_p2), %s358_s10, 3 }
   0x6   : > { %117 = sbr.rel (%p114_p2) target bundleno = 238 (0xee), region = 28  ;;  %p136_p3 = scmp.lt.s32.totalorder (!%p114_p2), %s363_s13, 15 }
   0xb   : > { %v156_v0 = vld [vmem:[%s480_s1] sm:$0xf]  ;;  %vm190_vm0 = vcmask 1043456   ;;  %s483_s13 = smov (!%p136_p3, %s363_s13), 15  ;;  %vm177_vm1 = vcmask 64512  }
   0xc   : > { %v192_v1 = vsel %vm190_vm0, %v156_v0, 0  ;;  %s364_s14 = sshll.u32 %s483_s13, 2 }
   0xd   : > { %201 = vmatpush.bf16.msra.mxu0 %v192_v1  ;;  %416 = vmatpush.bf16.msra.mxu1 %v192_v1  ;;  %s139_s17 = scalar_lea.vmem %s479_s0, %s364_s14  ;;  %s145_s20 = scalar_lea.vmem %s481_s2, %s364_s14 }
   0xe   : > { %417 = vmatpush.bf16.msra.mxu2 %v192_v1  ;;  %418 = vmatpush.bf16.msra.mxu3 %v192_v1  ;;  %v389_v2 = vld [vmem:[%s139_s17] sm:$0xff]  ;;  %v390_v3 = vld [vmem:[%s139_s17 + $0x8] sm:$0xff]  ;;  %v391_v4 = vld [vmem:[%s139_s17 + $0x10] sm:$0xff] }
   0xf   : > { %v392_v5 = vld [vmem:[%s139_s17 + $0x18] sm:$0xff] }
  0x10   : > { %383 = vmatmul.msk.bf16.vlgmr.msra.gmra.mxu0 %vm177_vm1, %v389_v2  ;;  %384 = vmatmul.msk.bf16.vlgmr.msra.gmra.mxu1 %vm177_vm1, %v390_v3 }
  0x11   : > { %385 = vmatmul.msk.bf16.vlgmr.msra.gmra.mxu2 %vm177_vm1, %v391_v4  ;;  %386 = vmatmul.msk.bf16.vlgmr.msra.gmra.mxu3 %vm177_vm1, %v392_v5 }
  0x8d   : > { %v203_v6 = vpop.f32.mrf.mxu0  ;;  %v208_v7 = vpop.f32.mrf.mxu1 }
  0x94   : > { %v213_v8 = vpop.f32.mrf.mxu2  ;;  %v218_v11 = vpop.f32.mrf.mxu3 }
  0x95   : > { %v205_v9 = vpop.f32.mrf.mxu0  ;;  %v210_v13 = vpop.f32.mrf.mxu1 }
  0x96   : > { %v223_v10 = vadd.f32 %v205_v9, %v203_v6 }
  0x98   : > { %v224_v12 = vadd.f32 %v223_v10, %v208_v7 }
  0x9a   : > { %v225_v14 = vadd.f32 %v224_v12, %v210_v13 }
  0x9c   : > { %v226_v15 = vadd.f32 %v225_v14, %v213_v8  ;;  %v215_v16 = vpop.f32.mrf.mxu2  ;;  %v220_v19 = vpop.f32.mrf.mxu3 }
  0x9e   : > { %v227_v17 = vadd.f32 %v226_v15, %v215_v16 }
  0xa0   : > { %v228_v18 = vadd.f32 %v227_v17, %v218_v11 }
  0xa2   : > { %v229_v20 = vadd.f32 %v228_v18, %v220_v19 }
  0xa4   : > { %v230_v21 = vrot.slane %v229_v20, 4 }
  0xa6   : > { %v231_v22 = vadd.f32 %v230_v21, %v229_v20 }
  0xa8   : > { %v232_v23 = vrot.slane %v231_v22, 2 }
  0xaa   : > { %v233_v24 = vadd.f32 %v232_v23, %v231_v22 }
  0xac   : > { %v234_v25 = vrot.slane %v233_v24, 1 }
  0xae   : > { %v235_v26 = vadd.f32 %v234_v25, %v233_v24 }
  0xb0   : > { %v236_v27 = vmul.f32 0.015625, %v235_v26 }
  0xb2   : > { %v237_v28 = vsub.f32 %v203_v6, %v236_v27  ;;  %v238_v29 = vsub.f32 %v205_v9, %v236_v27  ;;  %v239_v30 = vsub.f32 %v208_v7, %v236_v27  ;;  %v240_v31 = vsub.f32 %v210_v13, %v236_v27 }
  0xb3   : > { %v241_v34 = vsub.f32 %v213_v8, %v236_v27  ;;  %v242_v37 = vsub.f32 %v215_v16, %v236_v27  ;;  %v243_v40 = vsub.f32 %v218_v11, %v236_v27  ;;  %v244_v43 = vsub.f32 %v220_v19, %v236_v27 }
  0xb4   : > { %v245_v32 = vmul.f32 %v237_v28, %v237_v28  ;;  %v246_v33 = vmul.f32 %v238_v29, %v238_v29  ;;  %v247_v35 = vmul.f32 %v239_v30, %v239_v30  ;;  %v248_v38 = vmul.f32 %v240_v31, %v240_v31 }
  0xb5   : > { %v249_v41 = vmul.f32 %v241_v34, %v241_v34  ;;  %v250_v44 = vmul.f32 %v242_v37, %v242_v37  ;;  %v251_v46 = vmul.f32 %v243_v40, %v243_v40  ;;  %v252_v48 = vmul.f32 %v244_v43, %v244_v43 }
  0xb6   : > { %v253_v36 = vadd.f32 %v246_v33, %v245_v32 }
  0xb8   : > { %v254_v39 = vadd.f32 %v253_v36, %v247_v35 }
  0xba   : > { %v255_v42 = vadd.f32 %v254_v39, %v248_v38 }
  0xbc   : > { %v256_v45 = vadd.f32 %v255_v42, %v249_v41 }
  0xbe   : > { %v257_v47 = vadd.f32 %v256_v45, %v250_v44 }
  0xc0   : > { %v258_v49 = vadd.f32 %v257_v47, %v251_v46 }
  0xc2   : > { %v259_v50 = vadd.f32 %v258_v49, %v252_v48 }
  0xc4   : > { %v260_v51 = vrot.slane %v259_v50, 4 }
  0xc6   : > { %v261_v52 = vadd.f32 %v260_v51, %v259_v50 }
  0xc8   : > { %v262_v53 = vrot.slane %v261_v52, 2 }
  0xca   : > { %v263_v54 = vadd.f32 %v262_v53, %v261_v52 }
  0xcc   : > { %v264_v55 = vrot.slane %v263_v54, 1 }
  0xce   : > { %v265_v56 = vadd.f32 %v264_v55, %v263_v54 }
  0xd0   : > { %v266_v57 = vmul.f32 0.015625, %v265_v56 }
  0xd2   : > { %v267_v58 = vadd.f32 1e-05, %v266_v57 }
  0xd4   : > { %427 = vrsqrt.f32 %v267_v58  ;;  %vm274_vm3 = vweird.f32 %v267_v58 }
  0xda   : > { %v428_v59 = vpop.eup %427 }
  0xdb   : > { %v269_v60 = vmul.f32 %v428_v59, %v267_v58  ;;  %vm275_vm2 = vweird.f32 %v428_v59 }
  0xdc   : > { %vm276_vm4 = vmor %vm274_vm3, %vm275_vm2 }
  0xdd   : > { %v270_v61 = vmul.f32 %v428_v59, %v269_v60 }
  0xdf   : > { %v271_v62 = vmul.f32 0.5, %v270_v61 }
  0xe1   : > { %v272_v63 = vsub.f32 1.5, %v271_v62 }
  0xe3   : > { %v273_v0 = vmul.f32 %v428_v59, %v272_v63 }
  0xe5   : > { %v277_v1 = vsel %vm276_vm4, %v428_v59, %v273_v0 }
  0xe6   : > { %v278_v2 = vmul.f32 %v277_v1, %v237_v28  ;;  %v279_v3 = vmul.f32 %v277_v1, %v238_v29  ;;  %v280_v4 = vmul.f32 %v277_v1, %v239_v30  ;;  %v281_v5 = vmul.f32 %v277_v1, %v240_v31 }
  0xe7   : > { %v282_v6 = vmul.f32 %v277_v1, %v241_v34  ;;  %v283_v7 = vmul.f32 %v277_v1, %v242_v37  ;;  %v284_v8 = vmul.f32 %v277_v1, %v243_v40  ;;  %v285_v9 = vmul.f32 %v277_v1, %v244_v43 }
  0xe8   : > { %v396_v10 = vpack.c.bf16 %v279_v3, %v278_v2  ;;  %v401_v11 = vpack.c.bf16 %v281_v5, %v280_v4 }
  0xe9   : > { %v406_v12 = vpack.c.bf16 %v283_v7, %v282_v6  ;;  %v411_v13 = vpack.c.bf16 %v285_v9, %v284_v8 }
  0xea   : > { %397 = vst [vmem:[%s145_s20] sm:$0xff] %v396_v10  }
  0xeb   : > { %413 = vst [vmem:[%s145_s20 + $0x8] sm:$0xff] %v401_v11  }
  0xec   : > { %414 = vst [vmem:[%s145_s20 + $0x10] sm:$0xff] %v406_v12  }
  0xed   : > { %415 = vst [vmem:[%s145_s20 + $0x18] sm:$0xff] %v411_v13  }
  0xee PF: > { %s12_s9 = sadd.s32 1, %s435_s9  }
  0xef   : > { %p9_p4 = scmp.ge.s32.totalorder %s12_s9, 4  }
  0xf1   :  { %11 = sbr.rel (!%p9_p4) target bundleno = 1 (0x1), region = 58 }

// kernel: net_forward.15
= control target key start
LH: loop header
LB: loop body
LE: loop exit
PB: predicated region body
PF: predicated region fallthrough
CT: control target
= control target key end

     0   :  { %s944_s9 = smov 0   ;;  %s1303_s0 = inlined_call_operand.vmem [shape: bf16[1,512,4], index: 0, kind: input, shape index: {}]   ;;  %s1304_s1 = inlined_call_operand.vmem [shape: bf16[1,4,128], index: 1, kind: input, shape index: {}]   ;;  %s1305_s2 = inlined_call_operand.vmem [shape: bf16[512,128], index: 2, kind: output, shape index: {}]  }
   0x1 LB: > { %s706_s10 = sadd.s32 4294967295, %s927_s9   ;;  %p710_p0 = scmp.ge.s32.totalorder %s927_s9, 1  ;;  %s927_s9 = sphi %s944_s9, %s12_s9  }
   0x2   : > { %p113_p1 = scmp.lt.s32.totalorder %s927_s9, 3 }
   0x4   : > { %p114_p2 = pnand %p710_p0, %p113_p1 }
   0x5   : > { %s711_s13 = sshll.u32 (!%p114_p2), %s706_s10, 5 }
   0x6   : > { %117 = sbr.rel (%p114_p2) target bundleno = 384 (0x180), region = 28  ;;  %p136_p3 = scmp.lt.s32.totalorder (!%p114_p2), %s711_s13, 63 }
   0xb   : > { %v180_v0 = vld [vmem:[%s1304_s1] sm:$0x3]  ;;  %vm310_vm0 = vcmask 1041408   ;;  %s1307_s13 = smov (!%p136_p3, %s711_s13), 63  ;;  %vm261_vm1 = vcmask 31744  }
   0xc   : > { %v312_v1 = vsel %vm310_vm0, %v180_v0, 0  ;;  %s712_s14 = sshll.u32 %s1307_s13, 2 }
   0xd   : > { %321 = vmatpush.bf16.msra.mxu0 %v312_v1  ;;  %908 = vmatpush.bf16.msra.mxu1 %v312_v1  ;;  %s139_s17 = scalar_lea.vmem %s1303_s0, %s712_s14  ;;  %s1266_s20 = scalar_lea.vmem %s1305_s2, %s712_s14 }
   0xe   : > { %909 = vmatpush.bf16.msra.mxu2 %v312_v1  ;;  %910 = vmatpush.bf16.msra.mxu3 %v312_v1  ;;  %v797_v2 = vld [vmem:[%s139_s17] sm:$0xff]  ;;  %v798_v6 = vld [vmem:[%s139_s17 + $0x8] sm:$0xff]  ;;  %v799_v10 = vld [vmem:[%s139_s17 + $0x10] sm:$0xff] }
   0xf   : > { %v801_v3 = vld [vmem:[%s139_s17 + $0x20] sm:$0xff]  ;;  %v802_v7 = vld [vmem:[%s139_s17 + $0x28] sm:$0xff]  ;;  %v803_v11 = vld [vmem:[%s139_s17 + $0x30] sm:$0xff] }
  0x10   : > { %v805_v4 = vld [vmem:[%s139_s17 + $0x40] sm:$0xff]  ;;  %779 = vmatmul.msk.bf16.vlgmr.msra.gmra.mxu0 %vm261_vm1, %v797_v2  ;;  %783 = vmatmul.msk.bf16.vlgmr.msra.gmra.mxu1 %vm261_vm1, %v801_v3  ;;  %v806_v8 = vld [vmem:[%s139_s17 + $0x48] sm:$0xff]  ;;  %v807_v12 = vld [vmem:[%s139_s17 + $0x50] sm:$0xff] }
  0x11   : > { %v809_v5 = vld [vmem:[%s139_s17 + $0x60] sm:$0xff]  ;;  %787 = vmatmul.msk.bf16.vlgmr.msra.gmra.mxu2 %vm261_vm1, %v805_v4  ;;  %v810_v9 = vld [vmem:[%s139_s17 + $0x68] sm:$0xff]  ;;  %v811_v13 = vld [vmem:[%s139_s17 + $0x70] sm:$0xff] }
  0x12   : > { %791 = vmatmul.msk.bf16.vlgmr.msra.gmra.mxu3 %vm261_vm1, %v809_v5  ;;  %v800_v14 = vld [vmem:[%s139_s17 + $0x18] sm:$0xff] }
  0x13   : > { %v804_v15 = vld [vmem:[%s139_s17 + $0x38] sm:$0xff] }
  0x14   : > { %v808_v16 = vld [vmem:[%s139_s17 + $0x58] sm:$0xff] }
  0x15   : > { %v812_v17 = vld [vmem:[%s139_s17 + $0x78] sm:$0xff] }
  0x20   : > { %780 = vmatmul.msk.bf16.gmra.mxu0 %vm261_vm1, %v798_v6  ;;  %784 = vmatmul.msk.bf16.gmra.mxu1 %vm261_vm1, %v802_v7 }
  0x21   : > { %788 = vmatmul.msk.bf16.gmra.mxu2 %vm261_vm1, %v806_v8 }
  0x22   : > { %792 = vmatmul.msk.bf16.gmra.mxu3 %vm261_vm1, %v810_v9 }
  0x30   : > { %781 = vmatmul.msk.bf16.gmra.mxu0 %vm261_vm1, %v799_v10  ;;  %785 = vmatmul.msk.bf16.gmra.mxu1 %vm261_vm1, %v803_v11 }
  0x31   : > { %789 = vmatmul.msk.bf16.gmra.mxu2 %vm261_vm1, %v807_v12 }
  0x32   : > { %793 = vmatmul.msk.bf16.gmra.mxu3 %vm261_vm1, %v811_v13 }
  0x40   : > { %782 = vmatmul.msk.bf16.gmra.mxu0 %vm261_vm1, %v800_v14  ;;  %786 = vmatmul.msk.bf16.gmra.mxu1 %vm261_vm1, %v804_v15 }
  0x41   : > { %790 = vmatmul.msk.bf16.gmra.mxu2 %vm261_vm1, %v808_v16 }
  0x42   : > { %794 = vmatmul.msk.bf16.gmra.mxu3 %vm261_vm1, %v812_v17 }
  0x8d   : > { %v979_v18 = vpop.f32.mrf.mxu0  ;;  %v981_v19 = vpop.f32.mrf.mxu1 }
  0x94   : > { %v989_v23 = vpop.f32.mrf.mxu2 }
  0x95   : > { %v983_v20 = vpop.f32.mrf.mxu0  ;;  %v985_v21 = vpop.f32.mrf.mxu1 }
  0x96   : > { %v1001_v29 = vpop.f32.mrf.mxu3  ;;  %v403_v34 = vadd.f32 %v983_v20, %v979_v18 }
  0x9c   : > { %v995_v26 = vpop.f32.mrf.mxu2 }
  0x9d   : > { %v987_v22 = vpop.f32.mrf.mxu0  ;;  %v991_v24 = vpop.f32.mrf.mxu1 }
  0x9e   : > { %v1009_v33 = vpop.f32.mrf.mxu3  ;;  %v404_v35 = vadd.f32 %v403_v34, %v987_v22 }
  0xa4   : > { %v1003_v30 = vpop.f32.mrf.mxu2 }
  0xa5   : > { %v993_v25 = vpop.f32.mrf.mxu0  ;;  %v999_v28 = vpop.f32.mrf.mxu1 }
  0xa6   : > { %v405_v38 = vadd.f32 %v404_v35, %v993_v25  ;;  %v1023_v42 = vpop.f32.mrf.mxu3 }
  0xac   : > { %v1016_v37 = vpop.f32.mrf.mxu2 }
  0xad   : > { %v997_v27 = vpop.f32.mrf.mxu0  ;;  %v1007_v32 = vpop.f32.mrf.mxu1 }
  0xae   : > { %v406_v39 = vadd.f32 %v405_v38, %v997_v27  ;;  %v1033_v51 = vpop.f32.mrf.mxu3 }
  0xb4   : > { %v1026_v46 = vpop.f32.mrf.mxu2 }
  0xb5   : > { %v1005_v31 = vpop.f32.mrf.mxu0  ;;  %v1020_v40 = vpop.f32.mrf.mxu1 }
  0xb6   : > { %v407_v41 = vadd.f32 %v406_v39, %v1005_v31  ;;  %v1044_v59 = vpop.f32.mrf.mxu3 }
  0xbc   : > { %v1037_v54 = vpop.f32.mrf.mxu2 }
  0xbd   : > { %v1014_v36 = vpop.f32.mrf.mxu0  ;;  %v1030_v49 = vpop.f32.mrf.mxu1 }
  0xbe   : > { %v408_v43 = vadd.f32 %v407_v41, %v1014_v36  ;;  %v1053_v2 = vpop.f32.mrf.mxu3 }
  0xc4   : > { %v1048_v62 = vpop.f32.mrf.mxu2 }
  0xc5   : > { %v340_v44 = vpop.f32.mrf.mxu0  ;;  %v1041_v57 = vpop.f32.mrf.mxu1 }
  0xc6   : > { %v409_v45 = vadd.f32 %v408_v43, %v340_v44  ;;  %v1062_v9 = vpop.f32.mrf.mxu3 }
  0xc8   : > { %v410_v47 = vadd.f32 %v409_v45, %v981_v19 }
  0xca   : > { %v411_v48 = vadd.f32 %v410_v47, %v985_v21 }
  0xcc   : > { %v412_v50 = vadd.f32 %v411_v48, %v991_v24  ;;  %v1057_v5 = vpop.f32.mrf.mxu2 }
  0xce   : > { %v413_v52 = vadd.f32 %v412_v50, %v999_v28  ;;  %v1069_v15 = vpop.f32.mrf.mxu3 }
  0xd0   : > { %v414_v53 = vadd.f32 %v413_v52, %v1007_v32 }
  0xd2   : > { %v415_v55 = vadd.f32 %v414_v53, %v1020_v40 }
  0xd4   : > { %v416_v56 = vadd.f32 %v415_v55, %v1030_v49 }
  0xd6   : > { %v417_v58 = vadd.f32 %v416_v56, %v1041_v57 }
  0xd8   : > { %v418_v60 = vadd.f32 %v417_v58, %v989_v23 }
  0xda   : > { %v419_v61 = vadd.f32 %v418_v60, %v995_v26 }
  0xdc   : > { %v420_v63 = vadd.f32 %v419_v61, %v1003_v30 }
  0xde   : > { %v421_v0 = vadd.f32 %v420_v63, %v1016_v37 }
  0xe0   : > { %v422_v1 = vadd.f32 %v421_v0, %v1026_v46 }
  0xe2   : > { %v423_v3 = vadd.f32 %v422_v1, %v1037_v54 }
  0xe4   : > { %v424_v4 = vadd.f32 %v423_v3, %v1048_v62 }
  0xe6   : > { %v425_v6 = vadd.f32 %v424_v4, %v1057_v5 }
  0xe8   : > { %v426_v7 = vadd.f32 %v425_v6, %v1001_v29 }
  0xea   : > { %v427_v8 = vadd.f32 %v426_v7, %v1009_v33 }
  0xec   : > { %v428_v10 = vadd.f32 %v427_v8, %v1023_v42 }
  0xee   : > { %v429_v11 = vadd.f32 %v428_v10, %v1033_v51 }
  0xf0   : > { %v430_v12 = vadd.f32 %v429_v11, %v1044_v59 }
  0xf2   : > { %v431_v13 = vadd.f32 %v430_v12, %v1053_v2 }
  0xf4   : > { %v432_v14 = vadd.f32 %v431_v13, %v1062_v9 }
  0xf6   : > { %v433_v16 = vadd.f32 %v432_v14, %v1069_v15 }
  0xf8   : > { %v434_v17 = vrot.slane %v433_v16, 4 }
  0xfa   : > { %v435_v34 = vadd.f32 %v434_v17, %v433_v16 }
  0xfc   : > { %v436_v35 = vrot.slane %v435_v34, 2 }
  0xfe   : > { %v437_v38 = vadd.f32 %v436_v35, %v435_v34 }
 0x100   : > { %v438_v39 = vrot.slane %v437_v38, 1 }
 0x102   : > { %v439_v41 = vadd.f32 %v438_v39, %v437_v38 }
 0x104   : > { %v1072_v43 = vmul.f32 0.00390625, %v439_v41 }
 0x106   : > { %v1076_v45 = vsub.f32 %v979_v18, %v1072_v43  ;;  %v1080_v47 = vsub.f32 %v983_v20, %v1072_v43  ;;  %v1084_v48 = vsub.f32 %v987_v22, %v1072_v43  ;;  %v1092_v53 = vsub.f32 %v993_v25, %v1072_v43 }
 0x107   : > { %v1096_v18 = vsub.f32 %v997_v27, %v1072_v43  ;;  %v1102_v22 = vsub.f32 %v1005_v31, %v1072_v43  ;;  %v1108_v25 = vsub.f32 %v1014_v36, %v1072_v43  ;;  %v1113_v61 = vsub.f32 %v340_v44, %v1072_v43 }
 0x108   : > { %v473_v50 = vmul.f32 %v1076_v45, %v1076_v45  ;;  %v474_v52 = vmul.f32 %v1080_v47, %v1080_v47  ;;  %v475_v20 = vmul.f32 %v1084_v48, %v1084_v48  ;;  %v476_v56 = vmul.f32 %v1092_v53, %v1092_v53 }
 0x109   : > { %v477_v27 = vmul.f32 %v1096_v18, %v1096_v18  ;;  %v478_v63 = vmul.f32 %v1102_v22, %v1102_v22  ;;  %v1119_v0 = vsub.f32 %v981_v19, %v1072_v43  ;;  %v479_v1 = vmul.f32 %v1108_v25, %v1108_v25 }
 0x10a   : > { %v505_v55 = vadd.f32 %v474_v52, %v473_v50  ;;  %v1125_v3 = vsub.f32 %v985_v21, %v1072_v43  ;;  %v480_v44 = vmul.f32 %v1113_v61, %v1113_v61  ;;  %v1131_v6 = vsub.f32 %v991_v24, %v1072_v43 }
 0x10b   : > { %v481_v19 = vmul.f32 %v1119_v0, %v1119_v0  ;;  %v1137_v8 = vsub.f32 %v999_v28, %v1072_v43  ;;  %v1143_v11 = vsub.f32 %v1007_v32, %v1072_v43  ;;  %v1149_v13 = vsub.f32 %v1020_v40, %v1072_v43 }
 0x10c   : > { %v506_v58 = vadd.f32 %v505_v55, %v475_v20  ;;  %v482_v21 = vmul.f32 %v1125_v3, %v1125_v3  ;;  %v483_v24 = vmul.f32 %v1131_v6, %v1131_v6  ;;  %v1155_v16 = vsub.f32 %v1030_v49, %v1072_v43 }
 0x10d   : > { %v484_v28 = vmul.f32 %v1137_v8, %v1137_v8  ;;  %v485_v32 = vmul.f32 %v1143_v11, %v1143_v11  ;;  %v1161_v34 = vsub.f32 %v1041_v57, %v1072_v43  ;;  %v486_v40 = vmul.f32 %v1149_v13, %v1149_v13 }
 0x10e   : > { %v507_v60 = vadd.f32 %v506_v58, %v476_v56  ;;  %v1167_v38 = vsub.f32 %v989_v23, %v1072_v43  ;;  %v487_v49 = vmul.f32 %v1155_v16, %v1155_v16  ;;  %v1173_v41 = vsub.f32 %v995_v26, %v1072_v43 }
 0x10f   : > { %v488_v57 = vmul.f32 %v1161_v34, %v1161_v34  ;;  %v1179_v52 = vsub.f32 %v1003_v30, %v1072_v43  ;;  %v1185_v55 = vsub.f32 %v1016_v37, %v1072_v43  ;;  %v1191_v58 = vsub.f32 %v1026_v46, %v1072_v43 }
 0x110   : > { %v508_v31 = vadd.f32 %v507_v60, %v477_v27  ;;  %v489_v23 = vmul.f32 %v1167_v38, %v1167_v38  ;;  %v490_v26 = vmul.f32 %v1173_v41, %v1173_v41  ;;  %v1197_v60 = vsub.f32 %v1037_v54, %v1072_v43 }
 0x111   : > { %v491_v30 = vmul.f32 %v1179_v52, %v1179_v52  ;;  %v492_v37 = vmul.f32 %v1185_v55, %v1185_v55  ;;  %v493_v46 = vmul.f32 %v1191_v58, %v1191_v58 }
 0x112   : > { %v509_v36 = vadd.f32 %v508_v31, %v478_v63  ;;  %v1203_v31 = vsub.f32 %v1048_v62, %v1072_v43  ;;  %v494_v54 = vmul.f32 %v1197_v60, %v1197_v60 }
 0x114   : > { %v510_v4 = vadd.f32 %v509_v36, %v479_v1  ;;  %v1209_v36 = vsub.f32 %v1057_v5, %v1072_v43  ;;  %v1223_v5 = vsub.f32 %v1023_v42, %v1072_v43  ;;  %v1237_v42 = vsub.f32 %v1053_v2, %v1072_v43 }
 0x116   : > { %v511_v7 = vadd.f32 %v510_v4, %v480_v44  ;;  %v465_v4 = vsub.f32 %v1001_v29, %v1072_v43  ;;  %v1227_v29 = vsub.f32 %v1033_v51, %v1072_v43  ;;  %v471_v51 = vsub.f32 %v1062_v9, %v1072_v43 }
 0x118   : > { %v512_v10 = vadd.f32 %v511_v7, %v481_v19  ;;  %v495_v19 = vmul.f32 %v1203_v31, %v1203_v31  ;;  %v466_v7 = vsub.f32 %v1009_v33, %v1072_v43  ;;  %v499_v33 = vmul.f32 %v1223_v5, %v1223_v5 }
 0x119   : > { %v503_v2 = vmul.f32 %v471_v51, %v471_v51 }
 0x11a   : > { %v513_v12 = vadd.f32 %v512_v10, %v482_v21  ;;  %v496_v21 = vmul.f32 %v1209_v36, %v1209_v36 }
 0x11c   : > { %v514_v14 = vadd.f32 %v513_v12, %v483_v24  ;;  %v497_v24 = vmul.f32 %v465_v4, %v465_v4 }
 0x11e   : > { %v515_v17 = vadd.f32 %v514_v14, %v484_v28  ;;  %v498_v28 = vmul.f32 %v466_v7, %v466_v7 }
 0x120   : > { %v516_v35 = vadd.f32 %v515_v17, %v485_v32  ;;  %v1231_v32 = vsub.f32 %v1044_v59, %v1072_v43 }
 0x122   : > { %v517_v39 = vadd.f32 %v516_v35, %v486_v40  ;;  %v500_v40 = vmul.f32 %v1227_v29, %v1227_v29 }
 0x124   : > { %v518_v50 = vadd.f32 %v517_v39, %v487_v49  ;;  %v501_v49 = vmul.f32 %v1231_v32, %v1231_v32  ;;  %v472_v39 = vsub.f32 %v1069_v15, %v1072_v43 }
 0x126   : > { %v519_v20 = vadd.f32 %v518_v50, %v488_v57  ;;  %v502_v57 = vmul.f32 %v1237_v42, %v1237_v42 }
 0x128   : > { %v520_v56 = vadd.f32 %v519_v20, %v489_v23  ;;  %v504_v20 = vmul.f32 %v472_v39, %v472_v39 }
 0x12a   : > { %v521_v27 = vadd.f32 %v520_v56, %v490_v26 }
 0x12c   : > { %v522_v63 = vadd.f32 %v521_v27, %v491_v30 }
 0x12e   : > { %v523_v1 = vadd.f32 %v522_v63, %v492_v37 }
 0x130   : > { %v524_v44 = vadd.f32 %v523_v1, %v493_v46 }
 0x132   : > { %v525_v62 = vadd.f32 %v524_v44, %v494_v54 }
 0x134   : > { %v526_v10 = vadd.f32 %v525_v62, %v495_v19 }
 0x136   : > { %v527_v12 = vadd.f32 %v526_v10, %v496_v21 }
 0x138   : > { %v528_v14 = vadd.f32 %v527_v12, %v497_v24 }
 0x13a   : > { %v529_v17 = vadd.f32 %v528_v14, %v498_v28 }
 0x13c   : > { %v530_v35 = vadd.f32 %v529_v17, %v499_v33 }
 0x13e   : > { %v531_v59 = vadd.f32 %v530_v35, %v500_v40 }
 0x140   : > { %v532_v50 = vadd.f32 %v531_v59, %v501_v49 }
 0x142   : > { %v533_v23 = vadd.f32 %v532_v50, %v502_v57 }
 0x144   : > { %v534_v26 = vadd.f32 %v533_v23, %v503_v2 }
 0x146   : > { %v535_v56 = vadd.f32 %v534_v26, %v504_v20 }
 0x148   : > { %v536_v30 = vrot.slane %v535_v56, 4 }
 0x14a   : > { %v537_v27 = vadd.f32 %v536_v30, %v535_v56 }
 0x14c   : > { %v538_v37 = vrot.slane %v537_v27, 2 }
 0x14e   : > { %v539_v9 = vadd.f32 %v538_v37, %v537_v27 }
 0x150   : > { %v540_v63 = vrot.slane %v539_v9, 1 }
 0x152   : > { %v541_v46 = vadd.f32 %v540_v63, %v539_v9 }
 0x154   : > { %v542_v1 = vmul.f32 0.00390625, %v541_v46 }
 0x156   : > { %v543_v54 = vadd.f32 1e-05, %v542_v1 }
 0x158   : > { %919 = vrsqrt.f32 %v543_v54  ;;  %vm550_vm3 = vweird.f32 %v543_v54 }
 0x15e   : > { %v920_v44 = vpop.eup %919 }
 0x15f   : > { %v545_v15 = vmul.f32 %v920_v44, %v543_v54  ;;  %vm551_vm2 = vweird.f32 %v920_v44 }
 0x160   : > { %vm552_vm4 = vmor %vm550_vm3, %vm551_vm2 }
 0x161   : > { %v546_v43 = vmul.f32 %v920_v44, %v545_v15 }
 0x163   : > { %v547_v19 = vmul.f32 0.5, %v546_v43 }
 0x165   : > { %v548_v62 = vsub.f32 1.5, %v547_v19 }
 0x167   : > { %v549_v21 = vmul.f32 %v920_v44, %v548_v62 }
 0x169   : > { %v553_v10 = vsel %vm552_vm4, %v920_v44, %v549_v21 }
 0x16a   : > { %v554_v24 = vmul.f32 %v553_v10, %v1076_v45  ;;  %v555_v12 = vmul.f32 %v553_v10, %v1080_v47  ;;  %v556_v28 = vmul.f32 %v553_v10, %v1084_v48  ;;  %v557_v14 = vmul.f32 %v553_v10, %v1092_v53 }
 0x16b   : > { %v558_v33 = vmul.f32 %v553_v10, %v1096_v18  ;;  %v559_v17 = vmul.f32 %v553_v10, %v1102_v22  ;;  %v560_v40 = vmul.f32 %v553_v10, %v1108_v25  ;;  %v561_v35 = vmul.f32 %v553_v10, %v1113_v61 }
 0x16c   : > { %v562_v49 = vmul.f32 %v553_v10, %v1119_v0  ;;  %v563_v59 = vmul.f32 %v553_v10, %v1125_v3  ;;  %v564_v45 = vmul.f32 %v553_v10, %v1131_v6  ;;  %v565_v47 = vmul.f32 %v553_v10, %v1137_v8 }
 0x16d   : > { %v578_v57 = vmul.f32 %v553_v10, %v465_v4  ;;  %v566_v48 = vmul.f32 %v553_v10, %v1143_v11  ;;  %v579_v53 = vmul.f32 %v553_v10, %v466_v7  ;;  %v584_v18 = vmul.f32 %v553_v10, %v471_v51 }
 0x16e   : > { %v585_v22 = vmul.f32 %v553_v10, %v472_v39  ;;  %v567_v25 = vmul.f32 %v553_v10, %v1149_v13  ;;  %v816_v61 = vpack.c.bf16 %v555_v12, %v554_v24  ;;  %v821_v0 = vpack.c.bf16 %v557_v14, %v556_v28 }
 0x16f   : > { %v826_v3 = vpack.c.bf16 %v559_v17, %v558_v33  ;;  %v568_v6 = vmul.f32 %v553_v10, %v1155_v16  ;;  %v569_v8 = vmul.f32 %v553_v10, %v1161_v34  ;;  %v831_v4 = vpack.c.bf16 %v561_v35, %v560_v40 }
 0x170   : > { %v570_v50 = vmul.f32 %v553_v10, %v1167_v38  ;;  %v571_v11 = vmul.f32 %v553_v10, %v1173_v41  ;;  %v572_v7 = vmul.f32 %v553_v10, %v1179_v52  ;;  %817 = vst [vmem:[%s1266_s20] sm:$0xff] %v816_v61   ;;  %v836_v51 = vpack.c.bf16 %v563_v59, %v562_v49 }
 0x171   : > { %v573_v13 = vmul.f32 %v553_v10, %v1185_v55  ;;  %893 = vst [vmem:[%s1266_s20 + $0x8] sm:$0xff] %v821_v0   ;;  %v841_v39 = vpack.c.bf16 %v565_v47, %v564_v45  ;;  %v876_v2 = vpack.c.bf16 %v579_v53, %v578_v57  ;;  %v891_v16 = vpack.c.bf16 %v585_v22, %v584_v18 }
 0x172   : > { %v574_v34 = vmul.f32 %v553_v10, %v1191_v58  ;;  %v575_v38 = vmul.f32 %v553_v10, %v1197_v60  ;;  %894 = vst [vmem:[%s1266_s20 + $0x10] sm:$0xff] %v826_v3   ;;  %v846_v41 = vpack.c.bf16 %v567_v25, %v566_v48  ;;  %v576_v52 = vmul.f32 %v553_v10, %v1203_v31 }
 0x173   : > { %v577_v23 = vmul.f32 %v553_v10, %v1209_v36  ;;  %895 = vst [vmem:[%s1266_s20 + $0x18] sm:$0xff] %v831_v4   ;;  %v851_v55 = vpack.c.bf16 %v569_v8, %v568_v6  ;;  %v856_v20 = vpack.c.bf16 %v571_v11, %v570_v50  ;;  %v580_v58 = vmul.f32 %v553_v10, %v1223_v5 }
 0x174   : > { %896 = vst [vmem:[%s1266_s20 + $0x20] sm:$0xff] %v836_v51   ;;  %v581_v60 = vmul.f32 %v553_v10, %v1227_v29  ;;  %v861_v26 = vpack.c.bf16 %v573_v13, %v572_v7  ;;  %v582_v31 = vmul.f32 %v553_v10, %v1231_v32  ;;  %v583_v36 = vmul.f32 %v553_v10, %v1237_v42 }
 0x175   : > { %897 = vst [vmem:[%s1266_s20 + $0x28] sm:$0xff] %v841_v39   ;;  %v866_v56 = vpack.c.bf16 %v575_v38, %v574_v34  ;;  %v871_v30 = vpack.c.bf16 %v577_v23, %v576_v52 }
 0x176   : > { %898 = vst [vmem:[%s1266_s20 + $0x30] sm:$0xff] %v846_v41   ;;  %v881_v27 = vpack.c.bf16 %v581_v60, %v580_v58  ;;  %v886_v5 = vpack.c.bf16 %v583_v36, %v582_v31 }
 0x177   : > { %899 = vst [vmem:[%s1266_s20 + $0x38] sm:$0xff] %v851_v55  }
 0x178   : > { %900 = vst [vmem:[%s1266_s20 + $0x40] sm:$0xff] %v856_v20  }
 0x179   : > { %901 = vst [vmem:[%s1266_s20 + $0x48] sm:$0xff] %v861_v26  }
 0x17a   : > { %902 = vst [vmem:[%s1266_s20 + $0x50] sm:$0xff] %v866_v56  }
 0x17b   : > { %903 = vst [vmem:[%s1266_s20 + $0x58] sm:$0xff] %v871_v30  }
 0x17c   : > { %904 = vst [vmem:[%s1266_s20 + $0x60] sm:$0xff] %v876_v2  }
 0x17d   : > { %905 = vst [vmem:[%s1266_s20 + $0x68] sm:$0xff] %v881_v27  }
 0x17e   : > { %906 = vst [vmem:[%s1266_s20 + $0x70] sm:$0xff] %v886_v5  }
 0x17f   : > { %907 = vst [vmem:[%s1266_s20 + $0x78] sm:$0xff] %v891_v16  }
 0x180 PF: > { %s12_s9 = sadd.s32 1, %s927_s9  }
 0x181   : > { %p9_p4 = scmp.ge.s32.totalorder %s12_s9, 4  }
 0x183   :  { %11 = sbr.rel (!%p9_p4) target bundleno = 1 (0x1), region = 58 }

// kernel: net_forward.19
= control target key start
LH: loop header
LB: loop body
LE: loop exit
PB: predicated region body
PF: predicated region fallthrough
CT: control target
= control target key end

     0   :  { %s560_s9 = smov 0   ;;  %s562_s10 = smov 0   ;;  %s630_s0 = inlined_call_operand.vmem [shape: bf16[2,32,36], index: 0, kind: input, shape index: {}]   ;;  %s631_s1 = inlined_call_operand.vmem [shape: bf16[2,36,128], index: 1, kind: input, shape index: {}]   ;;  %s632_s2 = inlined_call_operand.vmem [shape: bf16[32,128], index: 2, kind: output, shape index: {}]  }
   0x1   :  { %s564_s11 = smov 0  }
   0x2 LB: > { %s435_s12 = sadd.s32 4294967295, %s543_s11   ;;  %s577_s13 = sadd.s32 1, %s543_s11   ;;  %s543_s11 = sphi %s564_s11, %s635_s11   ;;  %s539_s10 = sphi %s562_s10, %s634_s10   ;;  %s535_s9 = sphi %s560_s9, %s633_s9  }
   0x3   : > { %s16_s14 = ssub.s32 %s543_s11, %s577_s13  ;;  %s19_s15 = sadd.s32 1, %s539_s10 }
   0x4   : > { %p17_p0 = scmp.eq.s32.totalorder %s16_s14, 0  ;;  %p26_p1 = scmp.ne.s32.totalorder %s539_s10, %s535_s9 }
   0x5   : > { %p27_p2 = scmp.eq.s32.totalorder %s543_s11, 0  ;;  %p438_p4 = scmp.ge.s32.totalorder %s543_s11, 2 }
   0x6   : > { %s586_s16 = scalar_select %p17_p0, %s539_s10, %s19_s15  }
   0x7   : > { %p28_p3 = por %p27_p2, %p26_p1  ;;  %102 = sbr.rel (%p438_p4) target bundleno = 18 (0x12), region = 20 }
   0xc   : > { %105 = sbr.rel (!%p28_p3) target bundleno = 18 (0x12), region = 24  ;;  %s107_s17 = sand.u32 (%p28_p3), 1, %s539_s10  }
   0xd   : > { %s481_s18 = sshll.u32 (%p28_p3), %s543_s11, 3  ;;  %s439_s19 = sshll.u32 (%p28_p3), %s107_s17, 4 }
   0xe   : > { %s112_s22 = scalar_lea.vmem (%p28_p3), %s630_s0, %s481_s18  ;;  %s109_s23 = scalar_lea.vmem (%p28_p3), [#allocation2], %s439_s19 }
   0xf   : > { %v129_v0 = vld [vmem:[%s112_s22] sm:$0xff] (%p28_p3)   ;;  %v133_v1 = vld [vmem:[%s112_s22 + $0x10] sm:$0xff] (%p28_p3)  }
  0x10   : > { %130 = vst [vmem:[%s109_s23] sm:$0xff] (%p28_p3), %v129_v0  }
  0x11   : > { %134 = vst [vmem:[%s109_s23 + $0x8] sm:$0xff] %v133_v1  }
  0x12 PF: > { %p442_p5 = scmp.ge.s32.totalorder %s543_s11, 1  ;;  %p167_p6 = scmp.lt.s32.totalorder %s543_s11, 3 }
  0x14   : > { %p168_p7 = pnand %p442_p5, %p167_p6 }
  0x15   : > { %s174_s28 = sand.u32 (!%p168_p7), 1, %s535_s9   ;;  %s444_s15 = sshll.u32 (!%p168_p7), %s435_s12, 1 }
  0x16   : > { %171 = sbr.rel (%p168_p7) target bundleno = 242 (0xf2), region = 65  ;;  %s443_s5 = sshll.u32 (!%p168_p7), %s174_s28, 4 }
  0x17   : > { %s176_s14 = scalar_lea.vmem (!%p168_p7), [#allocation2], %s443_s5  ;;  %p197_p8 = scmp.lt.s32.totalorder (!%p168_p7), %s444_s15, 3 }
  0x1b   : > { %v209_v2 = vld [vmem:[%s631_s1 + $0x10] sm:$0x3]  ;;  %v465_v3 = vld [vmem:[%s631_s1 + $0x24] sm:$0x3]  ;;  %vm234_vm0 = vcmask 1041408   ;;  %v484_v10 = vld [vmem:[%s631_s1 + $0x8] sm:$0xff] }
  0x1c   : > { %v224_v4 = vunpack.c.l.b16 %v209_v2  ;;  %v308_v5 = vunpack.c.l.b16 %v465_v3  ;;  %v487_v11 = vld [vmem:[%s631_s1 + $0x1c] sm:$0xff]  ;;  %v486_v13 = vld [vmem:[%s631_s1 + $0x14] sm:$0xff]  ;;  %vm230_vm1 = vcmask 293888   ;;  %s637_s15 = smov (!%p197_p8, %s444_s15), 3 }
  0x1d   : > { %v483_v12 = vld [vmem:[%s631_s1] sm:$0xff]  ;;  %v485_v15 = vld [vmem:[%s176_s14 + $0x8] sm:$0xff]  ;;  %s445_s11 = sshll.u32 %s637_s15, 2 }
  0x1e   : > { %v227_v6 = vpack.c.b16 %v224_v4, %v224_v4  ;;  %v311_v7 = vpack.c.b16 %v308_v5, %v308_v5  ;;  %v482_v14 = vld [vmem:[%s176_s14] sm:$0xff]  ;;  %s200_s18 = scalar_lea.vmem %s632_s2, %s445_s11 }
  0x20   : > { %v236_v8 = vsel %vm234_vm0, %v227_v6, 0  ;;  %v318_v9 = vsel %vm234_vm0, %v311_v7, 0 }
  0x21   : > { %243 = vmatpush.bf16.msra.mxu0 %v236_v8  ;;  %325 = vmatpush.bf16.msra.mxu1 %v318_v9 }
  0x25   : > { %244 = vmatpush.bf16.msra.mxu0 %v484_v10  ;;  %326 = vmatpush.bf16.msra.mxu1 %v487_v11 }
  0x29   : > { %245 = vmatpush.bf16.msra.mxu0 %v483_v12  ;;  %327 = vmatpush.bf16.msra.mxu1 %v486_v13 }
  0x2c   : > { %458 = vmatmul.msk.bf16.vlgmr.msra.gmra.mxu0 %vm230_vm1, %v482_v14  ;;  %478 = vmatmul.msk.bf16.vlgmr.msra.gmra.mxu1 %vm230_vm1, %v485_v15 }
  0xa9   : > { %v247_v16 = vpop.f32.mrf.mxu0  ;;  %v329_v17 = vpop.f32.mrf.mxu1 }
  0xb1   : > { %v249_v18 = vpop.f32.mrf.mxu0  ;;  %v331_v19 = vpop.f32.mrf.mxu1 }
  0xb2   : > { %v252_v20 = vadd.f32 %v249_v18, %v247_v16  ;;  %v334_v21 = vadd.f32 %v331_v19, %v329_v17 }
  0xb4   : > { %v253_v22 = vrot.slane %v252_v20, 4  ;;  %v335_v23 = vrot.slane %v334_v21, 4 }
  0xb6   : > { %v254_v24 = vadd.f32 %v253_v22, %v252_v20  ;;  %v336_v25 = vadd.f32 %v335_v23, %v334_v21 }
  0xb8   : > { %v255_v26 = vrot.slane %v254_v24, 2  ;;  %v337_v27 = vrot.slane %v336_v25, 2 }
  0xba   : > { %v256_v28 = vadd.f32 %v255_v26, %v254_v24  ;;  %v338_v29 = vadd.f32 %v337_v27, %v336_v25 }
  0xbc   : > { %v257_v30 = vrot.slane %v256_v28, 1  ;;  %v339_v31 = vrot.slane %v338_v29, 1 }
  0xbe   : > { %v258_v32 = vadd.f32 %v257_v30, %v256_v28  ;;  %v340_v33 = vadd.f32 %v339_v31, %v338_v29 }
  0xc0   : > { %v259_v34 = vmul.f32 0.0625, %v258_v32  ;;  %v341_v35 = vmul.f32 0.0625, %v340_v33 }
  0xc2   : > { %v260_v36 = vsub.f32 %v247_v16, %v259_v34  ;;  %v261_v37 = vsub.f32 %v249_v18, %v259_v34  ;;  %v342_v38 = vsub.f32 %v329_v17, %v341_v35  ;;  %v343_v39 = vsub.f32 %v331_v19, %v341_v35 }
  0xc4   : > { %v262_v40 = vmul.f32 %v260_v36, %v260_v36  ;;  %v263_v41 = vmul.f32 %v261_v37, %v261_v37  ;;  %v344_v42 = vmul.f32 %v342_v38, %v342_v38  ;;  %v345_v43 = vmul.f32 %v343_v39, %v343_v39 }
  0xc6   : > { %v264_v44 = vadd.f32 %v263_v41, %v262_v40  ;;  %v346_v45 = vadd.f32 %v345_v43, %v344_v42 }
  0xc8   : > { %v265_v46 = vrot.slane %v264_v44, 4  ;;  %v347_v47 = vrot.slane %v346_v45, 4 }
  0xca   : > { %v266_v48 = vadd.f32 %v265_v46, %v264_v44  ;;  %v348_v49 = vadd.f32 %v347_v47, %v346_v45 }
  0xcc   : > { %v267_v50 = vrot.slane %v266_v48, 2  ;;  %v349_v51 = vrot.slane %v348_v49, 2 }
  0xce   : > { %v268_v52 = vadd.f32 %v267_v50, %v266_v48  ;;  %v350_v53 = vadd.f32 %v349_v51, %v348_v49 }
  0xd0   : > { %v269_v54 = vrot.slane %v268_v52, 1  ;;  %v351_v55 = vrot.slane %v350_v53, 1 }
  0xd2   : > { %v270_v56 = vadd.f32 %v269_v54, %v268_v52  ;;  %v352_v57 = vadd.f32 %v351_v55, %v350_v53 }
  0xd4   : > { %v271_v58 = vmul.f32 0.0625, %v270_v56  ;;  %v353_v59 = vmul.f32 0.0625, %v352_v57 }
  0xd6   : > { %v272_v60 = vadd.f32 1e-05, %v271_v58  ;;  %v354_v61 = vadd.f32 1e-05, %v353_v59 }
  0xd8   : > { %517 = vrsqrt.f32 %v272_v60  ;;  %vm279_vm4 = vweird.f32 %v272_v60  ;;  %vm361_vm6 = vweird.f32 %v354_v61 }
  0xd9   : > { %519 = vrsqrt.f32 %v354_v61 }
  0xde   : > { %v518_v62 = vpop.eup %517 }
  0xdf   : > { %v520_v63 = vpop.eup %519  ;;  %v274_v0 = vmul.f32 %v518_v62, %v272_v60  ;;  %vm280_vm2 = vweird.f32 %v518_v62 }
  0xe0   : > { %v356_v1 = vmul.f32 %v520_v63, %v354_v61  ;;  %vm362_vm3 = vweird.f32 %v520_v63  ;;  %vm281_vm5 = vmor %vm279_vm4, %vm280_vm2 }
  0xe1   : > { %v275_v2 = vmul.f32 %v518_v62, %v274_v0  ;;  %vm363_vm7 = vmor %vm361_vm6, %vm362_vm3 }
  0xe2   : > { %v357_v3 = vmul.f32 %v520_v63, %v356_v1 }
  0xe3   : > { %v276_v4 = vmul.f32 0.5, %v275_v2 }
  0xe4   : > { %v358_v5 = vmul.f32 0.5, %v357_v3 }
  0xe5   : > { %v277_v6 = vsub.f32 1.5, %v276_v4 }
  0xe6   : > { %v359_v7 = vsub.f32 1.5, %v358_v5 }
  0xe7   : > { %v278_v8 = vmul.f32 %v518_v62, %v277_v6 }
  0xe8   : > { %v360_v9 = vmul.f32 %v520_v63, %v359_v7 }
  0xe9   : > { %v282_v10 = vsel %vm281_vm5, %v518_v62, %v278_v8 }
  0xea   : > { %v283_v11 = vmul.f32 %v282_v10, %v260_v36  ;;  %v284_v12 = vmul.f32 %v282_v10, %v261_v37  ;;  %v364_v13 = vsel %vm363_vm7, %v520_v63, %v360_v9 }
  0xeb   : > { %v365_v14 = vmul.f32 %v364_v13, %v342_v38  ;;  %v366_v15 = vmul.f32 %v364_v13, %v343_v39 }
  0xed   : > { %v367_v16 = vadd.f32 %v365_v14, %v283_v11  ;;  %v368_v17 = vadd.f32 %v366_v15, %v284_v12 }
  0xef   : > { %v491_v18 = vpack.c.bf16 %v368_v17, %v367_v16 }
  0xf1   : > { %492 = vst [vmem:[%s200_s18] sm:$0xff] %v491_v18  }
  0xf2 PF: > { %p9_p9 = scmp.ge.s32.totalorder %s577_s13, 4   ;;  %s633_s9 = smov %s539_s10 }
  0xf3   : > { %s634_s10 = smov %s586_s16  ;;  %s635_s11 = smov %s577_s13 }
  0xf4   :  { %11 = sbr.rel (!%p9_p9) target bundleno = 2 (0x2), region = 106 }

// kernel: net_forward.20
= control target key start
LH: loop header
LB: loop body
LE: loop exit
PB: predicated region body
PF: predicated region fallthrough
CT: control target
= control target key end

     0   :  { %s355_s9 = smov 0   ;;  %s388_s0 = inlined_call_operand.vmem [shape: bf16[1,32,36], index: 0, kind: input, shape index: {}]   ;;  %s389_s1 = inlined_call_operand.vmem [shape: bf16[1,36,128], index: 1, kind: input, shape index: {}]   ;;  %s390_s2 = inlined_call_operand.vmem [shape: bf16[32,128], index: 2, kind: output, shape index: {}]  }
   0x1 LB: > { %s290_s10 = sadd.s32 4294967295, %s338_s9   ;;  %p294_p0 = scmp.ge.s32.totalorder %s338_s9, 1  ;;  %s338_s9 = sphi %s355_s9, %s12_s9  }
   0x2   : > { %p113_p1 = scmp.lt.s32.totalorder %s338_s9, 3 }
   0x4   : > { %p114_p2 = pnand %p294_p0, %p113_p1 }
   0x5   : > { %s295_s13 = sshll.u32 (!%p114_p2), %s290_s10, 1 }
   0x6   : > { %117 = sbr.rel (%p114_p2) target bundleno = 223 (0xdf), region = 28  ;;  %p136_p3 = scmp.lt.s32.totalorder (!%p114_p2), %s295_s13, 3 }
   0xb   : > { %v154_v0 = vld [vmem:[%s389_s1 + $0x10] sm:$0x3]  ;;  %vm179_vm0 = vcmask 1041408   ;;  %s392_s13 = smov (!%p136_p3, %s295_s13), 3  ;;  %v316_v4 = vld [vmem:[%s389_s1 + $0x8] sm:$0xff]  ;;  %v315_v5 = vld [vmem:[%s389_s1] sm:$0xff] }
   0xc   : > { %v169_v1 = vunpack.c.l.b16 %v154_v0  ;;  %s296_s16 = sshll.u32 %s392_s13, 2  ;;  %vm175_vm1 = vcmask 293888  }
   0xd   : > { %s139_s21 = scalar_lea.vmem %s388_s0, %s296_s16  ;;  %s145_s24 = scalar_lea.vmem %s390_s2, %s296_s16 }
   0xe   : > { %v172_v2 = vpack.c.b16 %v169_v1, %v169_v1  ;;  %v314_v6 = vld [vmem:[%s139_s21] sm:$0xff] }
  0x10   : > { %v181_v3 = vsel %vm179_vm0, %v172_v2, 0 }
  0x11   : > { %188 = vmatpush.bf16.msra.mxu0 %v181_v3 }
  0x15   : > { %189 = vmatpush.bf16.msra.mxu0 %v316_v4 }
  0x19   : > { %190 = vmatpush.bf16.msra.mxu0 %v315_v5 }
  0x1c   : > { %311 = vmatmul.msk.bf16.vlgmr.msra.gmra.mxu0 %vm175_vm1, %v314_v6 }
  0x99   : > { %v192_v7 = vpop.f32.mrf.mxu0 }
  0xa1   : > { %v194_v8 = vpop.f32.mrf.mxu0 }
  0xa2   : > { %v197_v9 = vadd.f32 %v194_v8, %v192_v7 }
  0xa4   : > { %v198_v10 = vrot.slane %v197_v9, 4 }
  0xa6   : > { %v199_v11 = vadd.f32 %v198_v10, %v197_v9 }
  0xa8   : > { %v200_v12 = vrot.slane %v199_v11, 2 }
  0xaa   : > { %v201_v13 = vadd.f32 %v200_v12, %v199_v11 }
  0xac   : > { %v202_v14 = vrot.slane %v201_v13, 1 }
  0xae   : > { %v203_v15 = vadd.f32 %v202_v14, %v201_v13 }
  0xb0   : > { %v204_v16 = vmul.f32 0.0625, %v203_v15 }
  0xb2   : > { %v205_v17 = vsub.f32 %v192_v7, %v204_v16  ;;  %v206_v18 = vsub.f32 %v194_v8, %v204_v16 }
  0xb4   : > { %v207_v19 = vmul.f32 %v205_v17, %v205_v17  ;;  %v208_v20 = vmul.f32 %v206_v18, %v206_v18 }
  0xb6   : > { %v209_v21 = vadd.f32 %v208_v20, %v207_v19 }
  0xb8   : > { %v210_v22 = vrot.slane %v209_v21, 4 }
  0xba   : > { %v211_v23 = vadd.f32 %v210_v22, %v209_v21 }
  0xbc   : > { %v212_v24 = vrot.slane %v211_v23, 2 }
  0xbe   : > { %v213_v25 = vadd.f32 %v212_v24, %v211_v23 }
  0xc0   : > { %v214_v26 = vrot.slane %v213_v25, 1 }
  0xc2   : > { %v215_v27 = vadd.f32 %v214_v26, %v213_v25 }
  0xc4   : > { %v216_v28 = vmul.f32 0.0625, %v215_v27 }
  0xc6   : > { %v217_v29 = vadd.f32 1e-05, %v216_v28 }
  0xc8   : > { %330 = vrsqrt.f32 %v217_v29  ;;  %vm224_vm3 = vweird.f32 %v217_v29 }
  0xce   : > { %v331_v30 = vpop.eup %330 }
  0xcf   : > { %v219_v31 = vmul.f32 %v331_v30, %v217_v29  ;;  %vm225_vm2 = vweird.f32 %v331_v30 }
  0xd0   : > { %vm226_vm4 = vmor %vm224_vm3, %vm225_vm2 }
  0xd1   : > { %v220_v32 = vmul.f32 %v331_v30, %v219_v31 }
  0xd3   : > { %v221_v33 = vmul.f32 0.5, %v220_v32 }
  0xd5   : > { %v222_v34 = vsub.f32 1.5, %v221_v33 }
  0xd7   : > { %v223_v35 = vmul.f32 %v331_v30, %v222_v34 }
  0xd9   : > { %v227_v36 = vsel %vm226_vm4, %v331_v30, %v223_v35 }
  0xda   : > { %v228_v37 = vmul.f32 %v227_v36, %v205_v17  ;;  %v229_v38 = vmul.f32 %v227_v36, %v206_v18 }
  0xdc   : > { %v320_v39 = vpack.c.bf16 %v229_v38, %v228_v37 }
  0xde   : > { %321 = vst [vmem:[%s145_s24] sm:$0xff] %v320_v39  }
  0xdf PF: > { %s12_s9 = sadd.s32 1, %s338_s9  }
  0xe0   : > { %p9_p4 = scmp.ge.s32.totalorder %s12_s9, 4  }
  0xe2   :  { %11 = sbr.rel (!%p9_p4) target bundleno = 1 (0x1), region = 58 }

// kernel: net_forward.22
= control target key start
LH: loop header
LB: loop body
LE: loop exit
PB: predicated region body
PF: predicated region fallthrough
CT: control target
= control target key end

     0   :  { %s326_s9 = smov 0   ;;  %s353_s0 = inlined_call_operand.vmem [shape: bf16[1,32,8], index: 0, kind: input, shape index: {}]   ;;  %s354_s1 = inlined_call_operand.vmem [shape: bf16[1,8,128], index: 1, kind: input, shape index: {}]   ;;  %s355_s2 = inlined_call_operand.vmem [shape: bf16[32,128], index: 2, kind: output, shape index: {}]  }
   0x1 LB: > { %s271_s10 = sadd.s32 4294967295, %s309_s9   ;;  %p275_p0 = scmp.ge.s32.totalorder %s309_s9, 1  ;;  %s309_s9 = sphi %s326_s9, %s12_s9  }
   0x2   : > { %p113_p1 = scmp.lt.s32.totalorder %s309_s9, 3 }
   0x4   : > { %p114_p2 = pnand %p275_p0, %p113_p1 }
   0x5   : > { %s276_s13 = sshll.u32 (!%p114_p2), %s271_s10, 1 }
   0x6   : > { %117 = sbr.rel (%p114_p2) target bundleno = 211 (0xd3), region = 28  ;;  %p136_p3 = scmp.lt.s32.totalorder (!%p114_p2), %s276_s13, 3 }
   0xb   : > { %v150_v0 = vld [vmem:[%s354_s1] sm:$0xf]  ;;  %vm160_vm0 = vcmask 1043456   ;;  %s357_s13 = smov (!%p136_p3, %s276_s13), 3  ;;  %vm156_vm1 = vcmask 64512  }
   0xc   : > { %v162_v1 = vsel %vm160_vm0, %v150_v0, 0  ;;  %s277_s14 = sshll.u32 %s357_s13, 2 }
   0xd   : > { %171 = vmatpush.bf16.msra.mxu0 %v162_v1  ;;  %s139_s17 = scalar_lea.vmem %s353_s0, %s277_s14  ;;  %s145_s20 = scalar_lea.vmem %s355_s2, %s277_s14 }
   0xe   : > { %v287_v2 = vld [vmem:[%s139_s17] sm:$0xff] }
  0x10   : > { %284 = vmatmul.msk.bf16.vlgmr.msra.gmra.mxu0 %vm156_vm1, %v287_v2 }
  0x8d   : > { %v173_v3 = vpop.f32.mrf.mxu0 }
  0x95   : > { %v175_v4 = vpop.f32.mrf.mxu0 }
  0x96   : > { %v178_v5 = vadd.f32 %v175_v4, %v173_v3 }
  0x98   : > { %v179_v6 = vrot.slane %v178_v5, 4 }
  0x9a   : > { %v180_v7 = vadd.f32 %v179_v6, %v178_v5 }
  0x9c   : > { %v181_v8 = vrot.slane %v180_v7, 2 }
  0x9e   : > { %v182_v9 = vadd.f32 %v181_v8, %v180_v7 }
  0xa0   : > { %v183_v10 = vrot.slane %v182_v9, 1 }
  0xa2   : > { %v184_v11 = vadd.f32 %v183_v10, %v182_v9 }
  0xa4   : > { %v185_v12 = vmul.f32 0.0625, %v184_v11 }
  0xa6   : > { %v186_v13 = vsub.f32 %v173_v3, %v185_v12  ;;  %v187_v14 = vsub.f32 %v175_v4, %v185_v12 }
  0xa8   : > { %v188_v15 = vmul.f32 %v186_v13, %v186_v13  ;;  %v189_v16 = vmul.f32 %v187_v14, %v187_v14 }
  0xaa   : > { %v190_v17 = vadd.f32 %v189_v16, %v188_v15 }
  0xac   : > { %v191_v18 = vrot.slane %v190_v17, 4 }
  0xae   : > { %v192_v19 = vadd.f32 %v191_v18, %v190_v17 }
  0xb0   : > { %v193_v20 = vrot.slane %v192_v19, 2 }
  0xb2   : > { %v194_v21 = vadd.f32 %v193_v20, %v192_v19 }
  0xb4   : > { %v195_v22 = vrot.slane %v194_v21, 1 }
  0xb6   : > { %v196_v23 = vadd.f32 %v195_v22, %v194_v21 }
  0xb8   : > { %v197_v24 = vmul.f32 0.0625, %v196_v23 }
  0xba   : > { %v198_v25 = vadd.f32 1e-05, %v197_v24 }
  0xbc   : > { %301 = vrsqrt.f32 %v198_v25  ;;  %vm205_vm3 = vweird.f32 %v198_v25 }
  0xc2   : > { %v302_v26 = vpop.eup %301 }
  0xc3   : > { %v200_v27 = vmul.f32 %v302_v26, %v198_v25  ;;  %vm206_vm2 = vweird.f32 %v302_v26 }
  0xc4   : > { %vm207_vm4 = vmor %vm205_vm3, %vm206_vm2 }
  0xc5   : > { %v201_v28 = vmul.f32 %v302_v26, %v200_v27 }
  0xc7   : > { %v202_v29 = vmul.f32 0.5, %v201_v28 }
  0xc9   : > { %v203_v30 = vsub.f32 1.5, %v202_v29 }
  0xcb   : > { %v204_v31 = vmul.f32 %v302_v26, %v203_v30 }
  0xcd   : > { %v208_v32 = vsel %vm207_vm4, %v302_v26, %v204_v31 }
  0xce   : > { %v209_v33 = vmul.f32 %v208_v32, %v186_v13  ;;  %v210_v34 = vmul.f32 %v208_v32, %v187_v14 }
  0xd0   : > { %v291_v35 = vpack.c.bf16 %v210_v34, %v209_v33 }
  0xd2   : > { %292 = vst [vmem:[%s145_s20] sm:$0xff] %v291_v35  }
  0xd3 PF: > { %s12_s9 = sadd.s32 1, %s309_s9  }
  0xd4   : > { %p9_p4 = scmp.ge.s32.totalorder %s12_s9, 4  }
  0xd6   :  { %11 = sbr.rel (!%p9_p4) target bundleno = 1 (0x1), region = 58 }

// kernel: net_forward.23
= control target key start
LH: loop header
LB: loop body
LE: loop exit
PB: predicated region body
PF: predicated region fallthrough
CT: control target
= control target key end

     0   :  { %s842_s9 = smov 0   ;;  %s844_s10 = smov 0   ;;  %s1004_s0 = inlined_call_operand.vmem [shape: bf16[2,128,36], index: 0, kind: input, shape index: {}]   ;;  %s1005_s1 = inlined_call_operand.vmem [shape: bf16[2,36,128], index: 1, kind: input, shape index: {}]   ;;  %s1006_s2 = inlined_call_operand.vmem [shape: bf16[128,128], index: 2, kind: output, shape index: {}]  }
   0x1   :  { %s846_s11 = smov 0  }
   0x2 LB: > { %s651_s12 = sadd.s32 4294967295, %s825_s11   ;;  %s859_s13 = sadd.s32 1, %s825_s11   ;;  %s825_s11 = sphi %s846_s11, %s1009_s11   ;;  %s821_s10 = sphi %s844_s10, %s1008_s10   ;;  %s817_s9 = sphi %s842_s9, %s1007_s9  }
   0x3   : > { %s16_s14 = ssub.s32 %s825_s11, %s859_s13  ;;  %s19_s15 = sadd.s32 1, %s821_s10 }
   0x4   : > { %p17_p0 = scmp.eq.s32.totalorder %s16_s14, 0  ;;  %p26_p1 = scmp.ne.s32.totalorder %s821_s10, %s817_s9 }
   0x5   : > { %p27_p2 = scmp.eq.s32.totalorder %s825_s11, 0  ;;  %p654_p4 = scmp.ge.s32.totalorder %s825_s11, 2 }
   0x6   : > { %s868_s16 = scalar_select %p17_p0, %s821_s10, %s19_s15  }
   0x7   : > { %p28_p3 = por %p27_p2, %p26_p1  ;;  %102 = sbr.rel (%p654_p4) target bundleno = 24 (0x18), region = 20 }
   0xc   : > { %105 = sbr.rel (!%p28_p3) target bundleno = 24 (0x18), region = 24  ;;  %s107_s17 = sand.u32 (%p28_p3), 1, %s821_s10  }
   0xd   : > { %s733_s18 = sshll.u32 (%p28_p3), %s825_s11, 5  ;;  %s655_s19 = sshll.u32 (%p28_p3), %s107_s17, 6 }
   0xe   : > { %s112_s22 = scalar_lea.vmem (%p28_p3), %s1004_s0, %s733_s18  ;;  %s109_s23 = scalar_lea.vmem (%p28_p3), [#allocation2], %s655_s19 }
   0xf   : > { %v129_v0 = vld [vmem:[%s112_s22] sm:$0xff] (%p28_p3)   ;;  %v133_v1 = vld [vmem:[%s112_s22 + $0x8] sm:$0xff] (%p28_p3)   ;;  %v137_v2 = vld [vmem:[%s112_s22 + $0x10] sm:$0xff] (%p28_p3)  }
  0x10   : > { %130 = vst [vmem:[%s109_s23] sm:$0xff] (%p28_p3), %v129_v0   ;;  %v141_v3 = vld [vmem:[%s112_s22 + $0x18] sm:$0xff] (%p28_p3)   ;;  %v145_v4 = vld [vmem:[%s112_s22 + $0x40] sm:$0xff] (%p28_p3)   ;;  %v149_v5 = vld [vmem:[%s112_s22 + $0x48] sm:$0xff] (%p28_p3)  }
  0x11   : > { %134 = vst [vmem:[%s109_s23 + $0x8] sm:$0xff] %v133_v1   ;;  %v153_v6 = vld [vmem:[%s112_s22 + $0x50] sm:$0xff]   ;;  %v157_v7 = vld [vmem:[%s112_s22 + $0x58] sm:$0xff]  }
  0x12   : > { %138 = vst [vmem:[%s109_s23 + $0x10] sm:$0xff] %v137_v2  }
  0x13   : > { %142 = vst [vmem:[%s109_s23 + $0x18] sm:$0xff] %v141_v3  }
  0x14   : > { %146 = vst [vmem:[%s109_s23 + $0x20] sm:$0xff] %v145_v4  }
  0x15   : > { %150 = vst [vmem:[%s109_s23 + $0x28] sm:$0xff] %v149_v5  }
  0x16   : > { %154 = vst [vmem:[%s109_s23 + $0x30] sm:$0xff] %v153_v6  }
  0x17   : > { %158 = vst [vmem:[%s109_s23 + $0x38] sm:$0xff] %v157_v7  }
  0x18 PF: > { %p658_p5 = scmp.ge.s32.totalorder %s825_s11, 1  ;;  %p215_p6 = scmp.lt.s32.totalorder %s825_s11, 3 }
  0x1a   : > { %p216_p7 = pnand %p658_p5, %p215_p6 }
  0x1b   : > { %s222_s28 = sand.u32 (!%p216_p7), 1, %s817_s9   ;;  %s660_s15 = sshll.u32 (!%p216_p7), %s651_s12, 3 }
  0x1c   : > { %219 = sbr.rel (%p216_p7) target bundleno = 289 (0x121), region = 65  ;;  %s659_s5 = sshll.u32 (!%p216_p7), %s222_s28, 6 }
  0x1d   : > { %s224_s14 = scalar_lea.vmem (!%p216_p7), [#allocation2], %s659_s5  ;;  %p245_p8 = scmp.lt.s32.totalorder (!%p216_p7), %s660_s15, 15 }
  0x21   : > { %v263_v8 = vld [vmem:[%s1005_s1 + $0x10] sm:$0x3]  ;;  %v702_v9 = vld [vmem:[%s1005_s1 + $0x24] sm:$0x3]  ;;  %vm312_vm0 = vcmask 1041408   ;;  %v739_v16 = vld [vmem:[%s1005_s1 + $0x8] sm:$0xff] }
  0x22   : > { %v293_v10 = vunpack.c.l.b16 %v263_v8  ;;  %v452_v11 = vunpack.c.l.b16 %v702_v9  ;;  %v745_v17 = vld [vmem:[%s1005_s1 + $0x1c] sm:$0xff]  ;;  %v744_v19 = vld [vmem:[%s1005_s1 + $0x14] sm:$0xff]  ;;  %vm299_vm1 = vcmask 293888   ;;  %v735_v24 = vld [vmem:[%s224_s14 + $0x8] sm:$0xff]  ;;  %s1011_s15 = smov (!%p245_p8, %s660_s15), 15 }
  0x23   : > { %v738_v18 = vld [vmem:[%s1005_s1] sm:$0xff]  ;;  %v736_v21 = vld [vmem:[%s224_s14 + $0x10] sm:$0xff]  ;;  %v737_v25 = vld [vmem:[%s224_s14 + $0x18] sm:$0xff]  ;;  %s661_s11 = sshll.u32 %s1011_s15, 2 }
  0x24   : > { %v296_v12 = vpack.c.b16 %v293_v10, %v293_v10  ;;  %v455_v13 = vpack.c.b16 %v452_v11, %v452_v11  ;;  %v734_v20 = vld [vmem:[%s224_s14] sm:$0xff]  ;;  %v742_v23 = vld [vmem:[%s224_s14 + $0x30] sm:$0xff]  ;;  %v741_v26 = vld [vmem:[%s224_s14 + $0x28] sm:$0xff]  ;;  %s248_s18 = scalar_lea.vmem %s1006_s2, %s661_s11 }
  0x25   : > { %v740_v22 = vld [vmem:[%s224_s14 + $0x20] sm:$0xff]  ;;  %v743_v27 = vld [vmem:[%s224_s14 + $0x38] sm:$0xff] }
  0x26   : > { %v314_v14 = vsel %vm312_vm0, %v296_v12, 0  ;;  %v471_v15 = vsel %vm312_vm0, %v455_v13, 0 }
  0x27   : > { %321 = vmatpush.bf16.msra.mxu0 %v314_v14  ;;  %769 = vmatpush.bf16.msra.mxu2 %v314_v14 }
  0x28   : > { %478 = vmatpush.bf16.msra.mxu1 %v471_v15  ;;  %772 = vmatpush.bf16.msra.mxu3 %v471_v15 }
  0x2b   : > { %322 = vmatpush.bf16.msra.mxu0 %v739_v16  ;;  %770 = vmatpush.bf16.msra.mxu2 %v739_v16 }
  0x2c   : > { %479 = vmatpush.bf16.msra.mxu1 %v745_v17  ;;  %773 = vmatpush.bf16.msra.mxu3 %v745_v17 }
  0x2f   : > { %323 = vmatpush.bf16.msra.mxu0 %v738_v18  ;;  %771 = vmatpush.bf16.msra.mxu2 %v738_v18 }
  0x30   : > { %480 = vmatpush.bf16.msra.mxu1 %v744_v19  ;;  %774 = vmatpush.bf16.msra.mxu3 %v744_v19 }
  0x32   : > { %686 = vmatmul.msk.bf16.vlgmr.msra.gmra.mxu0 %vm299_vm1, %v734_v20  ;;  %688 = vmatmul.msk.bf16.vlgmr.msra.gmra.mxu2 %vm299_vm1, %v736_v21 }
  0x33   : > { %727 = vmatmul.msk.bf16.vlgmr.msra.gmra.mxu1 %vm299_vm1, %v740_v22  ;;  %729 = vmatmul.msk.bf16.vlgmr.msra.gmra.mxu3 %vm299_vm1, %v742_v23 }
  0x42   : > { %687 = vmatmul.msk.bf16.gmra.mxu0 %vm299_vm1, %v735_v24  ;;  %689 = vmatmul.msk.bf16.gmra.mxu2 %vm299_vm1, %v737_v25 }
  0x43   : > { %728 = vmatmul.msk.bf16.gmra.mxu1 %vm299_vm1, %v741_v26  ;;  %730 = vmatmul.msk.bf16.gmra.mxu3 %vm299_vm1, %v743_v27 }
  0xaf   : > { %v325_v28 = vpop.f32.mrf.mxu0 }
  0xb0   : > { %v482_v29 = vpop.f32.mrf.mxu1 }
  0xb5   : > { %v335_v30 = vpop.f32.mrf.mxu2 }
  0xb6   : > { %v492_v31 = vpop.f32.mrf.mxu3 }
  0xb7   : > { %v327_v32 = vpop.f32.mrf.mxu0 }
  0xb8   : > { %v484_v33 = vpop.f32.mrf.mxu1  ;;  %v345_v38 = vadd.f32 %v327_v32, %v325_v28 }
  0xb9   : > { %v502_v39 = vadd.f32 %v484_v33, %v482_v29 }
  0xbd   : > { %v337_v34 = vpop.f32.mrf.mxu2 }
  0xbe   : > { %v905_v35 = vpop.f32.mrf.mxu3 }
  0xbf   : > { %v330_v36 = vpop.f32.mrf.mxu0 }
  0xc0   : > { %v487_v37 = vpop.f32.mrf.mxu1  ;;  %v346_v41 = vadd.f32 %v345_v38, %v330_v36 }
  0xc1   : > { %v503_v43 = vadd.f32 %v502_v39, %v487_v37 }
  0xc5   : > { %v340_v40 = vpop.f32.mrf.mxu2 }
  0xc6   : > { %v497_v42 = vpop.f32.mrf.mxu3 }
  0xc7   : > { %v332_v44 = vpop.f32.mrf.mxu0 }
  0xc8   : > { %v347_v45 = vadd.f32 %v346_v41, %v332_v44  ;;  %v489_v46 = vpop.f32.mrf.mxu1 }
  0xc9   : > { %v504_v47 = vadd.f32 %v503_v43, %v489_v46 }
  0xca   : > { %v348_v48 = vadd.f32 %v347_v45, %v335_v30 }
  0xcb   : > { %v505_v49 = vadd.f32 %v504_v47, %v492_v31 }
  0xcc   : > { %v349_v50 = vadd.f32 %v348_v48, %v337_v34 }
  0xcd   : > { %v506_v51 = vadd.f32 %v505_v49, %v905_v35  ;;  %v342_v53 = vpop.f32.mrf.mxu2 }
  0xce   : > { %v350_v52 = vadd.f32 %v349_v50, %v340_v40  ;;  %v499_v56 = vpop.f32.mrf.mxu3 }
  0xcf   : > { %v507_v54 = vadd.f32 %v506_v51, %v497_v42 }
  0xd0   : > { %v351_v55 = vadd.f32 %v350_v52, %v342_v53 }
  0xd1   : > { %v508_v57 = vadd.f32 %v507_v54, %v499_v56 }
  0xd2   : > { %v352_v58 = vrot.slane %v351_v55, 4 }
  0xd3   : > { %v509_v59 = vrot.slane %v508_v57, 4 }
  0xd4   : > { %v353_v60 = vadd.f32 %v352_v58, %v351_v55 }
  0xd5   : > { %v510_v61 = vadd.f32 %v509_v59, %v508_v57 }
  0xd6   : > { %v354_v62 = vrot.slane %v353_v60, 2 }
  0xd7   : > { %v511_v63 = vrot.slane %v510_v61, 2 }
  0xd8   : > { %v355_v0 = vadd.f32 %v354_v62, %v353_v60 }
  0xd9   : > { %v512_v1 = vadd.f32 %v511_v63, %v510_v61 }
  0xda   : > { %v356_v2 = vrot.slane %v355_v0, 1 }
  0xdb   : > { %v513_v3 = vrot.slane %v512_v1, 1 }
  0xdc   : > { %v357_v4 = vadd.f32 %v356_v2, %v355_v0 }
  0xdd   : > { %v514_v5 = vadd.f32 %v513_v3, %v512_v1 }
  0xde   : > { %v358_v6 = vmul.f32 0.015625, %v357_v4 }
  0xdf   : > { %v515_v10 = vmul.f32 0.015625, %v514_v5 }
  0xe0   : > { %v908_v7 = vsub.f32 %v325_v28, %v358_v6  ;;  %v910_v8 = vsub.f32 %v327_v32, %v358_v6  ;;  %v912_v9 = vsub.f32 %v330_v36, %v358_v6  ;;  %v914_v11 = vsub.f32 %v332_v44, %v358_v6 }
  0xe1   : > { %v920_v14 = vsub.f32 %v335_v30, %v358_v6  ;;  %v924_v17 = vsub.f32 %v482_v29, %v515_v10  ;;  %v926_v18 = vsub.f32 %v484_v33, %v515_v10  ;;  %v928_v19 = vsub.f32 %v487_v37, %v515_v10 }
  0xe2   : > { %v367_v12 = vmul.f32 %v908_v7, %v908_v7  ;;  %v368_v13 = vmul.f32 %v910_v8, %v910_v8  ;;  %v369_v15 = vmul.f32 %v912_v9, %v912_v9  ;;  %v930_v20 = vsub.f32 %v337_v34, %v358_v6 }
  0xe3   : > { %v370_v21 = vmul.f32 %v914_v11, %v914_v11  ;;  %v934_v23 = vsub.f32 %v489_v46, %v515_v10  ;;  %v524_v24 = vmul.f32 %v924_v17, %v924_v17  ;;  %v525_v25 = vmul.f32 %v926_v18, %v926_v18 }
  0xe4   : > { %v375_v16 = vadd.f32 %v368_v13, %v367_v12  ;;  %v940_v26 = vsub.f32 %v340_v40, %v358_v6  ;;  %v371_v27 = vmul.f32 %v920_v14, %v920_v14  ;;  %v944_v29 = vsub.f32 %v492_v31, %v515_v10 }
  0xe5   : > { %v526_v30 = vmul.f32 %v928_v19, %v928_v19  ;;  %v532_v32 = vadd.f32 %v525_v25, %v524_v24  ;;  %v948_v33 = vsub.f32 %v342_v53, %v358_v6  ;;  %v372_v34 = vmul.f32 %v930_v20, %v930_v20 }
  0xe6   : > { %v376_v22 = vadd.f32 %v375_v16, %v369_v15  ;;  %v953_v37 = vsub.f32 %v905_v35, %v515_v10  ;;  %v527_v38 = vmul.f32 %v934_v23, %v934_v23  ;;  %v373_v31 = vmul.f32 %v940_v26, %v940_v26 }
  0xe7   : > { %v533_v39 = vadd.f32 %v532_v32, %v526_v30  ;;  %v959_v41 = vsub.f32 %v497_v42, %v515_v10  ;;  %v528_v43 = vmul.f32 %v944_v29, %v944_v29  ;;  %v374_v45 = vmul.f32 %v948_v33, %v948_v33 }
  0xe8   : > { %v377_v28 = vadd.f32 %v376_v22, %v370_v21  ;;  %v965_v35 = vsub.f32 %v499_v56, %v515_v10  ;;  %v529_v47 = vmul.f32 %v953_v37, %v953_v37 }
  0xe9   : > { %v534_v44 = vadd.f32 %v533_v39, %v527_v38  ;;  %v530_v50 = vmul.f32 %v959_v41, %v959_v41 }
  0xea   : > { %v378_v36 = vadd.f32 %v377_v28, %v371_v27  ;;  %v531_v52 = vmul.f32 %v965_v35, %v965_v35 }
  0xeb   : > { %v535_v48 = vadd.f32 %v534_v44, %v528_v43 }
  0xec   : > { %v379_v40 = vadd.f32 %v378_v36, %v372_v34 }
  0xed   : > { %v536_v42 = vadd.f32 %v535_v48, %v529_v47 }
  0xee   : > { %v380_v46 = vadd.f32 %v379_v40, %v373_v31 }
  0xef   : > { %v537_v53 = vadd.f32 %v536_v42, %v530_v50 }
  0xf0   : > { %v381_v49 = vadd.f32 %v380_v46, %v374_v45 }
  0xf1   : > { %v538_v55 = vadd.f32 %v537_v53, %v531_v52 }
  0xf2   : > { %v382_v51 = vrot.slane %v381_v49, 4 }
  0xf3   : > { %v539_v58 = vrot.slane %v538_v55, 4 }
  0xf4   : > { %v383_v54 = vadd.f32 %v382_v51, %v381_v49 }
  0xf5   : > { %v540_v59 = vadd.f32 %v539_v58, %v538_v55 }
  0xf6   : > { %v384_v57 = vrot.slane %v383_v54, 2 }
  0xf7   : > { %v541_v61 = vrot.slane %v540_v59, 2 }
  0xf8   : > { %v385_v56 = vadd.f32 %v384_v57, %v383_v54 }
  0xf9   : > { %v542_v63 = vadd.f32 %v541_v61, %v540_v59 }
  0xfa   : > { %v386_v60 = vrot.slane %v385_v56, 1 }
  0xfb   : > { %v543_v1 = vrot.slane %v542_v63, 1 }
  0xfc   : > { %v387_v62 = vadd.f32 %v386_v60, %v385_v56 }
  0xfd   : > { %v544_v3 = vadd.f32 %v543_v1, %v542_v63 }
  0xfe   : > { %v388_v0 = vmul.f32 0.015625, %v387_v62 }
  0xff   : > { %v545_v4 = vmul.f32 0.015625, %v544_v3 }
 0x100   : > { %v389_v2 = vadd.f32 1e-05, %v388_v0 }
 0x101   : > { %v546_v5 = vadd.f32 1e-05, %v545_v4 }
 0x102   : > { %799 = vrsqrt.f32 %v389_v2  ;;  %vm396_vm3 = vweird.f32 %v389_v2 }
 0x103   : > { %801 = vrsqrt.f32 %v546_v5  ;;  %vm553_vm6 = vweird.f32 %v546_v5 }
 0x108   : > { %v800_v6 = vpop.eup %799 }
 0x109   : > { %v391_v10 = vmul.f32 %v800_v6, %v389_v2  ;;  %v802_v13 = vpop.eup %801  ;;  %vm397_vm2 = vweird.f32 %v800_v6 }
 0x10a   : > { %v548_v16 = vmul.f32 %v802_v13, %v546_v5  ;;  %vm398_vm4 = vmor %vm396_vm3, %vm397_vm2  ;;  %vm554_vm5 = vweird.f32 %v802_v13 }
 0x10b   : > { %v392_v12 = vmul.f32 %v800_v6, %v391_v10  ;;  %vm555_vm7 = vmor %vm553_vm6, %vm554_vm5 }
 0x10c   : > { %v549_v22 = vmul.f32 %v802_v13, %v548_v16 }
 0x10d   : > { %v393_v15 = vmul.f32 0.5, %v392_v12 }
 0x10e   : > { %v550_v25 = vmul.f32 0.5, %v549_v22 }
 0x10f   : > { %v394_v21 = vsub.f32 1.5, %v393_v15 }
 0x110   : > { %v551_v28 = vsub.f32 1.5, %v550_v25 }
 0x111   : > { %v395_v24 = vmul.f32 %v800_v6, %v394_v21 }
 0x112   : > { %v552_v32 = vmul.f32 %v802_v13, %v551_v28 }
 0x113   : > { %v399_v27 = vsel %vm398_vm4, %v800_v6, %v395_v24 }
 0x114   : > { %v402_v30 = vmul.f32 %v399_v27, %v912_v9  ;;  %v403_v34 = vmul.f32 %v399_v27, %v914_v11  ;;  %v404_v36 = vmul.f32 %v399_v27, %v920_v14  ;;  %v400_v38 = vmul.f32 %v399_v27, %v908_v7 }
 0x115   : > { %v401_v39 = vmul.f32 %v399_v27, %v910_v8  ;;  %v405_v31 = vmul.f32 %v399_v27, %v930_v20  ;;  %v407_v40 = vmul.f32 %v399_v27, %v948_v33  ;;  %v406_v43 = vmul.f32 %v399_v27, %v940_v26 }
 0x116   : > { %v556_v44 = vsel %vm555_vm7, %v802_v13, %v552_v32 }
 0x117   : > { %v557_v9 = vmul.f32 %v556_v44, %v924_v17  ;;  %v558_v45 = vmul.f32 %v556_v44, %v926_v18  ;;  %v559_v11 = vmul.f32 %v556_v44, %v928_v19  ;;  %v560_v14 = vmul.f32 %v556_v44, %v934_v23 }
 0x118   : > { %v561_v7 = vmul.f32 %v556_v44, %v944_v29  ;;  %v562_v8 = vmul.f32 %v556_v44, %v953_v37  ;;  %v563_v20 = vmul.f32 %v556_v44, %v959_v41  ;;  %v564_v33 = vmul.f32 %v556_v44, %v965_v35 }
 0x119   : > { %v565_v46 = vadd.f32 %v557_v9, %v400_v38  ;;  %v566_v26 = vadd.f32 %v558_v45, %v401_v39  ;;  %v567_v47 = vadd.f32 %v559_v11, %v402_v30  ;;  %v568_v48 = vadd.f32 %v560_v14, %v403_v34 }
 0x11a   : > { %v569_v17 = vadd.f32 %v561_v7, %v404_v36  ;;  %v570_v18 = vadd.f32 %v562_v8, %v405_v31  ;;  %v571_v19 = vadd.f32 %v563_v20, %v406_v43  ;;  %v572_v23 = vadd.f32 %v564_v33, %v407_v40 }
 0x11b   : > { %v749_v49 = vpack.c.bf16 %v566_v26, %v565_v46  ;;  %v754_v29 = vpack.c.bf16 %v568_v48, %v567_v47 }
 0x11c   : > { %v759_v50 = vpack.c.bf16 %v570_v18, %v569_v17  ;;  %v764_v37 = vpack.c.bf16 %v572_v23, %v571_v19 }
 0x11d   : > { %750 = vst [vmem:[%s248_s18] sm:$0xff] %v749_v49  }
 0x11e   : > { %766 = vst [vmem:[%s248_s18 + $0x8] sm:$0xff] %v754_v29  }
 0x11f   : > { %767 = vst [vmem:[%s248_s18 + $0x10] sm:$0xff] %v759_v50  }
 0x120   : > { %768 = vst [vmem:[%s248_s18 + $0x18] sm:$0xff] %v764_v37  }
 0x121 PF: > { %p9_p9 = scmp.ge.s32.totalorder %s859_s13, 4   ;;  %s1007_s9 = smov %s821_s10 }
 0x122   : > { %s1008_s10 = smov %s868_s16  ;;  %s1009_s11 = smov %s859_s13 }
 0x123   :  { %11 = sbr.rel (!%p9_p9) target bundleno = 2 (0x2), region = 106 }

// kernel: net_forward.25
= control target key start
LH: loop header
LB: loop body
LE: loop exit
PB: predicated region body
PF: predicated region fallthrough
CT: control target
= control target key end

     0   :  { %s944_s9 = smov 0   ;;  %s1303_s0 = inlined_call_operand.vmem [shape: bf16[1,512,8], index: 0, kind: input, shape index: {}]   ;;  %s1304_s1 = inlined_call_operand.vmem [shape: bf16[1,8,128], index: 1, kind: input, shape index: {}]   ;;  %s1305_s2 = inlined_call_operand.vmem [shape: bf16[512,128], index: 2, kind: output, shape index: {}]  }
   0x1 LB: > { %s706_s10 = sadd.s32 4294967295, %s927_s9   ;;  %p710_p0 = scmp.ge.s32.totalorder %s927_s9, 1  ;;  %s927_s9 = sphi %s944_s9, %s12_s9  }
   0x2   : > { %p113_p1 = scmp.lt.s32.totalorder %s927_s9, 3 }
   0x4   : > { %p114_p2 = pnand %p710_p0, %p113_p1 }
   0x5   : > { %s711_s13 = sshll.u32 (!%p114_p2), %s706_s10, 5 }
   0x6   : > { %117 = sbr.rel (%p114_p2) target bundleno = 384 (0x180), region = 28  ;;  %p136_p3 = scmp.lt.s32.totalorder (!%p114_p2), %s711_s13, 63 }
   0xb   : > { %v180_v0 = vld [vmem:[%s1304_s1] sm:$0xf]  ;;  %vm310_vm0 = vcmask 1043456   ;;  %s1307_s13 = smov (!%p136_p3, %s711_s13), 63  ;;  %vm261_vm1 = vcmask 64512  }
   0xc   : > { %v312_v1 = vsel %vm310_vm0, %v180_v0, 0  ;;  %s712_s14 = sshll.u32 %s1307_s13, 2 }
   0xd   : > { %321 = vmatpush.bf16.msra.mxu0 %v312_v1  ;;  %908 = vmatpush.bf16.msra.mxu1 %v312_v1  ;;  %s139_s17 = scalar_lea.vmem %s1303_s0, %s712_s14  ;;  %s1266_s20 = scalar_lea.vmem %s1305_s2, %s712_s14 }
   0xe   : > { %909 = vmatpush.bf16.msra.mxu2 %v312_v1  ;;  %910 = vmatpush.bf16.msra.mxu3 %v312_v1  ;;  %v797_v2 = vld [vmem:[%s139_s17] sm:$0xff]  ;;  %v798_v6 = vld [vmem:[%s139_s17 + $0x8] sm:$0xff]  ;;  %v799_v10 = vld [vmem:[%s139_s17 + $0x10] sm:$0xff] }
   0xf   : > { %v801_v3 = vld [vmem:[%s139_s17 + $0x20] sm:$0xff]  ;;  %v802_v7 = vld [vmem:[%s139_s17 + $0x28] sm:$0xff]  ;;  %v803_v11 = vld [vmem:[%s139_s17 + $0x30] sm:$0xff] }
  0x10   : > { %v805_v4 = vld [vmem:[%s139_s17 + $0x40] sm:$0xff]  ;;  %779 = vmatmul.msk.bf16.vlgmr.msra.gmra.mxu0 %vm261_vm1, %v797_v2  ;;  %783 = vmatmul.msk.bf16.vlgmr.msra.gmra.mxu1 %vm261_vm1, %v801_v3  ;;  %v806_v8 = vld [vmem:[%s139_s17 + $0x48] sm:$0xff]  ;;  %v807_v12 = vld [vmem:[%s139_s17 + $0x50] sm:$0xff] }
  0x11   : > { %v809_v5 = vld [vmem:[%s139_s17 + $0x60] sm:$0xff]  ;;  %787 = vmatmul.msk.bf16.vlgmr.msra.gmra.mxu2 %vm261_vm1, %v805_v4  ;;  %v810_v9 = vld [vmem:[%s139_s17 + $0x68] sm:$0xff]  ;;  %v811_v13 = vld [vmem:[%s139_s17 + $0x70] sm:$0xff] }
  0x12   : > { %791 = vmatmul.msk.bf16.vlgmr.msra.gmra.mxu3 %vm261_vm1, %v809_v5  ;;  %v800_v14 = vld [vmem:[%s139_s17 + $0x18] sm:$0xff] }
  0x13   : > { %v804_v15 = vld [vmem:[%s139_s17 + $0x38] sm:$0xff] }
  0x14   : > { %v808_v16 = vld [vmem:[%s139_s17 + $0x58] sm:$0xff] }
  0x15   : > { %v812_v17 = vld [vmem:[%s139_s17 + $0x78] sm:$0xff] }
  0x20   : > { %780 = vmatmul.msk.bf16.gmra.mxu0 %vm261_vm1, %v798_v6  ;;  %784 = vmatmul.msk.bf16.gmra.mxu1 %vm261_vm1, %v802_v7 }
  0x21   : > { %788 = vmatmul.msk.bf16.gmra.mxu2 %vm261_vm1, %v806_v8 }
  0x22   : > { %792 = vmatmul.msk.bf16.gmra.mxu3 %vm261_vm1, %v810_v9 }
  0x30   : > { %781 = vmatmul.msk.bf16.gmra.mxu0 %vm261_vm1, %v799_v10  ;;  %785 = vmatmul.msk.bf16.gmra.mxu1 %vm261_vm1, %v803_v11 }
  0x31   : > { %789 = vmatmul.msk.bf16.gmra.mxu2 %vm261_vm1, %v807_v12 }
  0x32   : > { %793 = vmatmul.msk.bf16.gmra.mxu3 %vm261_vm1, %v811_v13 }
  0x40   : > { %782 = vmatmul.msk.bf16.gmra.mxu0 %vm261_vm1, %v800_v14  ;;  %786 = vmatmul.msk.bf16.gmra.mxu1 %vm261_vm1, %v804_v15 }
  0x41   : > { %790 = vmatmul.msk.bf16.gmra.mxu2 %vm261_vm1, %v808_v16 }
  0x42   : > { %794 = vmatmul.msk.bf16.gmra.mxu3 %vm261_vm1, %v812_v17 }
  0x8d   : > { %v979_v18 = vpop.f32.mrf.mxu0  ;;  %v981_v19 = vpop.f32.mrf.mxu1 }
  0x94   : > { %v989_v23 = vpop.f32.mrf.mxu2 }
  0x95   : > { %v983_v20 = vpop.f32.mrf.mxu0  ;;  %v985_v21 = vpop.f32.mrf.mxu1 }
  0x96   : > { %v1001_v29 = vpop.f32.mrf.mxu3  ;;  %v403_v34 = vadd.f32 %v983_v20, %v979_v18 }
  0x9c   : > { %v995_v26 = vpop.f32.mrf.mxu2 }
  0x9d   : > { %v987_v22 = vpop.f32.mrf.mxu0  ;;  %v991_v24 = vpop.f32.mrf.mxu1 }
  0x9e   : > { %v1009_v33 = vpop.f32.mrf.mxu3  ;;  %v404_v35 = vadd.f32 %v403_v34, %v987_v22 }
  0xa4   : > { %v1003_v30 = vpop.f32.mrf.mxu2 }
  0xa5   : > { %v993_v25 = vpop.f32.mrf.mxu0  ;;  %v999_v28 = vpop.f32.mrf.mxu1 }
  0xa6   : > { %v405_v38 = vadd.f32 %v404_v35, %v993_v25  ;;  %v1023_v42 = vpop.f32.mrf.mxu3 }
  0xac   : > { %v1016_v37 = vpop.f32.mrf.mxu2 }
  0xad   : > { %v997_v27 = vpop.f32.mrf.mxu0  ;;  %v1007_v32 = vpop.f32.mrf.mxu1 }
  0xae   : > { %v406_v39 = vadd.f32 %v405_v38, %v997_v27  ;;  %v1033_v51 = vpop.f32.mrf.mxu3 }
  0xb4   : > { %v1026_v46 = vpop.f32.mrf.mxu2 }
  0xb5   : > { %v1005_v31 = vpop.f32.mrf.mxu0  ;;  %v1020_v40 = vpop.f32.mrf.mxu1 }
  0xb6   : > { %v407_v41 = vadd.f32 %v406_v39, %v1005_v31  ;;  %v1044_v59 = vpop.f32.mrf.mxu3 }
  0xbc   : > { %v1037_v54 = vpop.f32.mrf.mxu2 }
  0xbd   : > { %v1014_v36 = vpop.f32.mrf.mxu0  ;;  %v1030_v49 = vpop.f32.mrf.mxu1 }
  0xbe   : > { %v408_v43 = vadd.f32 %v407_v41, %v1014_v36  ;;  %v1053_v2 = vpop.f32.mrf.mxu3 }
  0xc4   : > { %v1048_v62 = vpop.f32.mrf.mxu2 }
  0xc5   : > { %v340_v44 = vpop.f32.mrf.mxu0  ;;  %v1041_v57 = vpop.f32.mrf.mxu1 }
  0xc6   : > { %v409_v45 = vadd.f32 %v408_v43, %v340_v44  ;;  %v1062_v9 = vpop.f32.mrf.mxu3 }
  0xc8   : > { %v410_v47 = vadd.f32 %v409_v45, %v981_v19 }
  0xca   : > { %v411_v48 = vadd.f32 %v410_v47, %v985_v21 }
  0xcc   : > { %v412_v50 = vadd.f32 %v411_v48, %v991_v24  ;;  %v1057_v5 = vpop.f32.mrf.mxu2 }
  0xce   : > { %v413_v52 = vadd.f32 %v412_v50, %v999_v28  ;;  %v1069_v15 = vpop.f32.mrf.mxu3 }
  0xd0   : > { %v414_v53 = vadd.f32 %v413_v52, %v1007_v32 }
  0xd2   : > { %v415_v55 = vadd.f32 %v414_v53, %v1020_v40 }
  0xd4   : > { %v416_v56 = vadd.f32 %v415_v55, %v1030_v49 }
  0xd6   : > { %v417_v58 = vadd.f32 %v416_v56, %v1041_v57 }
  0xd8   : > { %v418_v60 = vadd.f32 %v417_v58, %v989_v23 }
  0xda   : > { %v419_v61 = vadd.f32 %v418_v60, %v995_v26 }
  0xdc   : > { %v420_v63 = vadd.f32 %v419_v61, %v1003_v30 }
  0xde   : > { %v421_v0 = vadd.f32 %v420_v63, %v1016_v37 }
  0xe0   : > { %v422_v1 = vadd.f32 %v421_v0, %v1026_v46 }
  0xe2   : > { %v423_v3 = vadd.f32 %v422_v1, %v1037_v54 }
  0xe4   : > { %v424_v4 = vadd.f32 %v423_v3, %v1048_v62 }
  0xe6   : > { %v425_v6 = vadd.f32 %v424_v4, %v1057_v5 }
  0xe8   : > { %v426_v7 = vadd.f32 %v425_v6, %v1001_v29 }
  0xea   : > { %v427_v8 = vadd.f32 %v426_v7, %v1009_v33 }
  0xec   : > { %v428_v10 = vadd.f32 %v427_v8, %v1023_v42 }
  0xee   : > { %v429_v11 = vadd.f32 %v428_v10, %v1033_v51 }
  0xf0   : > { %v430_v12 = vadd.f32 %v429_v11, %v1044_v59 }
  0xf2   : > { %v431_v13 = vadd.f32 %v430_v12, %v1053_v2 }
  0xf4   : > { %v432_v14 = vadd.f32 %v431_v13, %v1062_v9 }
  0xf6   : > { %v433_v16 = vadd.f32 %v432_v14, %v1069_v15 }
  0xf8   : > { %v434_v17 = vrot.slane %v433_v16, 4 }
  0xfa   : > { %v435_v34 = vadd.f32 %v434_v17, %v433_v16 }
  0xfc   : > { %v436_v35 = vrot.slane %v435_v34, 2 }
  0xfe   : > { %v437_v38 = vadd.f32 %v436_v35, %v435_v34 }
 0x100   : > { %v438_v39 = vrot.slane %v437_v38, 1 }
 0x102   : > { %v439_v41 = vadd.f32 %v438_v39, %v437_v38 }
 0x104   : > { %v1072_v43 = vmul.f32 0.00390625, %v439_v41 }
 0x106   : > { %v1076_v45 = vsub.f32 %v979_v18, %v1072_v43  ;;  %v1080_v47 = vsub.f32 %v983_v20, %v1072_v43  ;;  %v1084_v48 = vsub.f32 %v987_v22, %v1072_v43  ;;  %v1092_v53 = vsub.f32 %v993_v25, %v1072_v43 }
 0x107   : > { %v1096_v18 = vsub.f32 %v997_v27, %v1072_v43  ;;  %v1102_v22 = vsub.f32 %v1005_v31, %v1072_v43  ;;  %v1108_v25 = vsub.f32 %v1014_v36, %v1072_v43  ;;  %v1113_v61 = vsub.f32 %v340_v44, %v1072_v43 }
 0x108   : > { %v473_v50 = vmul.f32 %v1076_v45, %v1076_v45  ;;  %v474_v52 = vmul.f32 %v1080_v47, %v1080_v47  ;;  %v475_v20 = vmul.f32 %v1084_v48, %v1084_v48  ;;  %v476_v56 = vmul.f32 %v1092_v53, %v1092_v53 }
 0x109   : > { %v477_v27 = vmul.f32 %v1096_v18, %v1096_v18  ;;  %v478_v63 = vmul.f32 %v1102_v22, %v1102_v22  ;;  %v1119_v0 = vsub.f32 %v981_v19, %v1072_v43  ;;  %v479_v1 = vmul.f32 %v1108_v25, %v1108_v25 }
 0x10a   : > { %v505_v55 = vadd.f32 %v474_v52, %v473_v50  ;;  %v1125_v3 = vsub.f32 %v985_v21, %v1072_v43  ;;  %v480_v44 = vmul.f32 %v1113_v61, %v1113_v61  ;;  %v1131_v6 = vsub.f32 %v991_v24, %v1072_v43 }
 0x10b   : > { %v481_v19 = vmul.f32 %v1119_v0, %v1119_v0  ;;  %v1137_v8 = vsub.f32 %v999_v28, %v1072_v43  ;;  %v1143_v11 = vsub.f32 %v1007_v32, %v1072_v43  ;;  %v1149_v13 = vsub.f32 %v1020_v40, %v1072_v43 }
 0x10c   : > { %v506_v58 = vadd.f32 %v505_v55, %v475_v20  ;;  %v482_v21 = vmul.f32 %v1125_v3, %v1125_v3  ;;  %v483_v24 = vmul.f32 %v1131_v6, %v1131_v6  ;;  %v1155_v16 = vsub.f32 %v1030_v49, %v1072_v43 }
 0x10d   : > { %v484_v28 = vmul.f32 %v1137_v8, %v1137_v8  ;;  %v485_v32 = vmul.f32 %v1143_v11, %v1143_v11  ;;  %v1161_v34 = vsub.f32 %v1041_v57, %v1072_v43  ;;  %v486_v40 = vmul.f32 %v1149_v13, %v1149_v13 }
 0x10e   : > { %v507_v60 = vadd.f32 %v506_v58, %v476_v56  ;;  %v1167_v38 = vsub.f32 %v989_v23, %v1072_v43  ;;  %v487_v49 = vmul.f32 %v1155_v16, %v1155_v16  ;;  %v1173_v41 = vsub.f32 %v995_v26, %v1072_v43 }
 0x10f   : > { %v488_v57 = vmul.f32 %v1161_v34, %v1161_v34  ;;  %v1179_v52 = vsub.f32 %v1003_v30, %v1072_v43  ;;  %v1185_v55 = vsub.f32 %v1016_v37, %v1072_v43  ;;  %v1191_v58 = vsub.f32 %v1026_v46, %v1072_v43 }
 0x110   : > { %v508_v31 = vadd.f32 %v507_v60, %v477_v27  ;;  %v489_v23 = vmul.f32 %v1167_v38, %v1167_v38  ;;  %v490_v26 = vmul.f32 %v1173_v41, %v1173_v41  ;;  %v1197_v60 = vsub.f32 %v1037_v54, %v1072_v43 }
 0x111   : > { %v491_v30 = vmul.f32 %v1179_v52, %v1179_v52  ;;  %v492_v37 = vmul.f32 %v1185_v55, %v1185_v55  ;;  %v493_v46 = vmul.f32 %v1191_v58, %v1191_v58 }
 0x112   : > { %v509_v36 = vadd.f32 %v508_v31, %v478_v63  ;;  %v1203_v31 = vsub.f32 %v1048_v62, %v1072_v43  ;;  %v494_v54 = vmul.f32 %v1197_v60, %v1197_v60 }
 0x114   : > { %v510_v4 = vadd.f32 %v509_v36, %v479_v1  ;;  %v1209_v36 = vsub.f32 %v1057_v5, %v1072_v43  ;;  %v1223_v5 = vsub.f32 %v1023_v42, %v1072_v43  ;;  %v1237_v42 = vsub.f32 %v1053_v2, %v1072_v43 }
 0x116   : > { %v511_v7 = vadd.f32 %v510_v4, %v480_v44  ;;  %v465_v4 = vsub.f32 %v1001_v29, %v1072_v43  ;;  %v1227_v29 = vsub.f32 %v1033_v51, %v1072_v43  ;;  %v471_v51 = vsub.f32 %v1062_v9, %v1072_v43 }
 0x118   : > { %v512_v10 = vadd.f32 %v511_v7, %v481_v19  ;;  %v495_v19 = vmul.f32 %v1203_v31, %v1203_v31  ;;  %v466_v7 = vsub.f32 %v1009_v33, %v1072_v43  ;;  %v499_v33 = vmul.f32 %v1223_v5, %v1223_v5 }
 0x119   : > { %v503_v2 = vmul.f32 %v471_v51, %v471_v51 }
 0x11a   : > { %v513_v12 = vadd.f32 %v512_v10, %v482_v21  ;;  %v496_v21 = vmul.f32 %v1209_v36, %v1209_v36 }
 0x11c   : > { %v514_v14 = vadd.f32 %v513_v12, %v483_v24  ;;  %v497_v24 = vmul.f32 %v465_v4, %v465_v4 }
 0x11e   : > { %v515_v17 = vadd.f32 %v514_v14, %v484_v28  ;;  %v498_v28 = vmul.f32 %v466_v7, %v466_v7 }
 0x120   : > { %v516_v35 = vadd.f32 %v515_v17, %v485_v32  ;;  %v1231_v32 = vsub.f32 %v1044_v59, %v1072_v43 }
 0x122   : > { %v517_v39 = vadd.f32 %v516_v35, %v486_v40  ;;  %v500_v40 = vmul.f32 %v1227_v29, %v1227_v29 }
 0x124   : > { %v518_v50 = vadd.f32 %v517_v39, %v487_v49  ;;  %v501_v49 = vmul.f32 %v1231_v32, %v1231_v32  ;;  %v472_v39 = vsub.f32 %v1069_v15, %v1072_v43 }
 0x126   : > { %v519_v20 = vadd.f32 %v518_v50, %v488_v57  ;;  %v502_v57 = vmul.f32 %v1237_v42, %v1237_v42 }
 0x128   : > { %v520_v56 = vadd.f32 %v519_v20, %v489_v23  ;;  %v504_v20 = vmul.f32 %v472_v39, %v472_v39 }
 0x12a   : > { %v521_v27 = vadd.f32 %v520_v56, %v490_v26 }
 0x12c   : > { %v522_v63 = vadd.f32 %v521_v27, %v491_v30 }
 0x12e   : > { %v523_v1 = vadd.f32 %v522_v63, %v492_v37 }
 0x130   : > { %v524_v44 = vadd.f32 %v523_v1, %v493_v46 }
 0x132   : > { %v525_v62 = vadd.f32 %v524_v44, %v494_v54 }
 0x134   : > { %v526_v10 = vadd.f32 %v525_v62, %v495_v19 }
 0x136   : > { %v527_v12 = vadd.f32 %v526_v10, %v496_v21 }
 0x138   : > { %v528_v14 = vadd.f32 %v527_v12, %v497_v24 }
 0x13a   : > { %v529_v17 = vadd.f32 %v528_v14, %v498_v28 }
 0x13c   : > { %v530_v35 = vadd.f32 %v529_v17, %v499_v33 }
 0x13e   : > { %v531_v59 = vadd.f32 %v530_v35, %v500_v40 }
 0x140   : > { %v532_v50 = vadd.f32 %v531_v59, %v501_v49 }
 0x142   : > { %v533_v23 = vadd.f32 %v532_v50, %v502_v57 }
 0x144   : > { %v534_v26 = vadd.f32 %v533_v23, %v503_v2 }
 0x146   : > { %v535_v56 = vadd.f32 %v534_v26, %v504_v20 }
 0x148   : > { %v536_v30 = vrot.slane %v535_v56, 4 }
 0x14a   : > { %v537_v27 = vadd.f32 %v536_v30, %v535_v56 }
 0x14c   : > { %v538_v37 = vrot.slane %v537_v27, 2 }
 0x14e   : > { %v539_v9 = vadd.f32 %v538_v37, %v537_v27 }
 0x150   : > { %v540_v63 = vrot.slane %v539_v9, 1 }
 0x152   : > { %v541_v46 = vadd.f32 %v540_v63, %v539_v9 }
 0x154   : > { %v542_v1 = vmul.f32 0.00390625, %v541_v46 }
 0x156   : > { %v543_v54 = vadd.f32 1e-05, %v542_v1 }
 0x158   : > { %919 = vrsqrt.f32 %v543_v54  ;;  %vm550_vm3 = vweird.f32 %v543_v54 }
 0x15e   : > { %v920_v44 = vpop.eup %919 }
 0x15f   : > { %v545_v15 = vmul.f32 %v920_v44, %v543_v54  ;;  %vm551_vm2 = vweird.f32 %v920_v44 }
 0x160   : > { %vm552_vm4 = vmor %vm550_vm3, %vm551_vm2 }
 0x161   : > { %v546_v43 = vmul.f32 %v920_v44, %v545_v15 }
 0x163   : > { %v547_v19 = vmul.f32 0.5, %v546_v43 }
 0x165   : > { %v548_v62 = vsub.f32 1.5, %v547_v19 }
 0x167   : > { %v549_v21 = vmul.f32 %v920_v44, %v548_v62 }
 0x169   : > { %v553_v10 = vsel %vm552_vm4, %v920_v44, %v549_v21 }
 0x16a   : > { %v554_v24 = vmul.f32 %v553_v10, %v1076_v45  ;;  %v555_v12 = vmul.f32 %v553_v10, %v1080_v47  ;;  %v556_v28 = vmul.f32 %v553_v10, %v1084_v48  ;;  %v557_v14 = vmul.f32 %v553_v10, %v1092_v53 }
 0x16b   : > { %v558_v33 = vmul.f32 %v553_v10, %v1096_v18  ;;  %v559_v17 = vmul.f32 %v553_v10, %v1102_v22  ;;  %v560_v40 = vmul.f32 %v553_v10, %v1108_v25  ;;  %v561_v35 = vmul.f32 %v553_v10, %v1113_v61 }
 0x16c   : > { %v562_v49 = vmul.f32 %v553_v10, %v1119_v0  ;;  %v563_v59 = vmul.f32 %v553_v10, %v1125_v3  ;;  %v564_v45 = vmul.f32 %v553_v10, %v1131_v6  ;;  %v565_v47 = vmul.f32 %v553_v10, %v1137_v8 }
 0x16d   : > { %v578_v57 = vmul.f32 %v553_v10, %v465_v4  ;;  %v566_v48 = vmul.f32 %v553_v10, %v1143_v11  ;;  %v579_v53 = vmul.f32 %v553_v10, %v466_v7  ;;  %v584_v18 = vmul.f32 %v553_v10, %v471_v51 }
 0x16e   : > { %v585_v22 = vmul.f32 %v553_v10, %v472_v39  ;;  %v567_v25 = vmul.f32 %v553_v10, %v1149_v13  ;;  %v816_v61 = vpack.c.bf16 %v555_v12, %v554_v24  ;;  %v821_v0 = vpack.c.bf16 %v557_v14, %v556_v28 }
 0x16f   : > { %v826_v3 = vpack.c.bf16 %v559_v17, %v558_v33  ;;  %v568_v6 = vmul.f32 %v553_v10, %v1155_v16  ;;  %v569_v8 = vmul.f32 %v553_v10, %v1161_v34  ;;  %v831_v4 = vpack.c.bf16 %v561_v35, %v560_v40 }
 0x170   : > { %v570_v50 = vmul.f32 %v553_v10, %v1167_v38  ;;  %v571_v11 = vmul.f32 %v553_v10, %v1173_v41  ;;  %v572_v7 = vmul.f32 %v553_v10, %v1179_v52  ;;  %817 = vst [vmem:[%s1266_s20] sm:$0xff] %v816_v61   ;;  %v836_v51 = vpack.c.bf16 %v563_v59, %v562_v49 }
 0x171   : > { %v573_v13 = vmul.f32 %v553_v10, %v1185_v55  ;;  %893 = vst [vmem:[%s1266_s20 + $0x8] sm:$0xff] %v821_v0   ;;  %v841_v39 = vpack.c.bf16 %v565_v47, %v564_v45  ;;  %v876_v2 = vpack.c.bf16 %v579_v53, %v578_v57  ;;  %v891_v16 = vpack.c.bf16 %v585_v22, %v584_v18 }
 0x172   : > { %v574_v34 = vmul.f32 %v553_v10, %v1191_v58  ;;  %v575_v38 = vmul.f32 %v553_v10, %v1197_v60  ;;  %894 = vst [vmem:[%s1266_s20 + $0x10] sm:$0xff] %v826_v3   ;;  %v846_v41 = vpack.c.bf16 %v567_v25, %v566_v48  ;;  %v576_v52 = vmul.f32 %v553_v10, %v1203_v31 }
 0x173   : > { %v577_v23 = vmul.f32 %v553_v10, %v1209_v36  ;;  %895 = vst [vmem:[%s1266_s20 + $0x18] sm:$0xff] %v831_v4   ;;  %v851_v55 = vpack.c.bf16 %v569_v8, %v568_v6  ;;  %v856_v20 = vpack.c.bf16 %v571_v11, %v570_v50  ;;  %v580_v58 = vmul.f32 %v553_v10, %v1223_v5 }
 0x174   : > { %896 = vst [vmem:[%s1266_s20 + $0x20] sm:$0xff] %v836_v51   ;;  %v581_v60 = vmul.f32 %v553_v10, %v1227_v29  ;;  %v861_v26 = vpack.c.bf16 %v573_v13, %v572_v7  ;;  %v582_v31 = vmul.f32 %v553_v10, %v1231_v32  ;;  %v583_v36 = vmul.f32 %v553_v10, %v1237_v42 }
 0x175   : > { %897 = vst [vmem:[%s1266_s20 + $0x28] sm:$0xff] %v841_v39   ;;  %v866_v56 = vpack.c.bf16 %v575_v38, %v574_v34  ;;  %v871_v30 = vpack.c.bf16 %v577_v23, %v576_v52 }
 0x176   : > { %898 = vst [vmem:[%s1266_s20 + $0x30] sm:$0xff] %v846_v41   ;;  %v881_v27 = vpack.c.bf16 %v581_v60, %v580_v58  ;;  %v886_v5 = vpack.c.bf16 %v583_v36, %v582_v31 }
 0x177   : > { %899 = vst [vmem:[%s1266_s20 + $0x38] sm:$0xff] %v851_v55  }
 0x178   : > { %900 = vst [vmem:[%s1266_s20 + $0x40] sm:$0xff] %v856_v20  }
 0x179   : > { %901 = vst [vmem:[%s1266_s20 + $0x48] sm:$0xff] %v861_v26  }
 0x17a   : > { %902 = vst [vmem:[%s1266_s20 + $0x50] sm:$0xff] %v866_v56  }
 0x17b   : > { %903 = vst [vmem:[%s1266_s20 + $0x58] sm:$0xff] %v871_v30  }
 0x17c   : > { %904 = vst [vmem:[%s1266_s20 + $0x60] sm:$0xff] %v876_v2  }
 0x17d   : > { %905 = vst [vmem:[%s1266_s20 + $0x68] sm:$0xff] %v881_v27  }
 0x17e   : > { %906 = vst [vmem:[%s1266_s20 + $0x70] sm:$0xff] %v886_v5  }
 0x17f   : > { %907 = vst [vmem:[%s1266_s20 + $0x78] sm:$0xff] %v891_v16  }
 0x180 PF: > { %s12_s9 = sadd.s32 1, %s927_s9  }
 0x181   : > { %p9_p4 = scmp.ge.s32.totalorder %s12_s9, 4  }
 0x183   :  { %11 = sbr.rel (!%p9_p4) target bundleno = 1 (0x1), region = 58 }

// kernel: net_forward.27
= control target key start
LH: loop header
LB: loop body
LE: loop exit
PB: predicated region body
PF: predicated region fallthrough
CT: control target
= control target key end

     0   :  { %s1946_s9 = smov 0   ;;  %s1948_s10 = smov 0   ;;  %s2917_s0 = inlined_call_operand.vmem [shape: bf16[2,512,36], index: 0, kind: input, shape index: {}]   ;;  %s2918_s1 = inlined_call_operand.vmem [shape: bf16[2,36,128], index: 1, kind: input, shape index: {}]   ;;  %s2919_s2 = inlined_call_operand.vmem [shape: bf16[512,128], index: 2, kind: output, shape index: {}]  }
   0x1   :  { %s1950_s11 = smov 0  }
   0x2 LB: > { %s1515_s12 = sadd.s32 4294967295, %s1929_s11   ;;  %s1963_s13 = sadd.s32 1, %s1929_s11   ;;  %s1929_s11 = sphi %s1950_s11, %s3055_s11   ;;  %s1925_s10 = sphi %s1948_s10, %s3054_s10   ;;  %s1921_s9 = sphi %s1946_s9, %s3053_s9  }
   0x3   : > { %s16_s14 = ssub.s32 %s1929_s11, %s1963_s13  ;;  %s19_s15 = sadd.s32 1, %s1925_s10 }
   0x4   : > { %p17_p0 = scmp.eq.s32.totalorder %s16_s14, 0  ;;  %p26_p1 = scmp.ne.s32.totalorder %s1925_s10, %s1921_s9 }
   0x5   : > { %p27_p2 = scmp.eq.s32.totalorder %s1929_s11, 0  ;;  %p1518_p4 = scmp.ge.s32.totalorder %s1929_s11, 2 }
   0x6   : > { %s1972_s16 = scalar_select %p17_p0, %s1925_s10, %s19_s15  }
   0x7   : > { %p28_p3 = por %p27_p2, %p26_p1  ;;  %102 = sbr.rel (%p1518_p4) target bundleno = 48 (0x30), region = 20 }
   0xc   : > { %105 = sbr.rel (!%p28_p3) target bundleno = 48 (0x30), region = 24  ;;  %s107_s17 = sand.u32 (%p28_p3), 1, %s1925_s10  }
   0xd   : > { %s1741_s18 = sshll.u32 (%p28_p3), %s1929_s11, 7  ;;  %s1519_s19 = sshll.u32 (%p28_p3), %s107_s17, 8 }
   0xe   : > { %s1980_s22 = scalar_lea.vmem (%p28_p3), %s2917_s0, %s1741_s18  ;;  %s1985_s23 = scalar_lea.vmem (%p28_p3), [#allocation2], %s1519_s19 }
   0xf   : > { %v129_v0 = vld [vmem:[%s1980_s22] sm:$0xff] (%p28_p3)   ;;  %v133_v1 = vld [vmem:[%s1980_s22 + $0x8] sm:$0xff] (%p28_p3)   ;;  %v137_v2 = vld [vmem:[%s1980_s22 + $0x10] sm:$0xff] (%p28_p3)  }
  0x10   : > { %130 = vst [vmem:[%s1985_s23] sm:$0xff] (%p28_p3), %v129_v0   ;;  %v141_v3 = vld [vmem:[%s1980_s22 + $0x18] sm:$0xff] (%p28_p3)   ;;  %v145_v4 = vld [vmem:[%s1980_s22 + $0x20] sm:$0xff] (%p28_p3)   ;;  %v149_v5 = vld [vmem:[%s1980_s22 + $0x28] sm:$0xff] (%p28_p3)  }
  0x11   : > { %134 = vst [vmem:[%s1985_s23 + $0x8] sm:$0xff] %v133_v1   ;;  %v153_v6 = vld [vmem:[%s1980_s22 + $0x30] sm:$0xff]   ;;  %v157_v7 = vld [vmem:[%s1980_s22 + $0x38] sm:$0xff]   ;;  %v161_v8 = vld [vmem:[%s1980_s22 + $0x40] sm:$0xff]  }
  0x12   : > { %138 = vst [vmem:[%s1985_s23 + $0x10] sm:$0xff] %v137_v2   ;;  %v165_v9 = vld [vmem:[%s1980_s22 + $0x48] sm:$0xff]   ;;  %v169_v10 = vld [vmem:[%s1980_s22 + $0x50] sm:$0xff]   ;;  %v173_v11 = vld [vmem:[%s1980_s22 + $0x58] sm:$0xff]  }
  0x13   : > { %142 = vst [vmem:[%s1985_s23 + $0x18] sm:$0xff] %v141_v3   ;;  %v177_v12 = vld [vmem:[%s1980_s22 + $0x60] sm:$0xff]   ;;  %v181_v13 = vld [vmem:[%s1980_s22 + $0x68] sm:$0xff]   ;;  %v185_v14 = vld [vmem:[%s1980_s22 + $0x70] sm:$0xff]  }
  0x14   : > { %146 = vst [vmem:[%s1985_s23 + $0x20] sm:$0xff] %v145_v4   ;;  %v189_v15 = vld [vmem:[%s1980_s22 + $0x78] sm:$0xff]   ;;  %v193_v16 = vld [vmem:[%s1980_s22 + $0x100] sm:$0xff]   ;;  %v197_v17 = vld [vmem:[%s1980_s22 + $0x108] sm:$0xff]  }
  0x15   : > { %150 = vst [vmem:[%s1985_s23 + $0x28] sm:$0xff] %v149_v5   ;;  %v201_v18 = vld [vmem:[%s1980_s22 + $0x110] sm:$0xff]   ;;  %v205_v19 = vld [vmem:[%s1980_s22 + $0x118] sm:$0xff]   ;;  %v209_v20 = vld [vmem:[%s1980_s22 + $0x120] sm:$0xff]  }
  0x16   : > { %154 = vst [vmem:[%s1985_s23 + $0x30] sm:$0xff] %v153_v6   ;;  %v213_v21 = vld [vmem:[%s1980_s22 + $0x128] sm:$0xff]   ;;  %v217_v22 = vld [vmem:[%s1980_s22 + $0x130] sm:$0xff]   ;;  %v221_v23 = vld [vmem:[%s1980_s22 + $0x138] sm:$0xff]  }
  0x17   : > { %158 = vst [vmem:[%s1985_s23 + $0x38] sm:$0xff] %v157_v7   ;;  %v225_v24 = vld [vmem:[%s1980_s22 + $0x140] sm:$0xff]   ;;  %v229_v25 = vld [vmem:[%s1980_s22 + $0x148] sm:$0xff]   ;;  %v233_v26 = vld [vmem:[%s1980_s22 + $0x150] sm:$0xff]  }
  0x18   : > { %162 = vst [vmem:[%s1985_s23 + $0x40] sm:$0xff] %v161_v8   ;;  %v237_v27 = vld [vmem:[%s1980_s22 + $0x158] sm:$0xff]   ;;  %v241_v28 = vld [vmem:[%s1980_s22 + $0x160] sm:$0xff]   ;;  %v245_v29 = vld [vmem:[%s1980_s22 + $0x168] sm:$0xff]  }
  0x19   : > { %166 = vst [vmem:[%s1985_s23 + $0x48] sm:$0xff] %v165_v9   ;;  %v249_v30 = vld [vmem:[%s1980_s22 + $0x170] sm:$0xff]   ;;  %v253_v31 = vld [vmem:[%s1980_s22 + $0x178] sm:$0xff]  }
  0x1a   : > { %170 = vst [vmem:[%s1985_s23 + $0x50] sm:$0xff] %v169_v10  }
  0x1b   : > { %174 = vst [vmem:[%s1985_s23 + $0x58] sm:$0xff] %v173_v11  }
  0x1c   : > { %178 = vst [vmem:[%s1985_s23 + $0x60] sm:$0xff] %v177_v12  }
  0x1d   : > { %182 = vst [vmem:[%s1985_s23 + $0x68] sm:$0xff] %v181_v13  }
  0x1e   : > { %186 = vst [vmem:[%s1985_s23 + $0x70] sm:$0xff] %v185_v14  }
  0x1f   : > { %190 = vst [vmem:[%s1985_s23 + $0x78] sm:$0xff] %v189_v15  }
  0x20   : > { %194 = vst [vmem:[%s1985_s23 + $0x80] sm:$0xff] %v193_v16  }
  0x21   : > { %198 = vst [vmem:[%s1985_s23 + $0x88] sm:$0xff] %v197_v17  }
  0x22   : > { %202 = vst [vmem:[%s1985_s23 + $0x90] sm:$0xff] %v201_v18  }
  0x23   : > { %206 = vst [vmem:[%s1985_s23 + $0x98] sm:$0xff] %v205_v19  }
  0x24   : > { %210 = vst [vmem:[%s1985_s23 + $0xa0] sm:$0xff] %v209_v20  }
  0x25   : > { %214 = vst [vmem:[%s1985_s23 + $0xa8] sm:$0xff] %v213_v21  }
  0x26   : > { %218 = vst [vmem:[%s1985_s23 + $0xb0] sm:$0xff] %v217_v22  }
  0x27   : > { %222 = vst [vmem:[%s1985_s23 + $0xb8] sm:$0xff] %v221_v23  }
  0x28   : > { %226 = vst [vmem:[%s1985_s23 + $0xc0] sm:$0xff] %v225_v24  }
  0x29   : > { %230 = vst [vmem:[%s1985_s23 + $0xc8] sm:$0xff] %v229_v25  }
  0x2a   : > { %234 = vst [vmem:[%s1985_s23 + $0xd0] sm:$0xff] %v233_v26  }
  0x2b   : > { %238 = vst [vmem:[%s1985_s23 + $0xd8] sm:$0xff] %v237_v27  }
  0x2c   : > { %242 = vst [vmem:[%s1985_s23 + $0xe0] sm:$0xff] %v241_v28  }
  0x2d   : > { %246 = vst [vmem:[%s1985_s23 + $0xe8] sm:$0xff] %v245_v29  }
  0x2e   : > { %250 = vst [vmem:[%s1985_s23 + $0xf0] sm:$0xff] %v249_v30  }
  0x2f   : > { %254 = vst [vmem:[%s1985_s23 + $0xf8] sm:$0xff] %v253_v31  }
  0x30 PF: > { %p1522_p5 = scmp.ge.s32.totalorder %s1929_s11, 1  ;;  %p407_p6 = scmp.lt.s32.totalorder %s1929_s11, 3 }
  0x32   : > { %p408_p7 = pnand %p1522_p5, %p407_p6 }
  0x34   : > { %411 = sbr.rel (%p408_p7) target bundleno = 518 (0x206), region = 65 }
  0x39   : > { %v479_v32 = vld [vmem:[%s2918_s1 + $0x10] sm:$0x3]  ;;  %v1650_v33 = vld [vmem:[%s2918_s1 + $0x24] sm:$0x3]  ;;  %vm624_vm0 = vcmask 1041408   ;;  %s414_s28 = sand.u32 1, %s1921_s9  }
  0x3a   : > { %v569_v34 = vunpack.c.l.b16 %v479_v32  ;;  %v1028_v35 = vunpack.c.l.b16 %v1650_v33  ;;  %v1759_v40 = vld [vmem:[%s2918_s1 + $0x8] sm:$0xff]  ;;  %v1777_v41 = vld [vmem:[%s2918_s1 + $0x1c] sm:$0xff]  ;;  %s1523_s5 = sshll.u32 %s414_s28, 8  ;;  %v1776_v43 = vld [vmem:[%s2918_s1 + $0x14] sm:$0xff]  ;;  %vm575_vm1 = vcmask 293888   ;;  %s2817_s15 = sshll.u32 %s1515_s12, 5 }
  0x3b   : > { %v1758_v42 = vld [vmem:[%s2918_s1] sm:$0xff]  ;;  %s2069_s14 = scalar_lea.vmem [#allocation2], %s1523_s5  ;;  %p437_p8 = scmp.lt.s32.totalorder %s2817_s15, 63 }
  0x3c   : > { %v572_v36 = vpack.c.b16 %v569_v34, %v569_v34  ;;  %v1031_v37 = vpack.c.b16 %v1028_v35, %v1028_v35  ;;  %v1742_v44 = vld [vmem:[%s2069_s14] sm:$0xff]  ;;  %v1743_v48 = vld [vmem:[%s2069_s14 + $0x8] sm:$0xff]  ;;  %v1744_v52 = vld [vmem:[%s2069_s14 + $0x10] sm:$0xff] }
  0x3d   : > { %v1760_v45 = vld [vmem:[%s2069_s14 + $0x80] sm:$0xff]  ;;  %v1761_v49 = vld [vmem:[%s2069_s14 + $0x88] sm:$0xff]  ;;  %v1762_v53 = vld [vmem:[%s2069_s14 + $0x90] sm:$0xff]  ;;  %s3057_s15 = smov (!%p437_p8, %s2817_s15), 63 }
  0x3e   : > { %v626_v38 = vsel %vm624_vm0, %v572_v36, 0  ;;  %v1083_v39 = vsel %vm624_vm0, %v1031_v37, 0  ;;  %v1750_v46 = vld [vmem:[%s2069_s14 + $0x40] sm:$0xff]  ;;  %v1751_v50 = vld [vmem:[%s2069_s14 + $0x48] sm:$0xff]  ;;  %v1752_v54 = vld [vmem:[%s2069_s14 + $0x50] sm:$0xff]  ;;  %s1525_s11 = sshll.u32 %s3057_s15, 2 }
  0x3f   : > { %633 = vmatpush.bf16.msra.mxu0 %v626_v38  ;;  %1090 = vmatpush.bf16.msra.mxu1 %v1083_v39  ;;  %v1768_v47 = vld [vmem:[%s2069_s14 + $0xc0] sm:$0xff]  ;;  %v1769_v51 = vld [vmem:[%s2069_s14 + $0xc8] sm:$0xff]  ;;  %v1770_v55 = vld [vmem:[%s2069_s14 + $0xd0] sm:$0xff]  ;;  %s2885_s18 = scalar_lea.vmem %s2919_s2, %s1525_s11 }
  0x40   : > { %1873 = vmatpush.bf16.msra.mxu2 %v626_v38  ;;  %1876 = vmatpush.bf16.msra.mxu3 %v1083_v39  ;;  %v1745_v56 = vld [vmem:[%s2069_s14 + $0x18] sm:$0xff]  ;;  %v1746_v60 = vld [vmem:[%s2069_s14 + $0x20] sm:$0xff]  ;;  %v1747_v0 = vld [vmem:[%s2069_s14 + $0x28] sm:$0xff] }
  0x41   : > { %v1763_v57 = vld [vmem:[%s2069_s14 + $0x98] sm:$0xff]  ;;  %v1764_v61 = vld [vmem:[%s2069_s14 + $0xa0] sm:$0xff]  ;;  %v1765_v1 = vld [vmem:[%s2069_s14 + $0xa8] sm:$0xff] }
  0x42   : > { %v1753_v58 = vld [vmem:[%s2069_s14 + $0x58] sm:$0xff]  ;;  %v1754_v62 = vld [vmem:[%s2069_s14 + $0x60] sm:$0xff]  ;;  %v1755_v2 = vld [vmem:[%s2069_s14 + $0x68] sm:$0xff] }
  0x43   : > { %634 = vmatpush.bf16.msra.mxu0 %v1759_v40  ;;  %1091 = vmatpush.bf16.msra.mxu1 %v1777_v41  ;;  %v1771_v59 = vld [vmem:[%s2069_s14 + $0xd8] sm:$0xff]  ;;  %v1772_v63 = vld [vmem:[%s2069_s14 + $0xe0] sm:$0xff]  ;;  %v1773_v3 = vld [vmem:[%s2069_s14 + $0xe8] sm:$0xff] }
  0x44   : > { %1874 = vmatpush.bf16.msra.mxu2 %v1759_v40  ;;  %1877 = vmatpush.bf16.msra.mxu3 %v1777_v41  ;;  %v1748_v4 = vld [vmem:[%s2069_s14 + $0x30] sm:$0xff]  ;;  %v1749_v8 = vld [vmem:[%s2069_s14 + $0x38] sm:$0xff] }
  0x45   : > { %v1766_v5 = vld [vmem:[%s2069_s14 + $0xb0] sm:$0xff]  ;;  %v1767_v9 = vld [vmem:[%s2069_s14 + $0xb8] sm:$0xff] }
  0x46   : > { %v1756_v6 = vld [vmem:[%s2069_s14 + $0x70] sm:$0xff]  ;;  %v1757_v10 = vld [vmem:[%s2069_s14 + $0x78] sm:$0xff] }
  0x47   : > { %635 = vmatpush.bf16.msra.mxu0 %v1758_v42  ;;  %1092 = vmatpush.bf16.msra.mxu1 %v1776_v43  ;;  %v1774_v7 = vld [vmem:[%s2069_s14 + $0xf0] sm:$0xff]  ;;  %v1775_v11 = vld [vmem:[%s2069_s14 + $0xf8] sm:$0xff] }
  0x48   : > { %1875 = vmatpush.bf16.msra.mxu2 %v1758_v42  ;;  %1878 = vmatpush.bf16.msra.mxu3 %v1776_v43 }
  0x4a   : > { %1598 = vmatmul.msk.bf16.vlgmr.msra.gmra.mxu0 %vm575_vm1, %v1742_v44  ;;  %1723 = vmatmul.msk.bf16.vlgmr.msra.gmra.mxu1 %vm575_vm1, %v1760_v45 }
  0x4b   : > { %1606 = vmatmul.msk.bf16.vlgmr.msra.gmra.mxu2 %vm575_vm1, %v1750_v46  ;;  %1731 = vmatmul.msk.bf16.vlgmr.msra.gmra.mxu3 %vm575_vm1, %v1768_v47 }
  0x5a   : > { %1599 = vmatmul.msk.bf16.gmra.mxu0 %vm575_vm1, %v1743_v48  ;;  %1724 = vmatmul.msk.bf16.gmra.mxu1 %vm575_vm1, %v1761_v49 }
  0x5b   : > { %1607 = vmatmul.msk.bf16.gmra.mxu2 %vm575_vm1, %v1751_v50  ;;  %1732 = vmatmul.msk.bf16.gmra.mxu3 %vm575_vm1, %v1769_v51 }
  0x6a   : > { %1600 = vmatmul.msk.bf16.gmra.mxu0 %vm575_vm1, %v1744_v52  ;;  %1725 = vmatmul.msk.bf16.gmra.mxu1 %vm575_vm1, %v1762_v53 }
  0x6b   : > { %1608 = vmatmul.msk.bf16.gmra.mxu2 %vm575_vm1, %v1752_v54  ;;  %1733 = vmatmul.msk.bf16.gmra.mxu3 %vm575_vm1, %v1770_v55 }
  0x7a   : > { %1601 = vmatmul.msk.bf16.gmra.mxu0 %vm575_vm1, %v1745_v56  ;;  %1726 = vmatmul.msk.bf16.gmra.mxu1 %vm575_vm1, %v1763_v57 }
  0x7b   : > { %1609 = vmatmul.msk.bf16.gmra.mxu2 %vm575_vm1, %v1753_v58  ;;  %1734 = vmatmul.msk.bf16.gmra.mxu3 %vm575_vm1, %v1771_v59 }
  0x8a   : > { %1602 = vmatmul.msk.bf16.gmra.mxu0 %vm575_vm1, %v1746_v60  ;;  %1727 = vmatmul.msk.bf16.gmra.mxu1 %vm575_vm1, %v1764_v61 }
  0x8b   : > { %1610 = vmatmul.msk.bf16.gmra.mxu2 %vm575_vm1, %v1754_v62  ;;  %1735 = vmatmul.msk.bf16.gmra.mxu3 %vm575_vm1, %v1772_v63 }
  0x9a   : > { %1603 = vmatmul.msk.bf16.gmra.mxu0 %vm575_vm1, %v1747_v0  ;;  %1728 = vmatmul.msk.bf16.gmra.mxu1 %vm575_vm1, %v1765_v1 }
  0x9b   : > { %1611 = vmatmul.msk.bf16.gmra.mxu2 %vm575_vm1, %v1755_v2  ;;  %1736 = vmatmul.msk.bf16.gmra.mxu3 %vm575_vm1, %v1773_v3 }
  0xaa   : > { %1604 = vmatmul.msk.bf16.gmra.mxu0 %vm575_vm1, %v1748_v4  ;;  %1729 = vmatmul.msk.bf16.gmra.mxu1 %vm575_vm1, %v1766_v5 }
  0xab   : > { %1612 = vmatmul.msk.bf16.gmra.mxu2 %vm575_vm1, %v1756_v6  ;;  %1737 = vmatmul.msk.bf16.gmra.mxu3 %vm575_vm1, %v1774_v7 }
  0xba   : > { %1605 = vmatmul.msk.bf16.gmra.mxu0 %vm575_vm1, %v1749_v8  ;;  %1730 = vmatmul.msk.bf16.gmra.mxu1 %vm575_vm1, %v1767_v9 }
  0xbb   : > { %1613 = vmatmul.msk.bf16.gmra.mxu2 %vm575_vm1, %v1757_v10  ;;  %1738 = vmatmul.msk.bf16.gmra.mxu3 %vm575_vm1, %v1775_v11 }
  0xc7   : > { %v2135_v12 = vpop.f32.mrf.mxu0  ;;  %v2137_v13 = vpop.f32.mrf.mxu1 }
  0xce   : > { %v2139_v14 = vpop.f32.mrf.mxu2  ;;  %v2145_v17 = vpop.f32.mrf.mxu3 }
  0xcf   : > { %v2141_v15 = vpop.f32.mrf.mxu0  ;;  %v2143_v16 = vpop.f32.mrf.mxu1 }
  0xd0   : > { %v717_v55 = vadd.f32 %v2141_v15, %v2135_v12  ;;  %v1174_v56 = vadd.f32 %v2143_v16, %v2137_v13 }
  0xd6   : > { %v2147_v18 = vpop.f32.mrf.mxu2  ;;  %v2153_v21 = vpop.f32.mrf.mxu3 }
  0xd7   : > { %v2149_v19 = vpop.f32.mrf.mxu0  ;;  %v2151_v20 = vpop.f32.mrf.mxu1 }
  0xd8   : > { %v718_v57 = vadd.f32 %v717_v55, %v2149_v19  ;;  %v1175_v58 = vadd.f32 %v1174_v56, %v2151_v20 }
  0xde   : > { %v2155_v22 = vpop.f32.mrf.mxu2  ;;  %v2161_v25 = vpop.f32.mrf.mxu3 }
  0xdf   : > { %v2157_v23 = vpop.f32.mrf.mxu0  ;;  %v2159_v24 = vpop.f32.mrf.mxu1 }
  0xe0   : > { %v719_v61 = vadd.f32 %v718_v57, %v2157_v23  ;;  %v1176_v62 = vadd.f32 %v1175_v58, %v2159_v24 }
  0xe6   : > { %v2163_v26 = vpop.f32.mrf.mxu2  ;;  %v2173_v31 = vpop.f32.mrf.mxu3 }
  0xe7   : > { %v2165_v27 = vpop.f32.mrf.mxu0  ;;  %v2167_v28 = vpop.f32.mrf.mxu1  ;;  %2957 = vst [vmem:[#allocation3_spill] sm:$0xff] %v2173_v31 }
  0xe8   : > { %v720_v63 = vadd.f32 %v719_v61, %v2165_v27  ;;  %v1177_v0 = vadd.f32 %v1176_v62, %v2167_v28 }
  0xee   : > { %v2175_v32 = vpop.f32.mrf.mxu2  ;;  %v2181_v35 = vpop.f32.mrf.mxu3 }
  0xef   : > { %v2169_v29 = vpop.f32.mrf.mxu0  ;;  %v2171_v30 = vpop.f32.mrf.mxu1  ;;  %2958 = vst [vmem:[#allocation4_spill] sm:$0xff] %v2181_v35 }
  0xf0   : > { %v721_v1 = vadd.f32 %v720_v63, %v2169_v29  ;;  %v1178_v2 = vadd.f32 %v1177_v0, %v2171_v30 }
  0xf6   : > { %v2183_v36 = vpop.f32.mrf.mxu2  ;;  %v2189_v39 = vpop.f32.mrf.mxu3 }
  0xf7   : > { %v2177_v33 = vpop.f32.mrf.mxu0  ;;  %v2179_v34 = vpop.f32.mrf.mxu1  ;;  %2959 = vst [vmem:[#allocation5_spill] sm:$0xff] %v2189_v39 }
  0xf8   : > { %v722_v5 = vadd.f32 %v721_v1, %v2177_v33  ;;  %v1179_v6 = vadd.f32 %v1178_v2, %v2179_v34 }
  0xfe   : > { %v2191_v40 = vpop.f32.mrf.mxu2  ;;  %v2197_v43 = vpop.f32.mrf.mxu3 }
  0xff   : > { %v2185_v37 = vpop.f32.mrf.mxu0  ;;  %v2187_v38 = vpop.f32.mrf.mxu1  ;;  %2960 = vst [vmem:[#allocation6_spill] sm:$0xff] %v2197_v43 }
 0x100   : > { %v723_v9 = vadd.f32 %v722_v5, %v2185_v37  ;;  %v1180_v10 = vadd.f32 %v1179_v6, %v2187_v38 }
 0x106   : > { %v2199_v44 = vpop.f32.mrf.mxu2  ;;  %v2209_v49 = vpop.f32.mrf.mxu3 }
 0x107   : > { %v2193_v41 = vpop.f32.mrf.mxu0  ;;  %v2195_v42 = vpop.f32.mrf.mxu1  ;;  %2962 = vst [vmem:[#allocation8_spill] sm:$0xff] %v2209_v49 }
 0x108   : > { %v724_v11 = vadd.f32 %v723_v9, %v2193_v41  ;;  %v1181_v55 = vadd.f32 %v1180_v10, %v2195_v42 }
 0x10e   : > { %v2211_v50 = vpop.f32.mrf.mxu2  ;;  %v2217_v53 = vpop.f32.mrf.mxu3 }
 0x10f   : > { %v2201_v45 = vpop.f32.mrf.mxu0  ;;  %v2203_v46 = vpop.f32.mrf.mxu1  ;;  %2964 = vst [vmem:[#allocation10_spill] sm:$0xff] %v2217_v53 }
 0x110   : > { %v725_v56 = vadd.f32 %v724_v11, %v2201_v45  ;;  %v1182_v57 = vadd.f32 %v1181_v55, %v2203_v46 }
 0x116   : > { %v2219_v54 = vpop.f32.mrf.mxu2  ;;  %v2237_v3 = vpop.f32.mrf.mxu3 }
 0x117   : > { %v2205_v47 = vpop.f32.mrf.mxu0  ;;  %v2207_v48 = vpop.f32.mrf.mxu1  ;;  %2966 = vst [vmem:[#allocation12_spill] sm:$0xff] %v2237_v3 }
 0x118   : > { %2961 = vst [vmem:[#allocation7_spill] sm:$0xff] %v2207_v48  ;;  %v726_v58 = vadd.f32 %v725_v56, %v2205_v47  ;;  %v1183_v61 = vadd.f32 %v1182_v57, %v2207_v48 }
 0x11e   : > { %v2239_v4 = vpop.f32.mrf.mxu2  ;;  %v2255_v62 = vpop.f32.mrf.mxu3 }
 0x11f   : > { %v2213_v51 = vpop.f32.mrf.mxu0  ;;  %v2215_v52 = vpop.f32.mrf.mxu1  ;;  %2968 = vst [vmem:[#allocation14_spill] sm:$0xff] %v2255_v62 }
 0x120   : > { %2963 = vst [vmem:[#allocation9_spill] sm:$0xff] %v2215_v52  ;;  %v727_v2 = vadd.f32 %v726_v58, %v2213_v51  ;;  %v1184_v5 = vadd.f32 %v1183_v61, %v2215_v52 }
 0x126   : > { %v2257_v63 = vpop.f32.mrf.mxu2  ;;  %v2277_v52 = vpop.f32.mrf.mxu3 }
 0x127   : > { %v2227_v59 = vpop.f32.mrf.mxu0  ;;  %v2229_v60 = vpop.f32.mrf.mxu1  ;;  %2971 = vst [vmem:[#allocation17_spill] sm:$0xff] %v2277_v52 }
 0x128   : > { %2965 = vst [vmem:[#allocation11_spill] sm:$0xff] %v2229_v60  ;;  %v728_v6 = vadd.f32 %v727_v2, %v2227_v59  ;;  %v1185_v9 = vadd.f32 %v1184_v5, %v2229_v60 }
 0x12e   : > { %v2279_v2 = vpop.f32.mrf.mxu2  ;;  %v2291_v60 = vpop.f32.mrf.mxu3 }
 0x12f   : > { %v2243_v7 = vpop.f32.mrf.mxu0  ;;  %v2245_v8 = vpop.f32.mrf.mxu1  ;;  %2972 = vst [vmem:[#allocation18_spill] sm:$0xff] %v2291_v60 }
 0x130   : > { %2967 = vst [vmem:[#allocation13_spill] sm:$0xff] %v2245_v8  ;;  %v729_v10 = vadd.f32 %v728_v6, %v2243_v7  ;;  %v1186_v11 = vadd.f32 %v1185_v9, %v2245_v8 }
 0x137   : > { %v2259_v0 = vpop.f32.mrf.mxu0  ;;  %v2261_v1 = vpop.f32.mrf.mxu1 }
 0x138   : > { %2969 = vst [vmem:[#allocation15_spill] sm:$0xff] %v2261_v1  ;;  %v730_v55 = vadd.f32 %v729_v10, %v2259_v0  ;;  %v1187_v56 = vadd.f32 %v1186_v11, %v2261_v1 }
 0x13f   : > { %v2271_v57 = vpop.f32.mrf.mxu0  ;;  %v2273_v48 = vpop.f32.mrf.mxu1 }
 0x140   : > { %2970 = vst [vmem:[#allocation16_spill] sm:$0xff] %v2273_v48  ;;  %v731_v58 = vadd.f32 %v730_v55, %v2271_v57  ;;  %v1188_v61 = vadd.f32 %v1187_v56, %v2273_v48 }
 0x142   : > { %v732_v5 = vadd.f32 %v731_v58, %v2139_v14  ;;  %v1189_v6 = vadd.f32 %v1188_v61, %v2145_v17  ;;  %v2293_v58 = vpop.f32.mrf.mxu2 }
 0x144   : > { %v733_v9 = vadd.f32 %v732_v5, %v2147_v18  ;;  %v1190_v10 = vadd.f32 %v1189_v6, %v2153_v21 }
 0x146   : > { %v734_v11 = vadd.f32 %v733_v9, %v2155_v22  ;;  %v1191_v1 = vadd.f32 %v1190_v10, %v2161_v25 }
 0x148   : > { %v735_v55 = vadd.f32 %v734_v11, %v2163_v26  ;;  %v1192_v56 = vadd.f32 %v1191_v1, %v2173_v31  ;;  %v2305_v31 = vpop.f32.mrf.mxu3 }
 0x14a   : > { %v736_v48 = vadd.f32 %v735_v55, %v2175_v32  ;;  %v1193_v8 = vadd.f32 %v1192_v56, %v2181_v35 }
 0x14c   : > { %v737_v61 = vadd.f32 %v736_v48, %v2183_v36  ;;  %v1194_v5 = vadd.f32 %v1193_v8, %v2189_v39  ;;  %v2307_v48 = vpop.f32.mrf.mxu2 }
 0x14e   : > { %v738_v6 = vadd.f32 %v737_v61, %v2191_v40  ;;  %v1195_v9 = vadd.f32 %v1194_v5, %v2197_v43 }
 0x150   : > { %v739_v10 = vadd.f32 %v738_v6, %v2199_v44  ;;  %v1196_v1 = vadd.f32 %v1195_v9, %v2209_v49 }
 0x152   : > { %v740_v11 = vadd.f32 %v739_v10, %v2211_v50  ;;  %v1197_v55 = vadd.f32 %v1196_v1, %v2217_v53 }
 0x154   : > { %v741_v56 = vadd.f32 %v740_v11, %v2219_v54  ;;  %v1198_v35 = vadd.f32 %v1197_v55, %v2237_v3  ;;  %v2317_v55 = vpop.f32.mrf.mxu3  ;;  %v2319_v3 = vpop.f32.mrf.mxu2 }
 0x156   : > { %v742_v8 = vadd.f32 %v741_v56, %v2239_v4  ;;  %v1199_v61 = vadd.f32 %v1198_v35, %v2255_v62 }
 0x158   : > { %v743_v5 = vadd.f32 %v742_v8, %v2257_v63  ;;  %v1200_v9 = vadd.f32 %v1199_v61, %v2277_v52 }
 0x15a   : > { %v744_v6 = vadd.f32 %v743_v5, %v2279_v2  ;;  %v1201_v1 = vadd.f32 %v1200_v9, %v2291_v60 }
 0x15c   : > { %v745_v10 = vadd.f32 %v744_v6, %v2293_v58  ;;  %v1202_v35 = vadd.f32 %v1201_v1, %v2305_v31  ;;  %v2324_v52 = vpop.f32.mrf.mxu3 }
 0x15e   : > { %v746_v11 = vadd.f32 %v745_v10, %v2307_v48  ;;  %v1203_v5 = vadd.f32 %v1202_v35, %v2317_v55 }
 0x160   : > { %v747_v56 = vadd.f32 %v746_v11, %v2319_v3  ;;  %v1204_v6 = vadd.f32 %v1203_v5, %v2324_v52 }
 0x162   : > { %v748_v62 = vrot.slane %v747_v56, 4  ;;  %v1205_v10 = vrot.slane %v1204_v6, 4 }
 0x164   : > { %v749_v8 = vadd.f32 %v748_v62, %v747_v56  ;;  %v1206_v49 = vadd.f32 %v1205_v10, %v1204_v6 }
 0x166   : > { %v750_v53 = vrot.slane %v749_v8, 2  ;;  %v1207_v39 = vrot.slane %v1206_v49, 2 }
 0x168   : > { %v751_v61 = vadd.f32 %v750_v53, %v749_v8  ;;  %v1208_v53 = vadd.f32 %v1207_v39, %v1206_v49 }
 0x16a   : > { %v752_v9 = vrot.slane %v751_v61, 1 }
 0x16c   : > { %v753_v60 = vadd.f32 %v752_v9, %v751_v61 }
 0x16e   : > { %v2327_v43 = vmul.f32 0.00390625, %v753_v60 }
 0x170   : > { %v2331_v1 = vsub.f32 %v2135_v12, %v2327_v43  ;;  %v2335_v62 = vsub.f32 %v2141_v15, %v2327_v43  ;;  %v2339_v11 = vsub.f32 %v2149_v19, %v2327_v43  ;;  %v2347_v35 = vsub.f32 %v2157_v23, %v2327_v43 }
 0x171   : > { %v1209_v12 = vrot.slane %v1208_v53, 1  ;;  %v2351_v15 = vsub.f32 %v2165_v27, %v2327_v43  ;;  %v2357_v49 = vsub.f32 %v2169_v29, %v2327_v43  ;;  %v2363_v23 = vsub.f32 %v2177_v33, %v2327_v43 }
 0x172   : > { %v787_v56 = vmul.f32 %v2331_v1, %v2331_v1  ;;  %v788_v60 = vmul.f32 %v2335_v62, %v2335_v62  ;;  %v789_v39 = vmul.f32 %v2339_v11, %v2339_v11  ;;  %v790_v8 = vmul.f32 %v2347_v35, %v2347_v35 }
 0x173   : > { %v1210_v61 = vadd.f32 %v1209_v12, %v1208_v53  ;;  %v791_v27 = vmul.f32 %v2351_v15, %v2351_v15  ;;  %v2369_v9 = vsub.f32 %v2185_v37, %v2327_v43  ;;  %v792_v29 = vmul.f32 %v2357_v49, %v2357_v49 }
 0x174   : > { %v819_v19 = vadd.f32 %v788_v60, %v787_v56  ;;  %v2377_v53 = vsub.f32 %v2193_v41, %v2327_v43  ;;  %v793_v33 = vmul.f32 %v2363_v23, %v2363_v23  ;;  %v2383_v12 = vsub.f32 %v2201_v45, %v2327_v43 }
 0x175   : > { %v2373_v56 = vmul.f32 0.00390625, %v1210_v61  ;;  %v794_v37 = vmul.f32 %v2369_v9, %v2369_v9  ;;  %v2403_v61 = vsub.f32 %v2213_v51, %v2327_v43 }
 0x176   : > { %v820_v5 = vadd.f32 %v819_v19, %v789_v39  ;;  %v795_v45 = vmul.f32 %v2377_v53, %v2377_v53 }
 0x177   : > { %v2389_v19 = vsub.f32 %v2137_v13, %v2373_v56  ;;  %v2393_v41 = vsub.f32 %v2143_v16, %v2373_v56  ;;  %v796_v13 = vmul.f32 %v2383_v12, %v2383_v12  ;;  %v2409_v16 = vsub.f32 %v2151_v20, %v2373_v56 }
 0x178   : > { %v821_v6 = vadd.f32 %v820_v5, %v790_v8  ;;  %v2397_v8 = vsub.f32 %v2205_v47, %v2327_v43  ;;  %v2427_v20 = vsub.f32 %v2243_v7, %v2327_v43 }
 0x179   : > { %v1244_v47 = vmul.f32 %v2389_v19, %v2389_v19 }
 0x17a   : > { %v822_v10 = vadd.f32 %v821_v6, %v791_v27  ;;  %v1245_v6 = vmul.f32 %v2393_v41, %v2393_v41  ;;  %v797_v51 = vmul.f32 %v2397_v8, %v2397_v8 }
 0x17c   : > { %v823_v60 = vadd.f32 %v822_v10, %v792_v29  ;;  %v2417_v29 = vsub.f32 %v2227_v59, %v2327_v43  ;;  %v2433_v59 = vsub.f32 %v2167_v28, %v2373_v56 }
 0x17e   : > { %v824_v39 = vadd.f32 %v823_v60, %v793_v33  ;;  %v2423_v33 = vsub.f32 %v2159_v24, %v2373_v56  ;;  %v798_v60 = vmul.f32 %v2403_v61, %v2403_v61  ;;  %v2439_v24 = vsub.f32 %v2259_v0, %v2327_v43 }
 0x17f   : > { %v799_v7 = vmul.f32 %v2417_v29, %v2417_v29  ;;  %v800_v0 = vmul.f32 %v2427_v20, %v2427_v20 }
 0x180   : > { %v825_v5 = vadd.f32 %v824_v39, %v794_v37  ;;  %v1246_v39 = vmul.f32 %v2409_v16, %v2409_v16  ;;  %v1247_v28 = vmul.f32 %v2423_v33, %v2423_v33 }
 0x182   : > { %v826_v27 = vadd.f32 %v825_v5, %v795_v45  ;;  %v1276_v45 = vadd.f32 %v1245_v6, %v1244_v47  ;;  %v2457_v6 = vsub.f32 %v2179_v34, %v2373_v56 }
 0x184   : > { %v827_v10 = vadd.f32 %v826_v27, %v796_v13  ;;  %v2445_v13 = vsub.f32 %v2171_v30, %v2373_v56  ;;  %v1277_v27 = vadd.f32 %v1276_v45, %v1246_v39  ;;  %v1248_v30 = vmul.f32 %v2433_v59, %v2433_v59 }
 0x185   : > { %v2469_v39 = vsub.f32 %v2187_v38, %v2373_v56  ;;  %v1250_v38 = vmul.f32 %v2457_v6, %v2457_v6 }
 0x186   : > { %v828_v37 = vadd.f32 %v827_v10, %v797_v51  ;;  %v2451_v51 = vsub.f32 %v2271_v57, %v2327_v43  ;;  %v1278_v10 = vadd.f32 %v1277_v27, %v1247_v28  ;;  %v801_v57 = vmul.f32 %v2439_v24, %v2439_v24 }
 0x187   : > { %2973 = vst [vmem:[#allocation19_spill] sm:$0xff] %v2469_v39  ;;  %v1249_v34 = vmul.f32 %v2445_v13, %v2445_v13  ;;  %v2481_v28 = vsub.f32 %v2195_v42, %v2373_v56  ;;  %v1251_v42 = vmul.f32 %v2469_v39, %v2469_v39 }
 0x188   : > { %v829_v5 = vadd.f32 %v828_v37, %v798_v60  ;;  %v2463_v60 = vsub.f32 %v2139_v14, %v2327_v43  ;;  %v1279_v45 = vadd.f32 %v1278_v10, %v1248_v30  ;;  %v802_v14 = vmul.f32 %v2451_v51, %v2451_v51 }
 0x189   : > { %2974 = vst [vmem:[#allocation20_spill] sm:$0xff] %v2481_v28  ;;  %v2493_v30 = vsub.f32 %v2203_v46, %v2373_v56  ;;  %v1252_v46 = vmul.f32 %v2481_v28, %v2481_v28 }
 0x18a   : > { %v830_v47 = vadd.f32 %v829_v5, %v799_v7  ;;  %v2475_v7 = vsub.f32 %v2147_v18, %v2327_v43  ;;  %v1280_v27 = vadd.f32 %v1279_v45, %v1249_v34  ;;  %v803_v18 = vmul.f32 %v2463_v60, %v2463_v60  ;;  %v2976_v34 = vld [vmem:[#allocation7_spill] sm:$0xff] }
 0x18b   : > { %2975 = vst [vmem:[#allocation21_spill] sm:$0xff] %v2493_v30  ;;  %v2505_v45 = vsub.f32 %v2976_v34, %v2373_v56  ;;  %v2523_v34 = vsub.f32 %v2183_v36, %v2327_v43 }
 0x18c   : > { %v831_v37 = vadd.f32 %v830_v47, %v800_v0  ;;  %v2487_v0 = vsub.f32 %v2155_v22, %v2327_v43  ;;  %v1281_v10 = vadd.f32 %v1280_v27, %v1250_v38  ;;  %v804_v22 = vmul.f32 %v2475_v7, %v2475_v7  ;;  %v2978_v27 = vld [vmem:[#allocation9_spill] sm:$0xff] }
 0x18d   : > { %2977 = vst [vmem:[#allocation7_spill] sm:$0xff] %v2505_v45  ;;  %v2517_v39 = vsub.f32 %v2978_v27, %v2373_v56  ;;  %v2535_v27 = vsub.f32 %v2191_v40, %v2327_v43  ;;  %v808_v40 = vmul.f32 %v2523_v34, %v2523_v34 }
 0x18e   : > { %v832_v5 = vadd.f32 %v831_v37, %v801_v57  ;;  %v2499_v57 = vsub.f32 %v2163_v26, %v2327_v43  ;;  %v805_v26 = vmul.f32 %v2487_v0, %v2487_v0 }
 0x18f   : > { %2979 = vst [vmem:[#allocation9_spill] sm:$0xff] %v2517_v39 }
 0x190   : > { %v833_v47 = vadd.f32 %v832_v5, %v802_v14  ;;  %v1282_v14 = vadd.f32 %v1281_v10, %v1251_v42  ;;  %v2511_v5 = vsub.f32 %v2175_v32, %v2327_v43  ;;  %v806_v32 = vmul.f32 %v2499_v57, %v2499_v57  ;;  %v2980_v10 = vld [vmem:[#allocation11_spill] sm:$0xff] }
 0x191   : > { %v2529_v28 = vsub.f32 %v2980_v10, %v2373_v56  ;;  %v2547_v10 = vsub.f32 %v2199_v44, %v2327_v43  ;;  %v809_v44 = vmul.f32 %v2535_v27, %v2535_v27 }
 0x192   : > { %v834_v37 = vadd.f32 %v833_v47, %v803_v18  ;;  %v1253_v18 = vmul.f32 %v2493_v30, %v2493_v30  ;;  %v1283_v47 = vadd.f32 %v1282_v14, %v1252_v46  ;;  %v807_v36 = vmul.f32 %v2511_v5, %v2511_v5  ;;  %v2981_v14 = vld [vmem:[#allocation13_spill] sm:$0xff] }
 0x193   : > { %v2541_v30 = vsub.f32 %v2981_v14, %v2373_v56  ;;  %v2559_v14 = vsub.f32 %v2211_v50, %v2327_v43  ;;  %v810_v50 = vmul.f32 %v2547_v10, %v2547_v10 }
 0x194   : > { %v835_v38 = vadd.f32 %v834_v37, %v804_v22  ;;  %v1254_v22 = vmul.f32 %v2505_v45, %v2505_v45  ;;  %v1284_v37 = vadd.f32 %v1283_v47, %v1253_v18  ;;  %v2982_v47 = vld [vmem:[#allocation15_spill] sm:$0xff] }
 0x195   : > { %v2553_v45 = vsub.f32 %v2982_v47, %v2373_v56  ;;  %v2571_v47 = vsub.f32 %v2219_v54, %v2327_v43  ;;  %v811_v54 = vmul.f32 %v2559_v14, %v2559_v14 }
 0x196   : > { %v836_v42 = vadd.f32 %v835_v38, %v805_v26  ;;  %v1255_v26 = vmul.f32 %v2517_v39, %v2517_v39  ;;  %v1285_v38 = vadd.f32 %v1284_v37, %v1254_v22  ;;  %v2984_v37 = vld [vmem:[#allocation16_spill] sm:$0xff] }
 0x197   : > { %2983 = vst [vmem:[#allocation11_spill] sm:$0xff] %v2553_v45  ;;  %v2565_v39 = vsub.f32 %v2984_v37, %v2373_v56  ;;  %v2583_v37 = vsub.f32 %v2239_v4, %v2327_v43  ;;  %v812_v4 = vmul.f32 %v2571_v47, %v2571_v47 }
 0x198   : > { %v837_v46 = vadd.f32 %v836_v42, %v806_v32  ;;  %v1256_v32 = vmul.f32 %v2529_v28, %v2529_v28  ;;  %v1286_v42 = vadd.f32 %v1285_v38, %v1255_v26  ;;  %v2577_v38 = vsub.f32 %v2145_v17, %v2373_v56 }
 0x199   : > { %2985 = vst [vmem:[#allocation13_spill] sm:$0xff] %v2565_v39  ;;  %v1259_v17 = vmul.f32 %v2565_v39, %v2565_v39 }
 0x19a   : > { %v838_v18 = vadd.f32 %v837_v46, %v807_v36  ;;  %v1257_v36 = vmul.f32 %v2541_v30, %v2541_v30  ;;  %v1287_v46 = vadd.f32 %v1286_v42, %v1256_v32  ;;  %2986 = vst [vmem:[#allocation15_spill] sm:$0xff] %v2577_v38  ;;  %v2589_v42 = vsub.f32 %v2153_v21, %v2373_v56 }
 0x19b   : > { %v1260_v21 = vmul.f32 %v2577_v38, %v2577_v38 }
 0x19c   : > { %v839_v22 = vadd.f32 %v838_v18, %v808_v40  ;;  %v1258_v40 = vmul.f32 %v2553_v45, %v2553_v45  ;;  %v1288_v18 = vadd.f32 %v1287_v46, %v1257_v36  ;;  %2987 = vst [vmem:[#allocation16_spill] sm:$0xff] %v2589_v42  ;;  %v2601_v46 = vsub.f32 %v2161_v25, %v2373_v56 }
 0x19d   : > { %v1261_v25 = vmul.f32 %v2589_v42, %v2589_v42 }
 0x19e   : > { %v840_v26 = vadd.f32 %v839_v22, %v809_v44  ;;  %v1289_v44 = vadd.f32 %v1288_v18, %v1258_v40  ;;  %v2595_v22 = vsub.f32 %v2257_v63, %v2327_v43  ;;  %2988 = vst [vmem:[#allocation22_spill] sm:$0xff] %v2601_v46  ;;  %v813_v63 = vmul.f32 %v2583_v37, %v2583_v37  ;;  %v2989_v18 = vld [vmem:[#allocation3_spill] sm:$0xff] }
 0x19f   : > { %v2613_v39 = vsub.f32 %v2989_v18, %v2373_v56  ;;  %v2631_v18 = vsub.f32 %v2307_v48, %v2327_v43 }
 0x1a0   : > { %v841_v32 = vadd.f32 %v840_v26, %v810_v50  ;;  %v1290_v50 = vadd.f32 %v1289_v44, %v1259_v17  ;;  %v2607_v26 = vsub.f32 %v2279_v2, %v2327_v43  ;;  %v814_v2 = vmul.f32 %v2595_v22, %v2595_v22  ;;  %v2991_v44 = vld [vmem:[#allocation4_spill] sm:$0xff] }
 0x1a1   : > { %2990 = vst [vmem:[#allocation3_spill] sm:$0xff] %v2613_v39  ;;  %v2625_v38 = vsub.f32 %v2991_v44, %v2373_v56  ;;  %v2643_v44 = vsub.f32 %v2319_v3, %v2327_v43 }
 0x1a2   : > { %v842_v36 = vadd.f32 %v841_v32, %v811_v54  ;;  %v1291_v54 = vadd.f32 %v1290_v50, %v1260_v21  ;;  %v2619_v32 = vsub.f32 %v2293_v58, %v2327_v43  ;;  %v815_v58 = vmul.f32 %v2607_v26, %v2607_v26  ;;  %v2993_v50 = vld [vmem:[#allocation5_spill] sm:$0xff] }
 0x1a3   : > { %2992 = vst [vmem:[#allocation4_spill] sm:$0xff] %v2625_v38  ;;  %v2637_v42 = vsub.f32 %v2993_v50, %v2373_v56  ;;  %v817_v50 = vmul.f32 %v2631_v18, %v2631_v18 }
 0x1a4   : > { %v843_v40 = vadd.f32 %v842_v36, %v812_v4  ;;  %v1262_v4 = vmul.f32 %v2601_v46, %v2601_v46  ;;  %v1292_v36 = vadd.f32 %v1291_v54, %v1261_v25  ;;  %v816_v48 = vmul.f32 %v2619_v32, %v2619_v32  ;;  %v2995_v54 = vld [vmem:[#allocation6_spill] sm:$0xff] }
 0x1a5   : > { %2994 = vst [vmem:[#allocation5_spill] sm:$0xff] %v2637_v42  ;;  %v2649_v46 = vsub.f32 %v2995_v54, %v2373_v56  ;;  %v1265_v3 = vmul.f32 %v2637_v42, %v2637_v42 }
 0x1a6   : > { %v844_v17 = vadd.f32 %v843_v40, %v813_v63  ;;  %v1263_v63 = vmul.f32 %v2613_v39, %v2613_v39  ;;  %v1293_v40 = vadd.f32 %v1292_v36, %v1262_v4  ;;  %v2997_v36 = vld [vmem:[#allocation8_spill] sm:$0xff]  ;;  %v2999_v39 = vld [vmem:[#allocation10_spill] sm:$0xff] }
 0x1a7   : > { %2996 = vst [vmem:[#allocation6_spill] sm:$0xff] %v2649_v46  ;;  %v2657_v43 = vsub.f32 %v2997_v36, %v2373_v56 }
 0x1a8   : > { %v845_v21 = vadd.f32 %v844_v17, %v814_v2  ;;  %v1264_v2 = vmul.f32 %v2625_v38, %v2625_v38  ;;  %v1294_v17 = vadd.f32 %v1293_v40, %v1263_v63  ;;  %v2665_v38 = vsub.f32 %v2999_v39, %v2373_v56 }
 0x1a9   : > { %2998 = vst [vmem:[#allocation8_spill] sm:$0xff] %v2657_v43  ;;  %v1266_v63 = vmul.f32 %v2649_v46, %v2649_v46 }
 0x1aa   : > { %v846_v25 = vadd.f32 %v845_v21, %v815_v58  ;;  %v1295_v58 = vadd.f32 %v1294_v17, %v1264_v2  ;;  %v818_v21 = vmul.f32 %v2643_v44, %v2643_v44  ;;  %3000 = vst [vmem:[#allocation10_spill] sm:$0xff] %v2665_v38  ;;  %v1267_v2 = vmul.f32 %v2657_v43, %v2657_v43 }
 0x1ab   : > { %v1268_v39 = vmul.f32 %v2665_v38, %v2665_v38 }
 0x1ac   : > { %v847_v4 = vadd.f32 %v846_v25, %v816_v48  ;;  %v1296_v40 = vadd.f32 %v1295_v58, %v1265_v3  ;;  %v3001_v25 = vld [vmem:[#allocation12_spill] sm:$0xff]  ;;  %v3004_v3 = vld [vmem:[#allocation17_spill] sm:$0xff] }
 0x1ad   : > { %v2671_v36 = vsub.f32 %v3001_v25, %v2373_v56  ;;  %v2683_v58 = vsub.f32 %v3004_v3, %v2373_v56 }
 0x1ae   : > { %v848_v54 = vadd.f32 %v847_v4, %v817_v50  ;;  %v1297_v17 = vadd.f32 %v1296_v40, %v1266_v63  ;;  %v3002_v50 = vld [vmem:[#allocation14_spill] sm:$0xff] }
 0x1af   : > { %v2677_v4 = vsub.f32 %v3002_v50, %v2373_v56  ;;  %3005 = vst [vmem:[#allocation14_spill] sm:$0xff] %v2683_v58  ;;  %v3006_v63 = vld [vmem:[#allocation18_spill] sm:$0xff] }
 0x1b0   : > { %v849_v48 = vadd.f32 %v848_v54, %v818_v21  ;;  %v1298_v45 = vadd.f32 %v1297_v17, %v1267_v2  ;;  %v1269_v21 = vmul.f32 %v2671_v36, %v2671_v36  ;;  %v2689_v40 = vsub.f32 %v3006_v63, %v2373_v56 }
 0x1b1   : > { %3003 = vst [vmem:[#allocation12_spill] sm:$0xff] %v2677_v4  ;;  %v1270_v50 = vmul.f32 %v2677_v4, %v2677_v4 }
 0x1b2   : > { %v850_v42 = vrot.slane %v849_v48, 4  ;;  %v1299_v54 = vadd.f32 %v1298_v45, %v1268_v39  ;;  %3007 = vst [vmem:[#allocation17_spill] sm:$0xff] %v2689_v40  ;;  %v2701_v45 = vsub.f32 %v2317_v55, %v2373_v56  ;;  %v1272_v39 = vmul.f32 %v2689_v40, %v2689_v40 }
 0x1b4   : > { %v851_v46 = vadd.f32 %v850_v42, %v849_v48  ;;  %v1300_v43 = vadd.f32 %v1299_v54, %v1269_v21  ;;  %v2695_v42 = vsub.f32 %v2305_v31, %v2373_v56  ;;  %v1271_v48 = vmul.f32 %v2683_v58, %v2683_v58  ;;  %3009 = vst [vmem:[#allocation23_spill] sm:$0xff] %v2701_v45 }
 0x1b6   : > { %v852_v25 = vrot.slane %v851_v46, 2  ;;  %3008 = vst [vmem:[#allocation18_spill] sm:$0xff] %v2695_v42  ;;  %v1301_v2 = vadd.f32 %v1300_v43, %v1270_v50  ;;  %v1273_v31 = vmul.f32 %v2695_v42, %v2695_v42  ;;  %v1274_v43 = vmul.f32 %v2701_v45, %v2701_v45 }
 0x1b8   : > { %v853_v38 = vadd.f32 %v852_v25, %v851_v46  ;;  %v1302_v3 = vadd.f32 %v1301_v2, %v1271_v48  ;;  %v2707_v46 = vsub.f32 %v2324_v52, %v2373_v56 }
 0x1ba   : > { %v854_v17 = vrot.slane %v853_v38, 1  ;;  %v1303_v21 = vadd.f32 %v1302_v3, %v1272_v39  ;;  %v1275_v50 = vmul.f32 %v2707_v46, %v2707_v46 }
 0x1bc   : > { %v855_v63 = vadd.f32 %v854_v17, %v853_v38  ;;  %v1304_v25 = vadd.f32 %v1303_v21, %v1273_v31 }
 0x1be   : > { %v856_v54 = vmul.f32 0.00390625, %v855_v63  ;;  %v1305_v40 = vadd.f32 %v1304_v25, %v1274_v43 }
 0x1c0   : > { %v857_v55 = vadd.f32 1e-05, %v856_v54  ;;  %v1306_v38 = vadd.f32 %v1305_v40, %v1275_v50 }
 0x1c2   : > { %1903 = vrsqrt.f32 %v857_v55  ;;  %v1307_v48 = vrot.slane %v1306_v38, 4  ;;  %vm864_vm3 = vweird.f32 %v857_v55 }
 0x1c4   : > { %v1308_v2 = vadd.f32 %v1307_v48, %v1306_v38 }
 0x1c6   : > { %v1309_v56 = vrot.slane %v1308_v2, 2 }
 0x1c8   : > { %v1904_v52 = vpop.eup %1903  ;;  %v1310_v58 = vadd.f32 %v1309_v56, %v1308_v2 }
 0x1c9   : > { %v859_v17 = vmul.f32 %v1904_v52, %v857_v55  ;;  %vm865_vm2 = vweird.f32 %v1904_v52 }
 0x1ca   : > { %v1311_v39 = vrot.slane %v1310_v58, 1  ;;  %vm866_vm4 = vmor %vm864_vm3, %vm865_vm2 }
 0x1cb   : > { %v860_v42 = vmul.f32 %v1904_v52, %v859_v17  ;;  %v3021_v17 = vld [vmem:[#allocation19_spill] sm:$0xff] }
 0x1cc   : > { %v1312_v4 = vadd.f32 %v1311_v39, %v1310_v58 }
 0x1cd   : > { %v861_v3 = vmul.f32 0.5, %v860_v42 }
 0x1ce   : > { %v1313_v31 = vmul.f32 0.00390625, %v1312_v4 }
 0x1cf   : > { %v862_v63 = vsub.f32 1.5, %v861_v3  ;;  %v3022_v3 = vld [vmem:[#allocation20_spill] sm:$0xff] }
 0x1d0   : > { %v1314_v54 = vadd.f32 1e-05, %v1313_v31  ;;  %v3024_v31 = vld [vmem:[#allocation7_spill] sm:$0xff] }
 0x1d1   : > { %v863_v45 = vmul.f32 %v1904_v52, %v862_v63  ;;  %v3023_v63 = vld [vmem:[#allocation21_spill] sm:$0xff] }
 0x1d2   : > { %1905 = vrsqrt.f32 %v1314_v54  ;;  %vm1321_vm6 = vweird.f32 %v1314_v54 }
 0x1d3   : > { %v867_v21 = vsel %vm866_vm4, %v1904_v52, %v863_v45 }
 0x1d4   : > { %v2716_v40 = vmul.f32 %v867_v21, %v2559_v14  ;;  %v2719_v43 = vmul.f32 %v867_v21, %v2619_v32  ;;  %v2722_v25 = vmul.f32 %v867_v21, %v2643_v44  ;;  %v2725_v42 = vmul.f32 %v867_v21, %v2631_v18 }
 0x1d5   : > { %v2728_v4 = vmul.f32 %v867_v21, %v2331_v1  ;;  %v2731_v45 = vmul.f32 %v867_v21, %v2335_v62  ;;  %v2734_v55 = vmul.f32 %v867_v21, %v2339_v11  ;;  %v2737_v32 = vmul.f32 %v867_v21, %v2347_v35 }
 0x1d6   : > { %3010 = vst [vmem:[#allocation24_spill] sm:$0xff] %v2716_v40  ;;  %v2740_v44 = vmul.f32 %v867_v21, %v2351_v15  ;;  %v2743_v18 = vmul.f32 %v867_v21, %v2357_v49  ;;  %v2746_v38 = vmul.f32 %v867_v21, %v2363_v23  ;;  %v2749_v1 = vmul.f32 %v867_v21, %v2369_v9  ;;  %v3038_v40 = vld [vmem:[#allocation14_spill] sm:$0xff] }
 0x1d7   : > { %3011 = vst [vmem:[#allocation25_spill] sm:$0xff] %v2719_v43  ;;  %v2752_v62 = vmul.f32 %v867_v21, %v2377_v53  ;;  %v2755_v48 = vmul.f32 %v867_v21, %v2383_v12  ;;  %v2758_v35 = vmul.f32 %v867_v21, %v2397_v8  ;;  %v2761_v15 = vmul.f32 %v867_v21, %v2403_v61 }
 0x1d8   : > { %3012 = vst [vmem:[#allocation26_spill] sm:$0xff] %v2722_v25  ;;  %v1906_v58 = vpop.eup %1905  ;;  %v2764_v49 = vmul.f32 %v867_v21, %v2417_v29  ;;  %v2767_v23 = vmul.f32 %v867_v21, %v2427_v20  ;;  %v2770_v9 = vmul.f32 %v867_v21, %v2439_v24  ;;  %v2773_v12 = vmul.f32 %v867_v21, %v2451_v51 }
 0x1d9   : > { %3013 = vst [vmem:[#allocation27_spill] sm:$0xff] %v2725_v42  ;;  %v1316_v50 = vmul.f32 %v1906_v58, %v1314_v54  ;;  %vm1322_vm5 = vweird.f32 %v1906_v58  ;;  %v2776_v8 = vmul.f32 %v867_v21, %v2463_v60  ;;  %v2779_v61 = vmul.f32 %v867_v21, %v2475_v7 }
 0x1da   : > { %v2782_v29 = vmul.f32 %v867_v21, %v2487_v0  ;;  %v2785_v20 = vmul.f32 %v867_v21, %v2499_v57  ;;  %v2788_v24 = vmul.f32 %v867_v21, %v2511_v5  ;;  %v2791_v51 = vmul.f32 %v867_v21, %v2523_v34  ;;  %vm1323_vm7 = vmor %vm1321_vm6, %vm1322_vm5 }
 0x1db   : > { %v1317_v14 = vmul.f32 %v1906_v58, %v1316_v50  ;;  %v2794_v60 = vmul.f32 %v867_v21, %v2535_v27  ;;  %v2797_v7 = vmul.f32 %v867_v21, %v2547_v10  ;;  %v2800_v0 = vmul.f32 %v867_v21, %v2571_v47  ;;  %v3026_v50 = vld [vmem:[#allocation11_spill] sm:$0xff] }
 0x1dc   : > { %3014 = vst [vmem:[#allocation28_spill] sm:$0xff] %v2791_v51  ;;  %v2803_v57 = vmul.f32 %v867_v21, %v2583_v37  ;;  %v2806_v5 = vmul.f32 %v867_v21, %v2595_v22  ;;  %v2809_v52 = vmul.f32 %v867_v21, %v2607_v26  ;;  %v3025_v21 = vld [vmem:[#allocation9_spill] sm:$0xff]  ;;  %v3041_v51 = vld [vmem:[#allocation23_spill] sm:$0xff] }
 0x1dd   : > { %v1318_v11 = vmul.f32 0.5, %v1317_v14  ;;  %3015 = vst [vmem:[#allocation29_spill] sm:$0xff] %v2794_v60  ;;  %v3027_v14 = vld [vmem:[#allocation13_spill] sm:$0xff]  ;;  %v3040_v60 = vld [vmem:[#allocation18_spill] sm:$0xff] }
 0x1de   : > { %3016 = vst [vmem:[#allocation30_spill] sm:$0xff] %v2797_v7  ;;  %v3039_v7 = vld [vmem:[#allocation17_spill] sm:$0xff] }
 0x1df   : > { %v1319_v53 = vsub.f32 1.5, %v1318_v11  ;;  %3017 = vst [vmem:[#allocation31_spill] sm:$0xff] %v2800_v0 }
 0x1e0   : > { %3018 = vst [vmem:[#allocation32_spill] sm:$0xff] %v2803_v57  ;;  %v3037_v57 = vld [vmem:[#allocation12_spill] sm:$0xff] }
 0x1e1   : > { %v1320_v2 = vmul.f32 %v1906_v58, %v1319_v53  ;;  %3019 = vst [vmem:[#allocation33_spill] sm:$0xff] %v2806_v5  ;;  %v3029_v53 = vld [vmem:[#allocation16_spill] sm:$0xff] }
 0x1e2   : > { %3020 = vst [vmem:[#allocation34_spill] sm:$0xff] %v2809_v52 }
 0x1e3   : > { %v1324_v34 = vsel %vm1323_vm7, %v1906_v58, %v1320_v2 }
 0x1e4   : > { %v1325_v27 = vmul.f32 %v1324_v34, %v2389_v19  ;;  %v1326_v56 = vmul.f32 %v1324_v34, %v2393_v41  ;;  %v1327_v10 = vmul.f32 %v1324_v34, %v2409_v16  ;;  %v1328_v47 = vmul.f32 %v1324_v34, %v2423_v33 }
 0x1e5   : > { %v1329_v37 = vmul.f32 %v1324_v34, %v2433_v59  ;;  %v1330_v22 = vmul.f32 %v1324_v34, %v2445_v13  ;;  %v1331_v26 = vmul.f32 %v1324_v34, %v2457_v6  ;;  %v1332_v39 = vmul.f32 %v1324_v34, %v3021_v17  ;;  %v3028_v6 = vld [vmem:[#allocation15_spill] sm:$0xff]  ;;  %v3030_v17 = vld [vmem:[#allocation22_spill] sm:$0xff] }
 0x1e6   : > { %v1333_v19 = vmul.f32 %v1324_v34, %v3022_v3  ;;  %v1334_v41 = vmul.f32 %v1324_v34, %v3023_v63  ;;  %v1335_v16 = vmul.f32 %v1324_v34, %v3024_v31  ;;  %v1336_v33 = vmul.f32 %v1324_v34, %v3025_v21  ;;  %v3031_v63 = vld [vmem:[#allocation3_spill] sm:$0xff]  ;;  %v3032_v21 = vld [vmem:[#allocation4_spill] sm:$0xff] }
 0x1e7   : > { %v1337_v54 = vmul.f32 %v1324_v34, %v2529_v28  ;;  %v1338_v58 = vmul.f32 %v1324_v34, %v2541_v30  ;;  %v1339_v59 = vmul.f32 %v1324_v34, %v3026_v50  ;;  %v1340_v13 = vmul.f32 %v1324_v34, %v3027_v14  ;;  %v3033_v28 = vld [vmem:[#allocation5_spill] sm:$0xff]  ;;  %v3034_v30 = vld [vmem:[#allocation6_spill] sm:$0xff]  ;;  %v3035_v50 = vld [vmem:[#allocation8_spill] sm:$0xff] }
 0x1e8   : > { %v1341_v11 = vmul.f32 %v1324_v34, %v3028_v6  ;;  %v1342_v2 = vmul.f32 %v1324_v34, %v3029_v53  ;;  %v1343_v3 = vmul.f32 %v1324_v34, %v3030_v17  ;;  %v1344_v31 = vmul.f32 %v1324_v34, %v3031_v63  ;;  %v3036_v14 = vld [vmem:[#allocation10_spill] sm:$0xff] }
 0x1e9   : > { %v1345_v25 = vmul.f32 %v1324_v34, %v3032_v21  ;;  %v1346_v42 = vmul.f32 %v1324_v34, %v3033_v28  ;;  %v1347_v43 = vmul.f32 %v1324_v34, %v3034_v30  ;;  %v1348_v52 = vmul.f32 %v1324_v34, %v3035_v50 }
 0x1ea   : > { %v1349_v5 = vmul.f32 %v1324_v34, %v3036_v14  ;;  %v1350_v6 = vmul.f32 %v1324_v34, %v2671_v36  ;;  %v1351_v0 = vmul.f32 %v1324_v34, %v3037_v57  ;;  %v1352_v53 = vmul.f32 %v1324_v34, %v3038_v40 }
 0x1eb   : > { %v1353_v17 = vmul.f32 %v1324_v34, %v3039_v7  ;;  %v1354_v63 = vmul.f32 %v1324_v34, %v3040_v60  ;;  %v1355_v21 = vmul.f32 %v1324_v34, %v3041_v51  ;;  %v1356_v28 = vmul.f32 %v1324_v34, %v2707_v46 }
 0x1ec   : > { %v1357_v30 = vadd.f32 %v1325_v27, %v2728_v4  ;;  %v1358_v36 = vadd.f32 %v1326_v56, %v2731_v45  ;;  %v1359_v57 = vadd.f32 %v1327_v10, %v2734_v55  ;;  %v1360_v40 = vadd.f32 %v1328_v47, %v2737_v32 }
 0x1ed   : > { %v1361_v7 = vadd.f32 %v1329_v37, %v2740_v44  ;;  %v1362_v60 = vadd.f32 %v1330_v22, %v2743_v18  ;;  %v1363_v51 = vadd.f32 %v1331_v26, %v2746_v38  ;;  %v1364_v46 = vadd.f32 %v1332_v39, %v2749_v1  ;;  %v3047_v22 = vld [vmem:[#allocation32_spill] sm:$0xff]  ;;  %v3048_v26 = vld [vmem:[#allocation33_spill] sm:$0xff] }
 0x1ee   : > { %v1365_v34 = vadd.f32 %v1333_v19, %v2752_v62  ;;  %v1366_v50 = vadd.f32 %v1334_v41, %v2755_v48  ;;  %v1367_v4 = vadd.f32 %v1335_v16, %v2758_v35  ;;  %v1368_v45 = vadd.f32 %v1336_v33, %v2761_v15  ;;  %v3042_v15 = vld [vmem:[#allocation28_spill] sm:$0xff] }
 0x1ef   : > { %v1369_v55 = vadd.f32 %v1337_v54, %v2764_v49  ;;  %v1370_v32 = vadd.f32 %v1338_v58, %v2767_v23  ;;  %v1371_v44 = vadd.f32 %v1339_v59, %v2770_v9  ;;  %v1372_v18 = vadd.f32 %v1340_v13, %v2773_v12  ;;  %v3043_v49 = vld [vmem:[#allocation29_spill] sm:$0xff]  ;;  %v3044_v23 = vld [vmem:[#allocation30_spill] sm:$0xff]  ;;  %v3045_v9 = vld [vmem:[#allocation24_spill] sm:$0xff] }
 0x1f0   : > { %v1373_v38 = vadd.f32 %v1341_v11, %v2776_v8  ;;  %v1374_v1 = vadd.f32 %v1342_v2, %v2779_v61  ;;  %v1375_v62 = vadd.f32 %v1343_v3, %v2782_v29  ;;  %v1376_v48 = vadd.f32 %v1344_v31, %v2785_v20  ;;  %v3046_v12 = vld [vmem:[#allocation31_spill] sm:$0xff]  ;;  %v3050_v29 = vld [vmem:[#allocation25_spill] sm:$0xff] }
 0x1f1   : > { %v1377_v35 = vadd.f32 %v1345_v25, %v2788_v24  ;;  %v1378_v27 = vadd.f32 %v1346_v42, %v3042_v15  ;;  %v1379_v56 = vadd.f32 %v1347_v43, %v3043_v49  ;;  %v1380_v10 = vadd.f32 %v1348_v52, %v3044_v23  ;;  %v3049_v25 = vld [vmem:[#allocation34_spill] sm:$0xff]  ;;  %v3051_v20 = vld [vmem:[#allocation27_spill] sm:$0xff] }
 0x1f2   : > { %v1381_v47 = vadd.f32 %v1349_v5, %v3045_v9  ;;  %v1382_v37 = vadd.f32 %v1350_v6, %v3046_v12  ;;  %v1383_v8 = vadd.f32 %v1351_v0, %v3047_v22  ;;  %v1384_v61 = vadd.f32 %v1352_v53, %v3048_v26  ;;  %v3052_v5 = vld [vmem:[#allocation26_spill] sm:$0xff] }
 0x1f3   : > { %v1385_v42 = vadd.f32 %v1353_v17, %v3049_v25  ;;  %v1386_v43 = vadd.f32 %v1354_v63, %v3050_v29  ;;  %v1387_v24 = vadd.f32 %v1355_v21, %v3051_v20  ;;  %v1388_v52 = vadd.f32 %v1356_v28, %v3052_v5 }
 0x1f4   : > { %v1781_v39 = vpack.c.bf16 %v1358_v36, %v1357_v30  ;;  %v1786_v19 = vpack.c.bf16 %v1360_v40, %v1359_v57  ;;  %v1791_v0 = vpack.c.bf16 %v1362_v60, %v1361_v7  ;;  %v1796_v41 = vpack.c.bf16 %v1364_v46, %v1363_v51 }
 0x1f5   : > { %v1801_v16 = vpack.c.bf16 %v1366_v50, %v1365_v34  ;;  %v1806_v33 = vpack.c.bf16 %v1368_v45, %v1367_v4  ;;  %v1811_v54 = vpack.c.bf16 %v1370_v32, %v1369_v55  ;;  %v1816_v58 = vpack.c.bf16 %v1372_v18, %v1371_v44 }
 0x1f6   : > { %1782 = vst [vmem:[%s2885_s18] sm:$0xff] %v1781_v39   ;;  %v1821_v59 = vpack.c.bf16 %v1374_v1, %v1373_v38  ;;  %v1826_v13 = vpack.c.bf16 %v1376_v48, %v1375_v62  ;;  %v1831_v11 = vpack.c.bf16 %v1378_v27, %v1377_v35  ;;  %v1836_v2 = vpack.c.bf16 %v1380_v10, %v1379_v56 }
 0x1f7   : > { %1858 = vst [vmem:[%s2885_s18 + $0x8] sm:$0xff] %v1786_v19   ;;  %v1841_v3 = vpack.c.bf16 %v1382_v37, %v1381_v47  ;;  %v1846_v31 = vpack.c.bf16 %v1384_v61, %v1383_v8  ;;  %v1851_v14 = vpack.c.bf16 %v1386_v43, %v1385_v42  ;;  %v1856_v6 = vpack.c.bf16 %v1388_v52, %v1387_v24 }
 0x1f8   : > { %1859 = vst [vmem:[%s2885_s18 + $0x10] sm:$0xff] %v1791_v0  }
 0x1f9   : > { %1860 = vst [vmem:[%s2885_s18 + $0x18] sm:$0xff] %v1796_v41  }
 0x1fa   : > { %1861 = vst [vmem:[%s2885_s18 + $0x20] sm:$0xff] %v1801_v16  }
 0x1fb   : > { %1862 = vst [vmem:[%s2885_s18 + $0x28] sm:$0xff] %v1806_v33  }
 0x1fc   : > { %1863 = vst [vmem:[%s2885_s18 + $0x30] sm:$0xff] %v1811_v54  }
 0x1fd   : > { %1864 = vst [vmem:[%s2885_s18 + $0x38] sm:$0xff] %v1816_v58  }
 0x1fe   : > { %1865 = vst [vmem:[%s2885_s18 + $0x40] sm:$0xff] %v1821_v59  }
 0x1ff   : > { %1866 = vst [vmem:[%s2885_s18 + $0x48] sm:$0xff] %v1826_v13  }
 0x200   : > { %1867 = vst [vmem:[%s2885_s18 + $0x50] sm:$0xff] %v1831_v11  }
 0x201   : > { %1868 = vst [vmem:[%s2885_s18 + $0x58] sm:$0xff] %v1836_v2  }
 0x202   : > { %1869 = vst [vmem:[%s2885_s18 + $0x60] sm:$0xff] %v1841_v3  }
 0x203   : > { %1870 = vst [vmem:[%s2885_s18 + $0x68] sm:$0xff] %v1846_v31  }
 0x204   : > { %1871 = vst [vmem:[%s2885_s18 + $0x70] sm:$0xff] %v1851_v14  }
 0x205   : > { %1872 = vst [vmem:[%s2885_s18 + $0x78] sm:$0xff] %v1856_v6  }
 0x206 PF: > { %p9_p9 = scmp.ge.s32.totalorder %s1963_s13, 4   ;;  %s3053_s9 = smov %s1925_s10 }
 0x207   : > { %s3054_s10 = smov %s1972_s16  ;;  %s3055_s11 = smov %s1963_s13 }
 0x208   :  { %11 = sbr.rel (!%p9_p9) target bundleno = 2 (0x2), region = 106 }

// kernel: net_forward.28
= control target key start
LH: loop header
LB: loop body
LE: loop exit
PB: predicated region body
PF: predicated region fallthrough
CT: control target
= control target key end

     0   :  { %s979_s9 = smov 0   ;;  %s1362_s0 = inlined_call_operand.vmem [shape: bf16[1,512,36], index: 0, kind: input, shape index: {}]   ;;  %s1363_s1 = inlined_call_operand.vmem [shape: bf16[1,36,128], index: 1, kind: input, shape index: {}]   ;;  %s1364_s2 = inlined_call_operand.vmem [shape: bf16[512,128], index: 2, kind: output, shape index: {}]  }
   0x1 LB: > { %s725_s10 = sadd.s32 4294967295, %s962_s9   ;;  %p729_p0 = scmp.ge.s32.totalorder %s962_s9, 1  ;;  %s962_s9 = sphi %s979_s9, %s12_s9  }
   0x2   : > { %p113_p1 = scmp.lt.s32.totalorder %s962_s9, 3 }
   0x4   : > { %p114_p2 = pnand %p729_p0, %p113_p1 }
   0x5   : > { %s730_s13 = sshll.u32 (!%p114_p2), %s725_s10, 5 }
   0x6   : > { %117 = sbr.rel (%p114_p2) target bundleno = 396 (0x18c), region = 28  ;;  %p136_p3 = scmp.lt.s32.totalorder (!%p114_p2), %s730_s13, 63 }
   0xb   : > { %v184_v0 = vld [vmem:[%s1363_s1 + $0x10] sm:$0x3]  ;;  %vm329_vm0 = vcmask 1041408   ;;  %s1366_s13 = smov (!%p136_p3, %s730_s13), 63  ;;  %v841_v4 = vld [vmem:[%s1363_s1 + $0x8] sm:$0xff]  ;;  %v840_v5 = vld [vmem:[%s1363_s1] sm:$0xff] }
   0xc   : > { %v274_v1 = vunpack.c.l.b16 %v184_v0  ;;  %s731_s16 = sshll.u32 %s1366_s13, 2  ;;  %vm280_vm1 = vcmask 293888  }
   0xd   : > { %s1004_s21 = scalar_lea.vmem %s1362_s0, %s731_s16  ;;  %s1325_s24 = scalar_lea.vmem %s1364_s2, %s731_s16 }
   0xe   : > { %v277_v2 = vpack.c.b16 %v274_v1, %v274_v1  ;;  %v824_v6 = vld [vmem:[%s1004_s21] sm:$0xff]  ;;  %v825_v10 = vld [vmem:[%s1004_s21 + $0x8] sm:$0xff]  ;;  %v826_v14 = vld [vmem:[%s1004_s21 + $0x10] sm:$0xff] }
   0xf   : > { %v828_v7 = vld [vmem:[%s1004_s21 + $0x20] sm:$0xff]  ;;  %v829_v11 = vld [vmem:[%s1004_s21 + $0x28] sm:$0xff]  ;;  %v830_v15 = vld [vmem:[%s1004_s21 + $0x30] sm:$0xff] }
  0x10   : > { %v331_v3 = vsel %vm329_vm0, %v277_v2, 0  ;;  %v832_v8 = vld [vmem:[%s1004_s21 + $0x40] sm:$0xff]  ;;  %v833_v12 = vld [vmem:[%s1004_s21 + $0x48] sm:$0xff]  ;;  %v834_v16 = vld [vmem:[%s1004_s21 + $0x50] sm:$0xff] }
  0x11   : > { %338 = vmatpush.bf16.msra.mxu0 %v331_v3  ;;  %937 = vmatpush.bf16.msra.mxu1 %v331_v3  ;;  %v836_v9 = vld [vmem:[%s1004_s21 + $0x60] sm:$0xff]  ;;  %v837_v13 = vld [vmem:[%s1004_s21 + $0x68] sm:$0xff]  ;;  %v838_v17 = vld [vmem:[%s1004_s21 + $0x70] sm:$0xff] }
  0x12   : > { %938 = vmatpush.bf16.msra.mxu2 %v331_v3  ;;  %939 = vmatpush.bf16.msra.mxu3 %v331_v3  ;;  %v827_v18 = vld [vmem:[%s1004_s21 + $0x18] sm:$0xff] }
  0x13   : > { %v831_v19 = vld [vmem:[%s1004_s21 + $0x38] sm:$0xff] }
  0x14   : > { %v835_v20 = vld [vmem:[%s1004_s21 + $0x58] sm:$0xff] }
  0x15   : > { %339 = vmatpush.bf16.msra.mxu0 %v841_v4  ;;  %940 = vmatpush.bf16.msra.mxu1 %v841_v4  ;;  %v839_v21 = vld [vmem:[%s1004_s21 + $0x78] sm:$0xff] }
  0x16   : > { %941 = vmatpush.bf16.msra.mxu2 %v841_v4  ;;  %942 = vmatpush.bf16.msra.mxu3 %v841_v4 }
  0x19   : > { %340 = vmatpush.bf16.msra.mxu0 %v840_v5  ;;  %943 = vmatpush.bf16.msra.mxu1 %v840_v5 }
  0x1a   : > { %944 = vmatpush.bf16.msra.mxu2 %v840_v5  ;;  %945 = vmatpush.bf16.msra.mxu3 %v840_v5 }
  0x1c   : > { %806 = vmatmul.msk.bf16.vlgmr.msra.gmra.mxu0 %vm280_vm1, %v824_v6  ;;  %810 = vmatmul.msk.bf16.vlgmr.msra.gmra.mxu1 %vm280_vm1, %v828_v7 }
  0x1d   : > { %814 = vmatmul.msk.bf16.vlgmr.msra.gmra.mxu2 %vm280_vm1, %v832_v8  ;;  %818 = vmatmul.msk.bf16.vlgmr.msra.gmra.mxu3 %vm280_vm1, %v836_v9 }
  0x2c   : > { %807 = vmatmul.msk.bf16.gmra.mxu0 %vm280_vm1, %v825_v10  ;;  %811 = vmatmul.msk.bf16.gmra.mxu1 %vm280_vm1, %v829_v11 }
  0x2d   : > { %815 = vmatmul.msk.bf16.gmra.mxu2 %vm280_vm1, %v833_v12  ;;  %819 = vmatmul.msk.bf16.gmra.mxu3 %vm280_vm1, %v837_v13 }
  0x3c   : > { %808 = vmatmul.msk.bf16.gmra.mxu0 %vm280_vm1, %v826_v14  ;;  %812 = vmatmul.msk.bf16.gmra.mxu1 %vm280_vm1, %v830_v15 }
  0x3d   : > { %816 = vmatmul.msk.bf16.gmra.mxu2 %vm280_vm1, %v834_v16  ;;  %820 = vmatmul.msk.bf16.gmra.mxu3 %vm280_vm1, %v838_v17 }
  0x4c   : > { %809 = vmatmul.msk.bf16.gmra.mxu0 %vm280_vm1, %v827_v18  ;;  %813 = vmatmul.msk.bf16.gmra.mxu1 %vm280_vm1, %v831_v19 }
  0x4d   : > { %817 = vmatmul.msk.bf16.gmra.mxu2 %vm280_vm1, %v835_v20  ;;  %821 = vmatmul.msk.bf16.gmra.mxu3 %vm280_vm1, %v839_v21 }
  0x99   : > { %v1038_v22 = vpop.f32.mrf.mxu0  ;;  %v1040_v23 = vpop.f32.mrf.mxu1 }
  0xa0   : > { %v1048_v27 = vpop.f32.mrf.mxu2  ;;  %v1060_v33 = vpop.f32.mrf.mxu3 }
  0xa1   : > { %v1042_v24 = vpop.f32.mrf.mxu0  ;;  %v1044_v25 = vpop.f32.mrf.mxu1 }
  0xa2   : > { %v422_v38 = vadd.f32 %v1042_v24, %v1038_v22 }
  0xa8   : > { %v1054_v30 = vpop.f32.mrf.mxu2  ;;  %v1068_v37 = vpop.f32.mrf.mxu3 }
  0xa9   : > { %v1046_v26 = vpop.f32.mrf.mxu0  ;;  %v1050_v28 = vpop.f32.mrf.mxu1 }
  0xaa   : > { %v423_v39 = vadd.f32 %v422_v38, %v1046_v26 }
  0xb0   : > { %v1062_v34 = vpop.f32.mrf.mxu2  ;;  %v1082_v46 = vpop.f32.mrf.mxu3 }
  0xb1   : > { %v1052_v29 = vpop.f32.mrf.mxu0  ;;  %v1058_v32 = vpop.f32.mrf.mxu1 }
  0xb2   : > { %v424_v42 = vadd.f32 %v423_v39, %v1052_v29 }
  0xb8   : > { %v1075_v41 = vpop.f32.mrf.mxu2  ;;  %v1092_v55 = vpop.f32.mrf.mxu3 }
  0xb9   : > { %v1056_v31 = vpop.f32.mrf.mxu0  ;;  %v1066_v36 = vpop.f32.mrf.mxu1 }
  0xba   : > { %v425_v43 = vadd.f32 %v424_v42, %v1056_v31 }
  0xc0   : > { %v1085_v50 = vpop.f32.mrf.mxu2  ;;  %v1103_v63 = vpop.f32.mrf.mxu3 }
  0xc1   : > { %v1064_v35 = vpop.f32.mrf.mxu0  ;;  %v1079_v44 = vpop.f32.mrf.mxu1 }
  0xc2   : > { %v426_v45 = vadd.f32 %v425_v43, %v1064_v35 }
  0xc8   : > { %v1096_v58 = vpop.f32.mrf.mxu2  ;;  %v1112_v6 = vpop.f32.mrf.mxu3 }
  0xc9   : > { %v1073_v40 = vpop.f32.mrf.mxu0  ;;  %v1089_v53 = vpop.f32.mrf.mxu1 }
  0xca   : > { %v427_v47 = vadd.f32 %v426_v45, %v1073_v40 }
  0xd0   : > { %v1107_v2 = vpop.f32.mrf.mxu2  ;;  %v1121_v13 = vpop.f32.mrf.mxu3 }
  0xd1   : > { %v359_v48 = vpop.f32.mrf.mxu0  ;;  %v1100_v61 = vpop.f32.mrf.mxu1 }
  0xd2   : > { %v428_v49 = vadd.f32 %v427_v47, %v359_v48 }
  0xd4   : > { %v429_v51 = vadd.f32 %v428_v49, %v1040_v23 }
  0xd6   : > { %v430_v52 = vadd.f32 %v429_v51, %v1044_v25 }
  0xd8   : > { %v431_v54 = vadd.f32 %v430_v52, %v1050_v28  ;;  %v1116_v9 = vpop.f32.mrf.mxu2  ;;  %v1128_v19 = vpop.f32.mrf.mxu3 }
  0xda   : > { %v432_v56 = vadd.f32 %v431_v54, %v1058_v32 }
  0xdc   : > { %v433_v57 = vadd.f32 %v432_v56, %v1066_v36 }
  0xde   : > { %v434_v59 = vadd.f32 %v433_v57, %v1079_v44 }
  0xe0   : > { %v435_v60 = vadd.f32 %v434_v59, %v1089_v53 }
  0xe2   : > { %v436_v62 = vadd.f32 %v435_v60, %v1100_v61 }
  0xe4   : > { %v437_v0 = vadd.f32 %v436_v62, %v1048_v27 }
  0xe6   : > { %v438_v1 = vadd.f32 %v437_v0, %v1054_v30 }
  0xe8   : > { %v439_v3 = vadd.f32 %v438_v1, %v1062_v34 }
  0xea   : > { %v440_v4 = vadd.f32 %v439_v3, %v1075_v41 }
  0xec   : > { %v441_v5 = vadd.f32 %v440_v4, %v1085_v50 }
  0xee   : > { %v442_v7 = vadd.f32 %v441_v5, %v1096_v58 }
  0xf0   : > { %v443_v8 = vadd.f32 %v442_v7, %v1107_v2 }
  0xf2   : > { %v444_v10 = vadd.f32 %v443_v8, %v1116_v9 }
  0xf4   : > { %v445_v11 = vadd.f32 %v444_v10, %v1060_v33 }
  0xf6   : > { %v446_v12 = vadd.f32 %v445_v11, %v1068_v37 }
  0xf8   : > { %v447_v14 = vadd.f32 %v446_v12, %v1082_v46 }
  0xfa   : > { %v448_v15 = vadd.f32 %v447_v14, %v1092_v55 }
  0xfc   : > { %v449_v16 = vadd.f32 %v448_v15, %v1103_v63 }
  0xfe   : > { %v450_v17 = vadd.f32 %v449_v16, %v1112_v6 }
 0x100   : > { %v451_v18 = vadd.f32 %v450_v17, %v1121_v13 }
 0x102   : > { %v452_v20 = vadd.f32 %v451_v18, %v1128_v19 }
 0x104   : > { %v453_v21 = vrot.slane %v452_v20, 4 }
 0x106   : > { %v454_v38 = vadd.f32 %v453_v21, %v452_v20 }
 0x108   : > { %v455_v39 = vrot.slane %v454_v38, 2 }
 0x10a   : > { %v456_v42 = vadd.f32 %v455_v39, %v454_v38 }
 0x10c   : > { %v457_v43 = vrot.slane %v456_v42, 1 }
 0x10e   : > { %v458_v45 = vadd.f32 %v457_v43, %v456_v42 }
 0x110   : > { %v1131_v47 = vmul.f32 0.00390625, %v458_v45 }
 0x112   : > { %v1135_v49 = vsub.f32 %v1038_v22, %v1131_v47  ;;  %v1139_v51 = vsub.f32 %v1042_v24, %v1131_v47  ;;  %v1143_v52 = vsub.f32 %v1046_v26, %v1131_v47  ;;  %v1151_v57 = vsub.f32 %v1052_v29, %v1131_v47 }
 0x113   : > { %v1155_v22 = vsub.f32 %v1056_v31, %v1131_v47  ;;  %v1161_v26 = vsub.f32 %v1064_v35, %v1131_v47  ;;  %v1167_v29 = vsub.f32 %v1073_v40, %v1131_v47  ;;  %v1172_v1 = vsub.f32 %v359_v48, %v1131_v47 }
 0x114   : > { %v492_v54 = vmul.f32 %v1135_v49, %v1135_v49  ;;  %v493_v56 = vmul.f32 %v1139_v51, %v1139_v51  ;;  %v494_v24 = vmul.f32 %v1143_v52, %v1143_v52  ;;  %v495_v60 = vmul.f32 %v1151_v57, %v1151_v57 }
 0x115   : > { %v496_v31 = vmul.f32 %v1155_v22, %v1155_v22  ;;  %v497_v3 = vmul.f32 %v1161_v26, %v1161_v26  ;;  %v1178_v4 = vsub.f32 %v1040_v23, %v1131_v47  ;;  %v498_v5 = vmul.f32 %v1167_v29, %v1167_v29 }
 0x116   : > { %v524_v59 = vadd.f32 %v493_v56, %v492_v54  ;;  %v1184_v7 = vsub.f32 %v1044_v25, %v1131_v47  ;;  %v499_v48 = vmul.f32 %v1172_v1, %v1172_v1  ;;  %v1190_v10 = vsub.f32 %v1050_v28, %v1131_v47 }
 0x117   : > { %v500_v23 = vmul.f32 %v1178_v4, %v1178_v4  ;;  %v1196_v12 = vsub.f32 %v1058_v32, %v1131_v47  ;;  %v1202_v15 = vsub.f32 %v1066_v36, %v1131_v47  ;;  %v1208_v17 = vsub.f32 %v1079_v44, %v1131_v47 }
 0x118   : > { %v525_v62 = vadd.f32 %v524_v59, %v494_v24  ;;  %v501_v25 = vmul.f32 %v1184_v7, %v1184_v7  ;;  %v502_v28 = vmul.f32 %v1190_v10, %v1190_v10  ;;  %v1214_v20 = vsub.f32 %v1089_v53, %v1131_v47 }
 0x119   : > { %v503_v32 = vmul.f32 %v1196_v12, %v1196_v12  ;;  %v504_v36 = vmul.f32 %v1202_v15, %v1202_v15  ;;  %v1220_v38 = vsub.f32 %v1100_v61, %v1131_v47  ;;  %v505_v44 = vmul.f32 %v1208_v17, %v1208_v17 }
 0x11a   : > { %v526_v0 = vadd.f32 %v525_v62, %v495_v60  ;;  %v1226_v42 = vsub.f32 %v1048_v27, %v1131_v47  ;;  %v506_v53 = vmul.f32 %v1214_v20, %v1214_v20  ;;  %v1232_v45 = vsub.f32 %v1054_v30, %v1131_v47 }
 0x11b   : > { %v507_v61 = vmul.f32 %v1220_v38, %v1220_v38  ;;  %v1238_v56 = vsub.f32 %v1062_v34, %v1131_v47  ;;  %v1244_v59 = vsub.f32 %v1075_v41, %v1131_v47  ;;  %v1250_v62 = vsub.f32 %v1085_v50, %v1131_v47 }
 0x11c   : > { %v527_v35 = vadd.f32 %v526_v0, %v496_v31  ;;  %v508_v27 = vmul.f32 %v1226_v42, %v1226_v42  ;;  %v509_v30 = vmul.f32 %v1232_v45, %v1232_v45  ;;  %v1256_v0 = vsub.f32 %v1096_v58, %v1131_v47 }
 0x11d   : > { %v510_v34 = vmul.f32 %v1238_v56, %v1238_v56  ;;  %v511_v41 = vmul.f32 %v1244_v59, %v1244_v59  ;;  %v512_v50 = vmul.f32 %v1250_v62, %v1250_v62 }
 0x11e   : > { %v528_v40 = vadd.f32 %v527_v35, %v497_v3  ;;  %v1262_v35 = vsub.f32 %v1107_v2, %v1131_v47  ;;  %v513_v58 = vmul.f32 %v1256_v0, %v1256_v0 }
 0x120   : > { %v529_v8 = vadd.f32 %v528_v40, %v498_v5  ;;  %v1268_v40 = vsub.f32 %v1116_v9, %v1131_v47  ;;  %v1282_v9 = vsub.f32 %v1082_v46, %v1131_v47  ;;  %v1296_v46 = vsub.f32 %v1112_v6, %v1131_v47 }
 0x122   : > { %v530_v11 = vadd.f32 %v529_v8, %v499_v48  ;;  %v484_v8 = vsub.f32 %v1060_v33, %v1131_v47  ;;  %v1286_v33 = vsub.f32 %v1092_v55, %v1131_v47  ;;  %v490_v55 = vsub.f32 %v1121_v13, %v1131_v47 }
 0x124   : > { %v531_v14 = vadd.f32 %v530_v11, %v500_v23  ;;  %v514_v23 = vmul.f32 %v1262_v35, %v1262_v35  ;;  %v485_v11 = vsub.f32 %v1068_v37, %v1131_v47  ;;  %v518_v37 = vmul.f32 %v1282_v9, %v1282_v9 }
 0x125   : > { %v522_v6 = vmul.f32 %v490_v55, %v490_v55 }
 0x126   : > { %v532_v16 = vadd.f32 %v531_v14, %v501_v25  ;;  %v515_v25 = vmul.f32 %v1268_v40, %v1268_v40 }
 0x128   : > { %v533_v18 = vadd.f32 %v532_v16, %v502_v28  ;;  %v516_v28 = vmul.f32 %v484_v8, %v484_v8 }
 0x12a   : > { %v534_v21 = vadd.f32 %v533_v18, %v503_v32  ;;  %v517_v32 = vmul.f32 %v485_v11, %v485_v11 }
 0x12c   : > { %v535_v39 = vadd.f32 %v534_v21, %v504_v36  ;;  %v1290_v36 = vsub.f32 %v1103_v63, %v1131_v47 }
 0x12e   : > { %v536_v43 = vadd.f32 %v535_v39, %v505_v44  ;;  %v519_v44 = vmul.f32 %v1286_v33, %v1286_v33 }
 0x130   : > { %v537_v54 = vadd.f32 %v536_v43, %v506_v53  ;;  %v520_v53 = vmul.f32 %v1290_v36, %v1290_v36  ;;  %v491_v43 = vsub.f32 %v1128_v19, %v1131_v47 }
 0x132   : > { %v538_v24 = vadd.f32 %v537_v54, %v507_v61  ;;  %v521_v61 = vmul.f32 %v1296_v46, %v1296_v46 }
 0x134   : > { %v539_v60 = vadd.f32 %v538_v24, %v508_v27  ;;  %v523_v24 = vmul.f32 %v491_v43, %v491_v43 }
 0x136   : > { %v540_v31 = vadd.f32 %v539_v60, %v509_v30 }
 0x138   : > { %v541_v3 = vadd.f32 %v540_v31, %v510_v34 }
 0x13a   : > { %v542_v5 = vadd.f32 %v541_v3, %v511_v41 }
 0x13c   : > { %v543_v48 = vadd.f32 %v542_v5, %v512_v50 }
 0x13e   : > { %v544_v2 = vadd.f32 %v543_v48, %v513_v58 }
 0x140   : > { %v545_v14 = vadd.f32 %v544_v2, %v514_v23 }
 0x142   : > { %v546_v16 = vadd.f32 %v545_v14, %v515_v25 }
 0x144   : > { %v547_v18 = vadd.f32 %v546_v16, %v516_v28 }
 0x146   : > { %v548_v21 = vadd.f32 %v547_v18, %v517_v32 }
 0x148   : > { %v549_v39 = vadd.f32 %v548_v21, %v518_v37 }
 0x14a   : > { %v550_v63 = vadd.f32 %v549_v39, %v519_v44 }
 0x14c   : > { %v551_v54 = vadd.f32 %v550_v63, %v520_v53 }
 0x14e   : > { %v552_v27 = vadd.f32 %v551_v54, %v521_v61 }
 0x150   : > { %v553_v30 = vadd.f32 %v552_v27, %v522_v6 }
 0x152   : > { %v554_v60 = vadd.f32 %v553_v30, %v523_v24 }
 0x154   : > { %v555_v34 = vrot.slane %v554_v60, 4 }
 0x156   : > { %v556_v31 = vadd.f32 %v555_v34, %v554_v60 }
 0x158   : > { %v557_v41 = vrot.slane %v556_v31, 2 }
 0x15a   : > { %v558_v13 = vadd.f32 %v557_v41, %v556_v31 }
 0x15c   : > { %v559_v3 = vrot.slane %v558_v13, 1 }
 0x15e   : > { %v560_v50 = vadd.f32 %v559_v3, %v558_v13 }
 0x160   : > { %v561_v5 = vmul.f32 0.00390625, %v560_v50 }
 0x162   : > { %v562_v58 = vadd.f32 1e-05, %v561_v5 }
 0x164   : > { %954 = vrsqrt.f32 %v562_v58  ;;  %vm569_vm3 = vweird.f32 %v562_v58 }
 0x16a   : > { %v955_v48 = vpop.eup %954 }
 0x16b   : > { %v564_v19 = vmul.f32 %v955_v48, %v562_v58  ;;  %vm570_vm2 = vweird.f32 %v955_v48 }
 0x16c   : > { %vm571_vm4 = vmor %vm569_vm3, %vm570_vm2 }
 0x16d   : > { %v565_v47 = vmul.f32 %v955_v48, %v564_v19 }
 0x16f   : > { %v566_v23 = vmul.f32 0.5, %v565_v47 }
 0x171   : > { %v567_v2 = vsub.f32 1.5, %v566_v23 }
 0x173   : > { %v568_v25 = vmul.f32 %v955_v48, %v567_v2 }
 0x175   : > { %v572_v14 = vsel %vm571_vm4, %v955_v48, %v568_v25 }
 0x176   : > { %v573_v28 = vmul.f32 %v572_v14, %v1135_v49  ;;  %v574_v16 = vmul.f32 %v572_v14, %v1139_v51  ;;  %v575_v32 = vmul.f32 %v572_v14, %v1143_v52  ;;  %v576_v18 = vmul.f32 %v572_v14, %v1151_v57 }
 0x177   : > { %v577_v37 = vmul.f32 %v572_v14, %v1155_v22  ;;  %v578_v21 = vmul.f32 %v572_v14, %v1161_v26  ;;  %v579_v44 = vmul.f32 %v572_v14, %v1167_v29  ;;  %v580_v39 = vmul.f32 %v572_v14, %v1172_v1 }
 0x178   : > { %v581_v53 = vmul.f32 %v572_v14, %v1178_v4  ;;  %v582_v63 = vmul.f32 %v572_v14, %v1184_v7  ;;  %v583_v49 = vmul.f32 %v572_v14, %v1190_v10  ;;  %v584_v51 = vmul.f32 %v572_v14, %v1196_v12 }
 0x179   : > { %v597_v61 = vmul.f32 %v572_v14, %v484_v8  ;;  %v585_v52 = vmul.f32 %v572_v14, %v1202_v15  ;;  %v598_v57 = vmul.f32 %v572_v14, %v485_v11  ;;  %v603_v22 = vmul.f32 %v572_v14, %v490_v55 }
 0x17a   : > { %v604_v26 = vmul.f32 %v572_v14, %v491_v43  ;;  %v586_v29 = vmul.f32 %v572_v14, %v1208_v17  ;;  %v845_v1 = vpack.c.bf16 %v574_v16, %v573_v28  ;;  %v850_v4 = vpack.c.bf16 %v576_v18, %v575_v32 }
 0x17b   : > { %v855_v7 = vpack.c.bf16 %v578_v21, %v577_v37  ;;  %v587_v10 = vmul.f32 %v572_v14, %v1214_v20  ;;  %v588_v12 = vmul.f32 %v572_v14, %v1220_v38  ;;  %v860_v8 = vpack.c.bf16 %v580_v39, %v579_v44 }
 0x17c   : > { %v589_v54 = vmul.f32 %v572_v14, %v1226_v42  ;;  %v590_v15 = vmul.f32 %v572_v14, %v1232_v45  ;;  %v591_v11 = vmul.f32 %v572_v14, %v1238_v56  ;;  %846 = vst [vmem:[%s1325_s24] sm:$0xff] %v845_v1   ;;  %v865_v55 = vpack.c.bf16 %v582_v63, %v581_v53 }
 0x17d   : > { %v592_v17 = vmul.f32 %v572_v14, %v1244_v59  ;;  %922 = vst [vmem:[%s1325_s24 + $0x8] sm:$0xff] %v850_v4   ;;  %v870_v43 = vpack.c.bf16 %v584_v51, %v583_v49  ;;  %v905_v6 = vpack.c.bf16 %v598_v57, %v597_v61  ;;  %v920_v20 = vpack.c.bf16 %v604_v26, %v603_v22 }
 0x17e   : > { %v593_v38 = vmul.f32 %v572_v14, %v1250_v62  ;;  %v594_v42 = vmul.f32 %v572_v14, %v1256_v0  ;;  %923 = vst [vmem:[%s1325_s24 + $0x10] sm:$0xff] %v855_v7   ;;  %v875_v45 = vpack.c.bf16 %v586_v29, %v585_v52  ;;  %v595_v56 = vmul.f32 %v572_v14, %v1262_v35 }
 0x17f   : > { %v596_v27 = vmul.f32 %v572_v14, %v1268_v40  ;;  %924 = vst [vmem:[%s1325_s24 + $0x18] sm:$0xff] %v860_v8   ;;  %v880_v59 = vpack.c.bf16 %v588_v12, %v587_v10  ;;  %v885_v24 = vpack.c.bf16 %v590_v15, %v589_v54  ;;  %v599_v62 = vmul.f32 %v572_v14, %v1282_v9 }
 0x180   : > { %925 = vst [vmem:[%s1325_s24 + $0x20] sm:$0xff] %v865_v55   ;;  %v600_v0 = vmul.f32 %v572_v14, %v1286_v33  ;;  %v890_v30 = vpack.c.bf16 %v592_v17, %v591_v11  ;;  %v601_v35 = vmul.f32 %v572_v14, %v1290_v36  ;;  %v602_v40 = vmul.f32 %v572_v14, %v1296_v46 }
 0x181   : > { %926 = vst [vmem:[%s1325_s24 + $0x28] sm:$0xff] %v870_v43   ;;  %v895_v60 = vpack.c.bf16 %v594_v42, %v593_v38  ;;  %v900_v34 = vpack.c.bf16 %v596_v27, %v595_v56 }
 0x182   : > { %927 = vst [vmem:[%s1325_s24 + $0x30] sm:$0xff] %v875_v45   ;;  %v910_v31 = vpack.c.bf16 %v600_v0, %v599_v62  ;;  %v915_v9 = vpack.c.bf16 %v602_v40, %v601_v35 }
 0x183   : > { %928 = vst [vmem:[%s1325_s24 + $0x38] sm:$0xff] %v880_v59  }
 0x184   : > { %929 = vst [vmem:[%s1325_s24 + $0x40] sm:$0xff] %v885_v24  }
 0x185   : > { %930 = vst [vmem:[%s1325_s24 + $0x48] sm:$0xff] %v890_v30  }
 0x186   : > { %931 = vst [vmem:[%s1325_s24 + $0x50] sm:$0xff] %v895_v60  }
 0x187   : > { %932 = vst [vmem:[%s1325_s24 + $0x58] sm:$0xff] %v900_v34  }
 0x188   : > { %933 = vst [vmem:[%s1325_s24 + $0x60] sm:$0xff] %v905_v6  }
 0x189   : > { %934 = vst [vmem:[%s1325_s24 + $0x68] sm:$0xff] %v910_v31  }
 0x18a   : > { %935 = vst [vmem:[%s1325_s24 + $0x70] sm:$0xff] %v915_v9  }
 0x18b   : > { %936 = vst [vmem:[%s1325_s24 + $0x78] sm:$0xff] %v920_v20  }
 0x18c PF: > { %s12_s9 = sadd.s32 1, %s962_s9  }
 0x18d   : > { %p9_p4 = scmp.ge.s32.totalorder %s12_s9, 4  }
 0x18f   :  { %11 = sbr.rel (!%p9_p4) target bundleno = 1 (0x1), region = 58 }

// kernel: net_forward.29
= control target key start
LH: loop header
LB: loop body
LE: loop exit
PB: predicated region body
PF: predicated region fallthrough
CT: control target
= control target key end

     0   :  { %s1400_s9 = smov 0   ;;  %s1878_s0 = inlined_call_operand.vmem [shape: bf16[1,512,8], index: 0, kind: input, shape index: {}]   ;;  %s1879_s1 = inlined_call_operand.vmem [shape: bf16[1,8,128], index: 1, kind: input, shape index: {}]   ;;  %s1880_s2 = inlined_call_operand.vmem [shape: f32[512,128], index: 2, kind: output, shape index: {}]  }
   0x1 LB: > { %s1099_s10 = sadd.s32 4294967295, %s1383_s9   ;;  %p1103_p0 = scmp.ge.s32.totalorder %s1383_s9, 1  ;;  %s1383_s9 = sphi %s1400_s9, %s12_s9  }
   0x2   : > { %p113_p1 = scmp.lt.s32.totalorder %s1383_s9, 3 }
   0x4   : > { %p114_p2 = pnand %p1103_p0, %p113_p1 }
   0x5   : > { %s1104_s13 = sshll.u32 (!%p114_p2), %s1099_s10, 5 }
   0x6   : > { %117 = sbr.rel (%p114_p2) target bundleno = 285 (0x11d), region = 28  ;;  %p136_p3 = scmp.lt.s32.totalorder (!%p114_p2), %s1104_s13, 63 }
   0xb   : > { %v180_v0 = vld [vmem:[%s1879_s1] sm:$0xf]  ;;  %vm310_vm0 = vcmask 1043456   ;;  %s1928_s13 = smov (!%p136_p3, %s1104_s13), 63  ;;  %vm261_vm1 = vcmask 64512  }
   0xc   : > { %v312_v1 = vsel %vm310_vm0, %v180_v0, 0  ;;  %s1105_s14 = sshll.u32 %s1928_s13, 2  ;;  %s1107_s18 = sshll.u32 %s1928_s13, 3 }
   0xd   : > { %321 = vmatpush.bf16.msra.mxu0 %v312_v1  ;;  %1238 = vmatpush.bf16.msra.mxu1 %v312_v1  ;;  %s139_s17 = scalar_lea.vmem %s1878_s0, %s1105_s14  ;;  %s1467_s21 = scalar_lea.vmem %s1880_s2, %s1107_s18 }
   0xe   : > { %1239 = vmatpush.bf16.msra.mxu2 %v312_v1  ;;  %1240 = vmatpush.bf16.msra.mxu3 %v312_v1  ;;  %v1222_v2 = vld [vmem:[%s139_s17] sm:$0xff]  ;;  %v1223_v6 = vld [vmem:[%s139_s17 + $0x8] sm:$0xff]  ;;  %v1224_v10 = vld [vmem:[%s139_s17 + $0x10] sm:$0xff] }
   0xf   : > { %v1226_v3 = vld [vmem:[%s139_s17 + $0x20] sm:$0xff]  ;;  %v1227_v7 = vld [vmem:[%s139_s17 + $0x28] sm:$0xff]  ;;  %v1228_v11 = vld [vmem:[%s139_s17 + $0x30] sm:$0xff] }
  0x10   : > { %v1230_v4 = vld [vmem:[%s139_s17 + $0x40] sm:$0xff]  ;;  %1172 = vmatmul.msk.bf16.vlgmr.msra.gmra.mxu0 %vm261_vm1, %v1222_v2  ;;  %1176 = vmatmul.msk.bf16.vlgmr.msra.gmra.mxu1 %vm261_vm1, %v1226_v3  ;;  %v1231_v8 = vld [vmem:[%s139_s17 + $0x48] sm:$0xff]  ;;  %v1232_v12 = vld [vmem:[%s139_s17 + $0x50] sm:$0xff] }
  0x11   : > { %v1234_v5 = vld [vmem:[%s139_s17 + $0x60] sm:$0xff]  ;;  %1180 = vmatmul.msk.bf16.vlgmr.msra.gmra.mxu2 %vm261_vm1, %v1230_v4  ;;  %v1235_v9 = vld [vmem:[%s139_s17 + $0x68] sm:$0xff]  ;;  %v1236_v13 = vld [vmem:[%s139_s17 + $0x70] sm:$0xff] }
  0x12   : > { %1184 = vmatmul.msk.bf16.vlgmr.msra.gmra.mxu3 %vm261_vm1, %v1234_v5  ;;  %v1225_v14 = vld [vmem:[%s139_s17 + $0x18] sm:$0xff] }
  0x13   : > { %v1229_v15 = vld [vmem:[%s139_s17 + $0x38] sm:$0xff] }
  0x14   : > { %v1233_v16 = vld [vmem:[%s139_s17 + $0x58] sm:$0xff] }
  0x15   : > { %v1237_v17 = vld [vmem:[%s139_s17 + $0x78] sm:$0xff] }
  0x20   : > { %1173 = vmatmul.msk.bf16.gmra.mxu0 %vm261_vm1, %v1223_v6  ;;  %1177 = vmatmul.msk.bf16.gmra.mxu1 %vm261_vm1, %v1227_v7 }
  0x21   : > { %1181 = vmatmul.msk.bf16.gmra.mxu2 %vm261_vm1, %v1231_v8 }
  0x22   : > { %1185 = vmatmul.msk.bf16.gmra.mxu3 %vm261_vm1, %v1235_v9 }
  0x30   : > { %1174 = vmatmul.msk.bf16.gmra.mxu0 %vm261_vm1, %v1224_v10  ;;  %1178 = vmatmul.msk.bf16.gmra.mxu1 %vm261_vm1, %v1228_v11 }
  0x31   : > { %1182 = vmatmul.msk.bf16.gmra.mxu2 %vm261_vm1, %v1232_v12 }
  0x32   : > { %1186 = vmatmul.msk.bf16.gmra.mxu3 %vm261_vm1, %v1236_v13 }
  0x40   : > { %1175 = vmatmul.msk.bf16.gmra.mxu0 %vm261_vm1, %v1225_v14  ;;  %1179 = vmatmul.msk.bf16.gmra.mxu1 %vm261_vm1, %v1229_v15 }
  0x41   : > { %1183 = vmatmul.msk.bf16.gmra.mxu2 %vm261_vm1, %v1233_v16 }
  0x42   : > { %1187 = vmatmul.msk.bf16.gmra.mxu3 %vm261_vm1, %v1237_v17 }
  0x8d   : > { %v323_v18 = vpop.f32.mrf.mxu0  ;;  %v343_v19 = vpop.f32.mrf.mxu1 }
  0x8e   : > { %v1188_v20 = vmul.f32 -1.442695, %v323_v18  ;;  %v1196_v21 = vmul.f32 -1.442695, %v343_v19 }
  0x90   : > { %1249 = vpow2.f32 %v1188_v20 }
  0x91   : > { %1251 = vpow2.f32 %v1196_v21 }
  0x94   : > { %v363_v22 = vpop.f32.mrf.mxu2 }
  0x95   : > { %v383_v23 = vpop.f32.mrf.mxu3  ;;  %v1204_v24 = vmul.f32 -1.442695, %v363_v22  ;;  %v325_v26 = vpop.f32.mrf.mxu0 }
  0x96   : > { %v1212_v25 = vmul.f32 -1.442695, %v383_v23  ;;  %v345_v27 = vpop.f32.mrf.mxu1  ;;  %v1250_v28 = vpop.eup %1249  ;;  %v1189_v31 = vmul.f32 -1.442695, %v325_v26 }
  0x97   : > { %v1252_v29 = vpop.eup %1251  ;;  %v499_v30 = vadd.f32 1.0, %v1250_v28  ;;  %1253 = vpow2.f32 %v1204_v24  ;;  %v1197_v33 = vmul.f32 -1.442695, %v345_v27 }
  0x98   : > { %v1433_v32 = vadd.f32 1.0, %v1252_v29  ;;  %1255 = vpow2.f32 %v1212_v25 }
  0x99   : > { %1257 = vrcp.f32 %v499_v30  ;;  %v540_v36 = vand.u32 2147483647, %v499_v30  ;;  %v542_v39 = vand.u32 2147483648, %v499_v30  ;;  %vm536_vm2 = vweird.f32 %v499_v30 }
  0x9a   : > { %1259 = vrcp.f32 %v1433_v32  ;;  %v660_v40 = vand.u32 2147483647, %v1433_v32  ;;  %v662_v44 = vand.u32 2147483648, %v1433_v32  ;;  %vm656_vm3 = vweird.f32 %v1433_v32 }
  0x9b   : > { %1261 = vpow2.f32 %v1189_v31  ;;  %vm1444_vm4 = vcmp.eq.f32.partialorder %v540_v36, 8.507059e+37  ;;  %v543_v55 = vor.u32 1.1754944e-38, %v542_v39 }
  0x9c   : > { %1263 = vpow2.f32 %v1197_v33  ;;  %v365_v34 = vpop.f32.mrf.mxu2  ;;  %vm1449_vm5 = vcmp.eq.f32.partialorder %v660_v40, 8.507059e+37  ;;  %v663_v58 = vor.u32 1.1754944e-38, %v662_v44 }
  0x9d   : > { %v1254_v35 = vpop.eup %1253  ;;  %v1205_v37 = vmul.f32 -1.442695, %v365_v34  ;;  %v385_v42 = vpop.f32.mrf.mxu3 }
  0x9e   : > { %v1256_v38 = vpop.eup %1255  ;;  %v1437_v41 = vadd.f32 1.0, %v1254_v35  ;;  %v328_v48 = vpop.f32.mrf.mxu0  ;;  %v1213_v52 = vmul.f32 -1.442695, %v385_v42 }
  0x9f   : > { %v1258_v43 = vpop.eup %1257  ;;  %v1440_v45 = vadd.f32 1.0, %v1256_v38  ;;  %v1190_v59 = vmul.f32 -1.442695, %v328_v48  ;;  %v348_v0 = vpop.f32.mrf.mxu1 }
  0xa0   : > { %v1260_v46 = vpop.eup %1259  ;;  %v532_v47 = vmul.f32 %v1258_v43, %v499_v30  ;;  %1265 = vrcp.f32 %v1437_v41  ;;  %vm537_vm6 = vweird.f32 %v1258_v43  ;;  %v780_v61 = vand.u32 2147483647, %v1437_v41 }
  0xa1   : > { %v1262_v49 = vpop.eup %1261  ;;  %v652_v51 = vmul.f32 %v1260_v46, %v1433_v32  ;;  %1267 = vpow2.f32 %v1205_v37  ;;  %vm657_vm7 = vweird.f32 %v1260_v46  ;;  %v782_v2 = vand.u32 2147483648, %v1437_v41  ;;  %vm538_vm8 = vmor %vm536_vm2, %vm537_vm6 }
  0xa2   : > { %v1264_v53 = vpop.eup %1263  ;;  %v533_v54 = vsub.f32 1.0, %v532_v47  ;;  %1269 = vrcp.f32 %v1440_v45  ;;  %v1456_v62 = vadd.f32 1.0, %v1262_v49  ;;  %v900_v5 = vand.u32 2147483647, %v1440_v45  ;;  %vm658_vm10 = vmor %vm656_vm3, %vm657_vm7 }
  0xa3   : > { %v653_v57 = vsub.f32 1.0, %v652_v51  ;;  %v1458_v63 = vadd.f32 1.0, %v1264_v53  ;;  %1271 = vpow2.f32 %v1213_v52  ;;  %v902_v6 = vand.u32 2147483648, %v1440_v45 }
  0xa4   : > { %v534_v60 = vmul.f32 %v1258_v43, %v533_v54  ;;  %1273 = vrcp.f32 %v1456_v62  ;;  %vm776_vm9 = vweird.f32 %v1437_v41  ;;  %v1473_v10 = vmul.f32 -1.442695, %v348_v0  ;;  %v368_v18 = vpop.f32.mrf.mxu2 }
  0xa5   : > { %v654_v1 = vmul.f32 %v1260_v46, %v653_v57  ;;  %vm1478_vm11 = vcmp.eq.f32.partialorder %v780_v61, 8.507059e+37  ;;  %vm896_vm12 = vweird.f32 %v1440_v45  ;;  %1275 = vrcp.f32 %v1458_v63  ;;  %v388_v48 = vpop.f32.mrf.mxu3 }
  0xa6   : > { %v1266_v3 = vpop.eup %1265  ;;  %v535_v4 = vadd.f32 %v1258_v43, %v534_v60  ;;  %v783_v20 = vor.u32 1.1754944e-38, %v782_v2  ;;  %vm1490_vm13 = vcmp.eq.f32.partialorder %v900_v5, 8.507059e+37  ;;  %v903_v22 = vor.u32 1.1754944e-38, %v902_v6 }
  0xa7   : > { %v1268_v7 = vpop.eup %1267  ;;  %v655_v8 = vadd.f32 %v1260_v46, %v654_v1  ;;  %v772_v9 = vmul.f32 %v1266_v3, %v1437_v41  ;;  %vm777_vm14 = vweird.f32 %v1266_v3  ;;  %v555_v28 = vand.u32 2147483647, %v1456_v62  ;;  %v350_v1 = vpop.f32.mrf.mxu1 }
  0xa8   : > { %v1270_v11 = vpop.eup %1269  ;;  %v539_v12 = vsel %vm538_vm8, %v1258_v43, %v535_v4  ;;  %v1495_v26 = vadd.f32 1.0, %v1268_v7  ;;  %1277 = vpow2.f32 %v1190_v59  ;;  %v1206_v29 = vmul.f32 -1.442695, %v368_v18  ;;  %vm778_vm0 = vmor %vm776_vm9, %vm777_vm14 }
  0xa9   : > { %v544_v14 = vsel %vm1444_vm4, %v543_v55, %v539_v12  ;;  %v659_v15 = vsel %vm658_vm10, %v1260_v46, %v655_v8  ;;  %v773_v16 = vsub.f32 1.0, %v772_v9  ;;  %v892_v17 = vmul.f32 %v1270_v11, %v1440_v45  ;;  %v1272_v23 = vpop.eup %1271  ;;  %v330_v55 = vpop.f32.mrf.mxu0 }
  0xaa   : > { %1011 = vst [vmem:[%s1467_s21] sm:$0xff] %v544_v14  ;;  %v664_v19 = vsel %vm1449_vm5, %v663_v58, %v659_v15  ;;  %v1274_v27 = vpop.eup %1273  ;;  %vm897_vm15 = vweird.f32 %v1270_v11  ;;  %v1499_v33 = vadd.f32 1.0, %v1272_v23  ;;  %vm551_vm1 = vweird.f32 %v1456_v62 }
  0xab   : > { %1019 = vst [vmem:[%s1467_s21 + $0x40] sm:$0xff] %v664_v19  ;;  %v774_v24 = vmul.f32 %v1266_v3, %v773_v16  ;;  %v893_v25 = vsub.f32 1.0, %v892_v17  ;;  %v547_v32 = vmul.f32 %v1274_v27, %v1456_v62  ;;  %v1276_v34 = vpop.eup %1275  ;;  %v557_v35 = vand.u32 2147483648, %v1456_v62  ;;  %vm898_vm2 = vmor %vm896_vm12, %vm897_vm15 }
  0xac   : > { %v675_v36 = vand.u32 2147483647, %v1458_v63  ;;  %1279 = vrcp.f32 %v1495_v26  ;;  %v667_v40 = vmul.f32 %v1276_v34, %v1458_v63  ;;  %vm552_vm3 = vweird.f32 %v1274_v27  ;;  %v370_v4 = vpop.f32.mrf.mxu2 }
  0xad   : > { %v775_v30 = vadd.f32 %v1266_v3, %v774_v24  ;;  %v894_v31 = vmul.f32 %v1270_v11, %v893_v25  ;;  %v548_v39 = vsub.f32 1.0, %v547_v32  ;;  %vm1513_vm4 = vcmp.eq.f32.partialorder %v555_v28, 8.507059e+37  ;;  %vm553_vm8 = vmor %vm551_vm1, %vm552_vm3  ;;  %v390_v24 = vpop.f32.mrf.mxu3 }
  0xae   : > { %v677_v43 = vand.u32 2147483648, %v1458_v63  ;;  %v668_v47 = vsub.f32 1.0, %v667_v40  ;;  %1281 = vrcp.f32 %v1499_v33  ;;  %v1278_v49 = vpop.eup %1277  ;;  %v558_v50 = vor.u32 1.1754944e-38, %v557_v35 }
  0xaf   : > { %v779_v37 = vsel %vm778_vm0, %v1266_v3, %v775_v30  ;;  %v895_v38 = vadd.f32 %v1270_v11, %v894_v31  ;;  %v549_v46 = vmul.f32 %v1274_v27, %v548_v39  ;;  %vm671_vm5 = vweird.f32 %v1458_v63 }
  0xb0   : > { %v784_v42 = vsel %vm1478_vm11, %v783_v20, %v779_v37  ;;  %vm1523_vm6 = vcmp.eq.f32.partialorder %v675_v36, 8.507059e+37  ;;  %v669_v53 = vmul.f32 %v1276_v34, %v668_v47  ;;  %vm672_vm7 = vweird.f32 %v1276_v34 }
  0xb1   : > { %1027 = vst [vmem:[%s1467_s21 + $0x80] sm:$0xff] %v784_v42  ;;  %v899_v44 = vsel %vm898_vm2, %v1270_v11, %v895_v38  ;;  %v550_v52 = vadd.f32 %v1274_v27, %v549_v46  ;;  %v1528_v54 = vadd.f32 1.0, %v1278_v49  ;;  %v678_v57 = vor.u32 1.1754944e-38, %v677_v43  ;;  %vm673_vm10 = vmor %vm671_vm5, %vm672_vm7  ;;  %v333_v28 = vpop.f32.mrf.mxu0  ;;  %v353_v42 = vpop.f32.mrf.mxu1 }
  0xb2   : > { %v904_v45 = vsel %vm1490_vm13, %v903_v22, %v899_v44  ;;  %v1280_v56 = vpop.eup %1279  ;;  %vm791_vm9 = vweird.f32 %v1495_v26  ;;  %1283 = vpow2.f32 %v1473_v10  ;;  %v1214_v58 = vmul.f32 -1.442695, %v388_v48 }
  0xb3   : > { %1035 = vst [vmem:[%s1467_s21 + $0xc0] sm:$0xff] %v904_v45  ;;  %v554_v59 = vsel %vm553_vm8, %v1274_v27, %v550_v52  ;;  %v670_v60 = vadd.f32 %v1276_v34, %v669_v53  ;;  %v787_v61 = vmul.f32 %v1280_v56, %v1495_v26  ;;  %v795_v0 = vand.u32 2147483647, %v1495_v26 }
  0xb4   : > { %v559_v2 = vsel %vm1513_vm4, %v558_v50, %v554_v59  ;;  %v797_v62 = vand.u32 2147483648, %v1495_v26  ;;  %v915_v3 = vand.u32 2147483647, %v1499_v33  ;;  %1285 = vrcp.f32 %v1528_v54  ;;  %v1282_v5 = vpop.eup %1281  ;;  %v373_v41 = vpop.f32.mrf.mxu2 }
  0xb5   : > { %1012 = vst [vmem:[%s1467_s21 + $0x8] sm:$0xff] %v559_v2  ;;  %v674_v6 = vsel %vm673_vm10, %v1276_v34, %v670_v60  ;;  %v788_v7 = vsub.f32 1.0, %v787_v61  ;;  %v917_v8 = vand.u32 2147483648, %v1499_v33  ;;  %v1191_v9 = vmul.f32 -1.442695, %v330_v55 }
  0xb6   : > { %v679_v10 = vsel %vm1523_vm6, %v678_v57, %v674_v6  ;;  %v907_v63 = vmul.f32 %v1282_v5, %v1499_v33  ;;  %1287 = vpow2.f32 %v1206_v29  ;;  %v1199_v11 = vmul.f32 -1.442695, %v350_v1 }
  0xb7   : > { %1020 = vst [vmem:[%s1467_s21 + $0x48] sm:$0xff] %v679_v10  ;;  %v789_v12 = vmul.f32 %v1280_v56, %v788_v7  ;;  %vm792_vm11 = vweird.f32 %v1280_v56  ;;  %vm1551_vm12 = vcmp.eq.f32.partialorder %v795_v0, 8.507059e+37  ;;  %1289 = vpow2.f32 %v1214_v58 }
  0xb8   : > { %v1284_v14 = vpop.eup %1283  ;;  %v798_v15 = vor.u32 1.1754944e-38, %v797_v62  ;;  %v908_v16 = vsub.f32 1.0, %v907_v63  ;;  %vm911_vm13 = vweird.f32 %v1499_v33  ;;  %v1207_v17 = vmul.f32 -1.442695, %v370_v4  ;;  %vm793_vm15 = vmor %vm791_vm9, %vm792_vm11 }
  0xb9   : > { %v790_v18 = vadd.f32 %v1280_v56, %v789_v12  ;;  %vm1556_vm14 = vcmp.eq.f32.partialorder %v915_v3, 8.507059e+37  ;;  %v1560_v20 = vadd.f32 1.0, %v1284_v14  ;;  %1291 = vpow2.f32 %v1191_v9 }
  0xba   : > { %v1286_v21 = vpop.eup %1285  ;;  %v909_v22 = vmul.f32 %v1282_v5, %v908_v16  ;;  %vm912_vm0 = vweird.f32 %v1282_v5  ;;  %v918_v23 = vor.u32 1.1754944e-38, %v917_v8  ;;  %1293 = vpow2.f32 %v1199_v11 }
  0xbb   : > { %v794_v25 = vsel %vm793_vm15, %v1280_v56, %v790_v18  ;;  %v562_v27 = vmul.f32 %v1286_v21, %v1528_v54  ;;  %vm566_vm1 = vweird.f32 %v1528_v54  ;;  %1295 = vrcp.f32 %v1560_v20  ;;  %vm913_vm2 = vmor %vm911_vm13, %vm912_vm0 }
  0xbc   : > { %v1288_v29 = vpop.eup %1287  ;;  %v799_v30 = vsel %vm1551_vm12, %v798_v15, %v794_v25  ;;  %v910_v26 = vadd.f32 %v1282_v5, %v909_v22  ;;  %v570_v31 = vand.u32 2147483647, %v1528_v54  ;;  %1297 = vpow2.f32 %v1207_v17 }
  0xbd   : > { %v1290_v32 = vpop.eup %1289  ;;  %1028 = vst [vmem:[%s1467_s21 + $0x88] sm:$0xff] %v799_v30  ;;  %v563_v34 = vsub.f32 1.0, %v562_v27  ;;  %v572_v35 = vand.u32 2147483648, %v1528_v54  ;;  %v1575_v36 = vadd.f32 1.0, %v1288_v29  ;;  %v1215_v37 = vmul.f32 -1.442695, %v390_v24 }
  0xbe   : > { %v914_v38 = vsel %vm913_vm2, %v1282_v5, %v910_v26  ;;  %vm567_vm3 = vweird.f32 %v1286_v21  ;;  %v1577_v39 = vadd.f32 1.0, %v1290_v32  ;;  %v1192_v40 = vmul.f32 -1.442695, %v333_v28 }
  0xbf   : > { %v1292_v43 = vpop.eup %1291  ;;  %v919_v44 = vsel %vm1556_vm14, %v918_v23, %v914_v38  ;;  %v564_v33 = vmul.f32 %v1286_v21, %v563_v34  ;;  %v690_v46 = vand.u32 2147483647, %v1560_v20  ;;  %1299 = vrcp.f32 %v1575_v36  ;;  %vm568_vm5 = vmor %vm566_vm1, %vm567_vm3 }
  0xc0   : > { %v1294_v47 = vpop.eup %1293  ;;  %1036 = vst [vmem:[%s1467_s21 + $0xc8] sm:$0xff] %v919_v44  ;;  %vm1584_vm4 = vcmp.eq.f32.partialorder %v570_v31, 8.507059e+37  ;;  %1301 = vrcp.f32 %v1577_v39  ;;  %v573_v50 = vor.u32 1.1754944e-38, %v572_v35  ;;  %v1589_v51 = vmul.f32 -1.442695, %v353_v42 }
  0xc1   : > { %v1296_v49 = vpop.eup %1295  ;;  %v565_v45 = vadd.f32 %v1286_v21, %v564_v33  ;;  %v1591_v52 = vmul.f32 -1.442695, %v373_v41  ;;  %vm686_vm6 = vweird.f32 %v1560_v20  ;;  %v692_v56 = vand.u32 2147483648, %v1560_v20 }
  0xc2   : > { %v1298_v53 = vpop.eup %1297  ;;  %v682_v55 = vmul.f32 %v1296_v49, %v1560_v20  ;;  %1303 = vpow2.f32 %v1215_v37  ;;  %vm1599_vm7 = vcmp.eq.f32.partialorder %v690_v46, 8.507059e+37  ;;  %v1603_v59 = vadd.f32 1.0, %v1292_v43 }
  0xc3   : > { %v569_v57 = vsel %vm568_vm5, %v1286_v21, %v565_v45  ;;  %1305 = vpow2.f32 %v1192_v40  ;;  %v810_v61 = vand.u32 2147483647, %v1575_v36  ;;  %v1608_v0 = vadd.f32 1.0, %v1294_v47 }
  0xc4   : > { %v574_v60 = vsel %vm1584_vm4, %v573_v50, %v569_v57  ;;  %v683_v54 = vsub.f32 1.0, %v682_v55  ;;  %v812_v2 = vand.u32 2147483648, %v1575_v36  ;;  %v930_v62 = vand.u32 2147483647, %v1577_v39  ;;  %v335_v57 = vpop.f32.mrf.mxu0 }
  0xc5   : > { %v1300_v1 = vpop.eup %1299  ;;  %1013 = vst [vmem:[%s1467_s21 + $0x10] sm:$0xff] %v574_v60  ;;  %1307 = vrcp.f32 %v1603_v59  ;;  %v1614_v3 = vadd.f32 1.0, %v1298_v53  ;;  %vm687_vm8 = vweird.f32 %v1296_v49  ;;  %v693_v7 = vor.u32 1.1754944e-38, %v692_v56 }
  0xc6   : > { %v1302_v4 = vpop.eup %1301  ;;  %v684_v5 = vmul.f32 %v1296_v49, %v683_v54  ;;  %v802_v6 = vmul.f32 %v1300_v1, %v1575_v36  ;;  %1309 = vrcp.f32 %v1608_v0  ;;  %vm806_vm9 = vweird.f32 %v1575_v36  ;;  %vm688_vm12 = vmor %vm686_vm6, %vm687_vm8 }
  0xc7   : > { %v922_v8 = vmul.f32 %v1302_v4, %v1577_v39  ;;  %v932_v9 = vand.u32 2147483648, %v1577_v39  ;;  %vm1621_vm10 = vcmp.eq.f32.partialorder %v810_v61, 8.507059e+37  ;;  %vm926_vm11 = vweird.f32 %v1577_v39 }
  0xc8   : > { %v1304_v10 = vpop.eup %1303  ;;  %v685_v63 = vadd.f32 %v1296_v49, %v684_v5  ;;  %v803_v11 = vsub.f32 1.0, %v802_v6  ;;  %v813_v14 = vor.u32 1.1754944e-38, %v812_v2  ;;  %v585_v16 = vand.u32 2147483647, %v1603_v59  ;;  %v355_v5 = vpop.f32.mrf.mxu1 }
  0xc9   : > { %v1306_v13 = vpop.eup %1305  ;;  %v923_v15 = vsub.f32 1.0, %v922_v8  ;;  %1311 = vrcp.f32 %v1614_v3  ;;  %vm807_vm13 = vweird.f32 %v1300_v1  ;;  %vm1630_vm14 = vcmp.eq.f32.partialorder %v930_v62, 8.507059e+37 }
  0xca   : > { %v689_v17 = vsel %vm688_vm12, %v1296_v49, %v685_v63  ;;  %v804_v18 = vmul.f32 %v1300_v1, %v803_v11  ;;  %vm927_vm15 = vweird.f32 %v1302_v4  ;;  %v933_v23 = vor.u32 1.1754944e-38, %v932_v9  ;;  %vm808_vm1 = vmor %vm806_vm9, %vm807_vm13  ;;  %v393_v49 = vpop.f32.mrf.mxu3 }
  0xcb   : > { %v1308_v21 = vpop.eup %1307  ;;  %v694_v22 = vsel %vm1599_vm7, %v693_v7, %v689_v17  ;;  %v924_v20 = vmul.f32 %v1302_v4, %v923_v15  ;;  %vm581_vm0 = vweird.f32 %v1603_v59  ;;  %v587_v28 = vand.u32 2147483648, %v1603_v59  ;;  %vm928_vm3 = vmor %vm926_vm11, %vm927_vm15 }
  0xcc   : > { %v1310_v24 = vpop.eup %1309  ;;  %1021 = vst [vmem:[%s1467_s21 + $0x50] sm:$0xff] %v694_v22  ;;  %v805_v25 = vadd.f32 %v1300_v1, %v804_v18  ;;  %v577_v27 = vmul.f32 %v1308_v21, %v1603_v59  ;;  %vm1642_vm2 = vcmp.eq.f32.partialorder %v585_v16, 8.507059e+37  ;;  %v707_v31 = vand.u32 2147483648, %v1608_v0 }
  0xcd   : > { %v925_v29 = vadd.f32 %v1302_v4, %v924_v20  ;;  %v697_v26 = vmul.f32 %v1310_v24, %v1608_v0  ;;  %v1650_v35 = vadd.f32 1.0, %v1304_v10  ;;  %v1652_v36 = vadd.f32 1.0, %v1306_v13  ;;  %v375_v10 = vpop.f32.mrf.mxu2 }
  0xce   : > { %v809_v32 = vsel %vm808_vm1, %v1300_v1, %v805_v25  ;;  %v578_v34 = vsub.f32 1.0, %v577_v27  ;;  %1313 = vpow2.f32 %v1589_v51  ;;  %vm582_vm4 = vweird.f32 %v1308_v21 }
  0xcf   : > { %v1312_v37 = vpop.eup %1311  ;;  %v814_v38 = vsel %vm1621_vm10, %v813_v14, %v809_v32  ;;  %v929_v40 = vsel %vm928_vm3, %v1302_v4, %v925_v29  ;;  %v698_v42 = vsub.f32 1.0, %v697_v26  ;;  %vm702_vm5 = vweird.f32 %v1310_v24  ;;  %vm583_vm6 = vmor %vm581_vm0, %vm582_vm4  ;;  %v338_v26 = vpop.f32.mrf.mxu0 }
  0xd0   : > { %1029 = vst [vmem:[%s1467_s21 + $0x90] sm:$0xff] %v814_v38  ;;  %v934_v41 = vsel %vm1630_vm14, %v933_v23, %v929_v40  ;;  %v579_v43 = vmul.f32 %v1308_v21, %v578_v34  ;;  %v817_v39 = vmul.f32 %v1312_v37, %v1614_v3  ;;  %v705_v33 = vand.u32 2147483647, %v1608_v0 }
  0xd1   : > { %1037 = vst [vmem:[%s1467_s21 + $0xd0] sm:$0xff] %v934_v41  ;;  %v699_v44 = vmul.f32 %v1310_v24, %v698_v42  ;;  %1315 = vrcp.f32 %v1650_v35  ;;  %v588_v47 = vor.u32 1.1754944e-38, %v587_v28  ;;  %vm701_vm7 = vweird.f32 %v1608_v0  ;;  %v358_v41 = vpop.f32.mrf.mxu1 }
  0xd2   : > { %v580_v46 = vadd.f32 %v1308_v21, %v579_v43  ;;  %v818_v48 = vsub.f32 1.0, %v817_v39  ;;  %1317 = vrcp.f32 %v1652_v36  ;;  %v825_v50 = vand.u32 2147483647, %v1614_v3  ;;  %vm703_vm8 = vmor %vm701_vm7, %vm702_vm5  ;;  %v395_v19 = vpop.f32.mrf.mxu3 }
  0xd3   : > { %v700_v45 = vadd.f32 %v1310_v24, %v699_v44  ;;  %v827_v51 = vand.u32 2147483648, %v1614_v3  ;;  %v708_v55 = vor.u32 1.1754944e-38, %v707_v31  ;;  %vm822_vm9 = vweird.f32 %v1312_v37 }
  0xd4   : > { %v584_v53 = vsel %vm583_vm6, %v1308_v21, %v580_v46  ;;  %v819_v56 = vmul.f32 %v1312_v37, %v818_v48  ;;  %v1314_v58 = vpop.eup %1313  ;;  %vm706_vm10 = vcmp.eq.f32.partialorder %v705_v33, 8.507059e+37  ;;  %1319 = vpow2.f32 %v1591_v52 }
  0xd5   : > { %v589_v59 = vsel %vm1642_vm2, %v588_v47, %v584_v53  ;;  %v704_v60 = vsel %vm703_vm8, %v1310_v24, %v700_v45  ;;  %vm821_vm11 = vweird.f32 %v1614_v3  ;;  %v1675_v0 = vadd.f32 1.0, %v1314_v58 }
  0xd6   : > { %1014 = vst [vmem:[%s1467_s21 + $0x18] sm:$0xff] %v589_v59  ;;  %v709_v54 = vsel %vm706_vm10, %v708_v55, %v704_v60  ;;  %v820_v61 = vadd.f32 %v1312_v37, %v819_v56  ;;  %vm823_vm12 = vmor %vm821_vm11, %vm822_vm9  ;;  %v828_v2 = vor.u32 1.1754944e-38, %v827_v51  ;;  %v1216_v62 = vmul.f32 -1.442695, %v393_v49 }
  0xd7   : > { %v1316_v1 = vpop.eup %1315  ;;  %1022 = vst [vmem:[%s1467_s21 + $0x58] sm:$0xff] %v709_v54  ;;  %v1193_v4 = vmul.f32 -1.442695, %v335_v57  ;;  %vm826_vm13 = vcmp.eq.f32.partialorder %v825_v50, 8.507059e+37  ;;  %1321 = vrcp.f32 %v1675_v0  ;;  %vm941_vm14 = vweird.f32 %v1650_v35 }
  0xd8   : > { %v1318_v6 = vpop.eup %1317  ;;  %v824_v7 = vsel %vm823_vm12, %v1312_v37, %v820_v61  ;;  %v937_v52 = vmul.f32 %v1316_v1, %v1650_v35  ;;  %v945_v3 = vand.u32 2147483647, %v1650_v35  ;;  %v947_v11 = vand.u32 2147483648, %v1650_v35  ;;  %v378_v61 = vpop.f32.mrf.mxu2 }
  0xd9   : > { %v829_v8 = vsel %vm826_vm13, %v828_v2, %v824_v7  ;;  %v592_v9 = vmul.f32 %v1318_v6, %v1652_v36  ;;  %vm596_vm15 = vweird.f32 %v1652_v36  ;;  %1323 = vpow2.f32 %v1216_v62 }
  0xda   : > { %1030 = vst [vmem:[%s1467_s21 + $0x98] sm:$0xff] %v829_v8  ;;  %v938_v63 = vsub.f32 1.0, %v937_v52  ;;  %v1320_v12 = vpop.eup %1319  ;;  %v602_v14 = vand.u32 2147483648, %v1652_v36  ;;  %1325 = vpow2.f32 %v1193_v4  ;;  %v1201_v15 = vmul.f32 -1.442695, %v355_v5  ;;  %v398_v2 = vpop.f32.mrf.mxu3 }
  0xdb   : > { %v593_v13 = vsub.f32 1.0, %v592_v9  ;;  %vm942_vm0 = vweird.f32 %v1316_v1  ;;  %v1687_v17 = vadd.f32 1.0, %v1320_v12  ;;  %v1209_v18 = vmul.f32 -1.442695, %v375_v10  ;;  %v360_v52 = vpop.f32.mrf.mxu1 }
  0xdc   : > { %v939_v16 = vmul.f32 %v1316_v1, %v938_v63  ;;  %vm597_vm1 = vweird.f32 %v1318_v6  ;;  %v600_v22 = vand.u32 2147483647, %v1652_v36  ;;  %1327 = vpow2.f32 %v1201_v15  ;;  %vm943_vm3 = vmor %vm941_vm14, %vm942_vm0 }
  0xdd   : > { %v594_v21 = vmul.f32 %v1318_v6, %v593_v13  ;;  %v1322_v20 = vpop.eup %1321  ;;  %vm1690_vm2 = vcmp.eq.f32.partialorder %v945_v3, 8.507059e+37  ;;  %v948_v25 = vor.u32 1.1754944e-38, %v947_v11  ;;  %1329 = vrcp.f32 %v1687_v17  ;;  %vm598_vm4 = vmor %vm596_vm15, %vm597_vm1 }
  0xde   : > { %v940_v23 = vadd.f32 %v1316_v1, %v939_v16  ;;  %v603_v28 = vor.u32 1.1754944e-38, %v602_v14  ;;  %v712_v29 = vmul.f32 %v1322_v20, %v1675_v0  ;;  %v1217_v30 = vmul.f32 -1.442695, %v395_v19 }
  0xdf   : > { %v595_v27 = vadd.f32 %v1318_v6, %v594_v21  ;;  %v1324_v31 = vpop.eup %1323  ;;  %v720_v34 = vand.u32 2147483647, %v1675_v0  ;;  %v722_v37 = vand.u32 2147483648, %v1675_v0  ;;  %1331 = vpow2.f32 %v1209_v18 }
  0xe0   : > { %v944_v32 = vsel %vm943_vm3, %v1316_v1, %v940_v23  ;;  %v1326_v35 = vpop.eup %1325  ;;  %vm601_vm5 = vcmp.eq.f32.partialorder %v600_v22, 8.507059e+37  ;;  %v713_v42 = vsub.f32 1.0, %v712_v29  ;;  %v1706_v39 = vadd.f32 1.0, %v1324_v31 }
  0xe1   : > { %v949_v38 = vsel %vm1690_vm2, %v948_v25, %v944_v32  ;;  %v599_v40 = vsel %vm598_vm4, %v1318_v6, %v595_v27  ;;  %v1708_v36 = vadd.f32 1.0, %v1326_v35  ;;  %v1194_v44 = vmul.f32 -1.442695, %v338_v26 }
  0xe2   : > { %1038 = vst [vmem:[%s1467_s21 + $0xd8] sm:$0xff] %v949_v38  ;;  %v604_v43 = vsel %vm601_vm5, %v603_v28, %v599_v40  ;;  %v1328_v33 = vpop.eup %1327  ;;  %v714_v46 = vmul.f32 %v1322_v20, %v713_v42  ;;  %vm716_vm6 = vweird.f32 %v1675_v0  ;;  %vm717_vm7 = vweird.f32 %v1322_v20 }
  0xe3   : > { %1015 = vst [vmem:[%s1467_s21 + $0x20] sm:$0xff] %v604_v43  ;;  %1333 = vpow2.f32 %v1217_v30  ;;  %v1330_v47 = vpop.eup %1329  ;;  %vm1712_vm8 = vcmp.eq.f32.partialorder %v720_v34, 8.507059e+37  ;;  %v723_v49 = vor.u32 1.1754944e-38, %v722_v37  ;;  %v1202_v45 = vmul.f32 -1.442695, %v358_v41  ;;  %vm718_vm10 = vmor %vm716_vm6, %vm717_vm7 }
  0xe4   : > { %1335 = vrcp.f32 %v1706_v39  ;;  %v715_v50 = vadd.f32 %v1322_v20, %v714_v46  ;;  %v832_v51 = vmul.f32 %v1330_v47, %v1687_v17  ;;  %vm836_vm9 = vweird.f32 %v1687_v17 }
  0xe5   : > { %1337 = vrcp.f32 %v1708_v36  ;;  %v1332_v53 = vpop.eup %1331  ;;  %v840_v55 = vand.u32 2147483647, %v1687_v17  ;;  %v842_v56 = vand.u32 2147483648, %v1687_v17  ;;  %v960_v57 = vand.u32 2147483647, %v1706_v39 }
  0xe6   : > { %1339 = vpow2.f32 %v1194_v44  ;;  %v719_v58 = vsel %vm718_vm10, %v1322_v20, %v715_v50  ;;  %v833_v59 = vsub.f32 1.0, %v832_v51  ;;  %v962_v60 = vand.u32 2147483648, %v1706_v39 }
  0xe7   : > { %v1724_v54 = vadd.f32 1.0, %v1328_v33  ;;  %v724_v0 = vsel %vm1712_vm8, %v723_v49, %v719_v58  ;;  %vm837_vm11 = vweird.f32 %v1330_v47  ;;  %v1728_v1 = vadd.f32 1.0, %v1332_v53 }
  0xe8   : > { %1341 = vpow2.f32 %v1202_v45  ;;  %1023 = vst [vmem:[%s1467_s21 + $0x60] sm:$0xff] %v724_v0  ;;  %v834_v4 = vmul.f32 %v1330_v47, %v833_v59  ;;  %v615_v5 = vand.u32 2147483647, %v1708_v36  ;;  %v617_v6 = vand.u32 2147483648, %v1708_v36  ;;  %vm838_vm14 = vmor %vm836_vm9, %vm837_vm11 }
  0xe9   : > { %v1334_v62 = vpop.eup %1333  ;;  %1343 = vrcp.f32 %v1724_v54  ;;  %vm1734_vm12 = vcmp.eq.f32.partialorder %v840_v55, 8.507059e+37  ;;  %v843_v8 = vor.u32 1.1754944e-38, %v842_v56  ;;  %v1210_v3 = vmul.f32 -1.442695, %v378_v61 }
  0xea   : > { %v1336_v7 = vpop.eup %1335  ;;  %1345 = vrcp.f32 %v1728_v1  ;;  %v835_v10 = vadd.f32 %v1330_v47, %v834_v4  ;;  %vm956_vm13 = vweird.f32 %v1706_v39  ;;  %v1741_v11 = vmul.f32 -1.442695, %v398_v2 }
  0xeb   : > { %v1338_v9 = vpop.eup %1337  ;;  %v952_v63 = vmul.f32 %v1336_v7, %v1706_v39  ;;  %vm1746_vm15 = vcmp.eq.f32.partialorder %v960_v57, 8.507059e+37  ;;  %v963_v14 = vor.u32 1.1754944e-38, %v962_v60  ;;  %vm611_vm0 = vweird.f32 %v1708_v36 }
  0xec   : > { %v1340_v12 = vpop.eup %1339  ;;  %v607_v15 = vmul.f32 %v1338_v9, %v1708_v36  ;;  %v839_v16 = vsel %vm838_vm14, %v1330_v47, %v835_v10  ;;  %vm1752_vm1 = vcmp.eq.f32.partialorder %v615_v5, 8.507059e+37  ;;  %v618_v21 = vor.u32 1.1754944e-38, %v617_v6  ;;  %v340_v5 = vpop.f32.mrf.mxu0 }
  0xed   : > { %v953_v18 = vsub.f32 1.0, %v952_v63  ;;  %v844_v17 = vsel %vm1734_vm12, %v843_v8, %v839_v16  ;;  %vm731_vm2 = vweird.f32 %v1724_v54  ;;  %v735_v23 = vand.u32 2147483647, %v1724_v54  ;;  %v380_v10 = vpop.f32.mrf.mxu2 }
  0xee   : > { %v1342_v22 = vpop.eup %1341  ;;  %v608_v20 = vsub.f32 1.0, %v607_v15  ;;  %v1760_v24 = vadd.f32 1.0, %v1334_v62  ;;  %1031 = vst [vmem:[%s1467_s21 + $0xa0] sm:$0xff] %v844_v17  ;;  %vm957_vm3 = vweird.f32 %v1336_v7  ;;  %v1763_v28 = vadd.f32 1.0, %v1340_v12  ;;  %v400_v15 = vpop.f32.mrf.mxu3 }
  0xef   : > { %v1344_v25 = vpop.eup %1343  ;;  %v954_v27 = vmul.f32 %v1336_v7, %v953_v18  ;;  %1347 = vpow2.f32 %v1210_v3  ;;  %vm612_vm4 = vweird.f32 %v1338_v9  ;;  %v737_v32 = vand.u32 2147483648, %v1724_v54  ;;  %vm958_vm6 = vmor %vm956_vm13, %vm957_vm3 }
  0xf0   : > { %v1346_v29 = vpop.eup %1345  ;;  %v609_v30 = vmul.f32 %v1338_v9, %v608_v20  ;;  %v727_v26 = vmul.f32 %v1344_v25, %v1724_v54  ;;  %1349 = vrcp.f32 %v1760_v24  ;;  %vm851_vm5 = vweird.f32 %v1728_v1  ;;  %vm613_vm7 = vmor %vm611_vm0, %vm612_vm4 }
  0xf1   : > { %v955_v31 = vadd.f32 %v1336_v7, %v954_v27  ;;  %v847_v34 = vmul.f32 %v1346_v29, %v1728_v1  ;;  %v855_v38 = vand.u32 2147483647, %v1728_v1  ;;  %v1773_v40 = vadd.f32 1.0, %v1342_v22 }
  0xf2   : > { %v610_v37 = vadd.f32 %v1338_v9, %v609_v30  ;;  %v728_v35 = vsub.f32 1.0, %v727_v26  ;;  %v857_v43 = vand.u32 2147483648, %v1728_v1  ;;  %1351 = vrcp.f32 %v1763_v28 }
  0xf3   : > { %v959_v42 = vsel %vm958_vm6, %v1336_v7, %v955_v31  ;;  %v848_v41 = vsub.f32 1.0, %v847_v34  ;;  %vm732_vm8 = vweird.f32 %v1344_v25  ;;  %vm1784_vm9 = vcmp.eq.f32.partialorder %v735_v23, 8.507059e+37 }
  0xf4   : > { %v964_v39 = vsel %vm1746_vm15, %v963_v14, %v959_v42  ;;  %v614_v44 = vsel %vm613_vm7, %v1338_v9, %v610_v37  ;;  %v729_v33 = vmul.f32 %v1344_v25, %v728_v35  ;;  %vm852_vm10 = vweird.f32 %v1346_v29  ;;  %vm733_vm11 = vmor %vm731_vm2, %vm732_vm8 }
  0xf5   : > { %v1348_v46 = vpop.eup %1347  ;;  %1039 = vst [vmem:[%s1467_s21 + $0xe0] sm:$0xff] %v964_v39  ;;  %v619_v47 = vsel %vm1752_vm1, %v618_v21, %v614_v44  ;;  %v849_v48 = vmul.f32 %v1346_v29, %v848_v41  ;;  %v975_v50 = vand.u32 2147483647, %v1760_v24  ;;  %v977_v51 = vand.u32 2147483648, %v1760_v24  ;;  %vm853_vm13 = vmor %vm851_vm5, %vm852_vm10 }
  0xf6   : > { %v1350_v49 = vpop.eup %1349  ;;  %1016 = vst [vmem:[%s1467_s21 + $0x28] sm:$0xff] %v619_v47  ;;  %v730_v45 = vadd.f32 %v1344_v25, %v729_v33  ;;  %1353 = vrcp.f32 %v1773_v40  ;;  %v738_v53 = vor.u32 1.1754944e-38, %v737_v32  ;;  %vm856_vm12 = vcmp.eq.f32.partialorder %v855_v38, 8.507059e+37 }
  0xf7   : > { %v850_v55 = vadd.f32 %v1346_v29, %v849_v48  ;;  %v967_v56 = vmul.f32 %v1350_v49, %v1760_v24  ;;  %v858_v58 = vor.u32 1.1754944e-38, %v857_v43  ;;  %vm971_vm14 = vweird.f32 %v1760_v24 }
  0xf8   : > { %v734_v57 = vsel %vm733_vm11, %v1344_v25, %v730_v45  ;;  %vm626_vm15 = vweird.f32 %v1763_v28  ;;  %v1352_v59 = vpop.eup %1351  ;;  %v1801_v0 = vadd.f32 1.0, %v1348_v46  ;;  %vm1804_vm0 = vcmp.eq.f32.partialorder %v975_v50, 8.507059e+37 }
  0xf9   : > { %v739_v60 = vsel %vm1784_vm9, %v738_v53, %v734_v57  ;;  %v854_v54 = vsel %vm853_vm13, %v1346_v29, %v850_v55  ;;  %v968_v61 = vsub.f32 1.0, %v967_v56  ;;  %v978_v1 = vor.u32 1.1754944e-38, %v977_v51 }
  0xfa   : > { %1024 = vst [vmem:[%s1467_s21 + $0x68] sm:$0xff] %v739_v60  ;;  %v859_v2 = vsel %vm856_vm12, %v858_v58, %v854_v54  ;;  %v622_v4 = vmul.f32 %v1352_v59, %v1763_v28  ;;  %vm972_vm1 = vweird.f32 %v1350_v49  ;;  %v630_v7 = vand.u32 2147483647, %v1763_v28 }
  0xfb   : > { %1032 = vst [vmem:[%s1467_s21 + $0xa8] sm:$0xff] %v859_v2  ;;  %v969_v6 = vmul.f32 %v1350_v49, %v968_v61  ;;  %1355 = vrcp.f32 %v1801_v0  ;;  %v632_v9 = vand.u32 2147483648, %v1763_v28  ;;  %vm746_vm2 = vweird.f32 %v1773_v40  ;;  %vm973_vm3 = vmor %vm971_vm14, %vm972_vm1 }
  0xfc   : > { %v1354_v8 = vpop.eup %1353  ;;  %v623_v3 = vsub.f32 1.0, %v622_v4  ;;  %1357 = vpow2.f32 %v1741_v11  ;;  %v750_v13 = vand.u32 2147483647, %v1773_v40  ;;  %v1195_v14 = vmul.f32 -1.442695, %v340_v5 }
  0xfd   : > { %v970_v63 = vadd.f32 %v1350_v49, %v969_v6  ;;  %v742_v12 = vmul.f32 %v1354_v8, %v1773_v40  ;;  %vm627_vm4 = vweird.f32 %v1352_v59  ;;  %v752_v18 = vand.u32 2147483648, %v1773_v40 }
  0xfe   : > { %v624_v16 = vmul.f32 %v1352_v59, %v623_v3  ;;  %v1203_v19 = vmul.f32 -1.442695, %v360_v52  ;;  %1359 = vpow2.f32 %v1195_v14  ;;  %v1211_v22 = vmul.f32 -1.442695, %v380_v10  ;;  %vm628_vm5 = vmor %vm626_vm15, %vm627_vm4 }
  0xff   : > { %v974_v21 = vsel %vm973_vm3, %v1350_v49, %v970_v63  ;;  %v743_v11 = vsub.f32 1.0, %v742_v12  ;;  %v1219_v23 = vmul.f32 -1.442695, %v400_v15  ;;  %v633_v24 = vor.u32 1.1754944e-38, %v632_v9 }
 0x100   : > { %v979_v17 = vsel %vm1804_vm0, %v978_v1, %v974_v21  ;;  %v625_v20 = vadd.f32 %v1352_v59, %v624_v16  ;;  %1361 = vpow2.f32 %v1203_v19  ;;  %vm747_vm6 = vweird.f32 %v1354_v8 }
 0x101   : > { %v1356_v25 = vpop.eup %1355  ;;  %1040 = vst [vmem:[%s1467_s21 + $0xe8] sm:$0xff] %v979_v17  ;;  %v744_v27 = vmul.f32 %v1354_v8, %v743_v11  ;;  %1363 = vpow2.f32 %v1211_v22  ;;  %vm631_vm7 = vcmp.eq.f32.partialorder %v630_v7, 8.507059e+37  ;;  %vm748_vm8 = vmor %vm746_vm2, %vm747_vm6  ;;  %vm751_vm9 = vcmp.eq.f32.partialorder %v750_v13, 8.507059e+37 }
 0x102   : > { %v1358_v29 = vpop.eup %1357  ;;  %v629_v30 = vsel %vm628_vm5, %v1352_v59, %v625_v20  ;;  %v862_v26 = vmul.f32 %v1356_v25, %v1801_v0  ;;  %1365 = vpow2.f32 %v1219_v23  ;;  %v753_v28 = vor.u32 1.1754944e-38, %v752_v18 }
 0x103   : > { %v634_v31 = vsel %vm631_vm7, %v633_v24, %v629_v30  ;;  %v745_v32 = vadd.f32 %v1354_v8, %v744_v27  ;;  %v529_v34 = vadd.f32 1.0, %v1358_v29  ;;  %v870_v42 = vand.u32 2147483647, %v1801_v0 }
 0x104   : > { %1017 = vst [vmem:[%s1467_s21 + $0x30] sm:$0xff] %v634_v31  ;;  %v863_v37 = vsub.f32 1.0, %v862_v26  ;;  %v1360_v35 = vpop.eup %1359  ;;  %v872_v41 = vand.u32 2147483648, %v1801_v0  ;;  %vm867_vm10 = vweird.f32 %v1356_v25  ;;  %vm866_vm11 = vweird.f32 %v1801_v0 }
 0x105   : > { %v749_v38 = vsel %vm748_vm8, %v1354_v8, %v745_v32  ;;  %1367 = vrcp.f32 %v529_v34  ;;  %v506_v33 = vadd.f32 1.0, %v1360_v35  ;;  %vm868_vm12 = vmor %vm866_vm11, %vm867_vm10  ;;  %vm871_vm13 = vcmp.eq.f32.partialorder %v870_v42, 8.507059e+37 }
 0x106   : > { %v1362_v43 = vpop.eup %1361  ;;  %v754_v39 = vsel %vm751_vm9, %v753_v28, %v749_v38  ;;  %v864_v44 = vmul.f32 %v1356_v25, %v863_v37  ;;  %v873_v48 = vor.u32 1.1754944e-38, %v872_v41  ;;  %v990_v56 = vand.u32 2147483647, %v529_v34 }
 0x107   : > { %v1364_v46 = vpop.eup %1363  ;;  %1025 = vst [vmem:[%s1467_s21 + $0x70] sm:$0xff] %v754_v39  ;;  %v514_v40 = vadd.f32 1.0, %v1362_v43  ;;  %1369 = vrcp.f32 %v506_v33  ;;  %v992_v57 = vand.u32 2147483648, %v529_v34  ;;  %vm986_vm14 = vweird.f32 %v529_v34 }
 0x108   : > { %v1366_v47 = vpop.eup %1365  ;;  %v865_v36 = vadd.f32 %v1356_v25, %v864_v44  ;;  %v1834_v45 = vadd.f32 1.0, %v1364_v46  ;;  %v645_v61 = vand.u32 2147483647, %v506_v33  ;;  %v647_v0 = vand.u32 2147483648, %v506_v33 }
 0x109   : > { %1371 = vrcp.f32 %v514_v40  ;;  %v1836_v53 = vadd.f32 1.0, %v1366_v47  ;;  %vm1841_vm0 = vcmp.eq.f32.partialorder %v990_v56, 8.507059e+37  ;;  %v993_v4 = vor.u32 1.1754944e-38, %v992_v57 }
 0x10a   : > { %v869_v49 = vsel %vm868_vm12, %v1356_v25, %v865_v36  ;;  %1373 = vrcp.f32 %v1834_v45  ;;  %vm641_vm1 = vweird.f32 %v506_v33  ;;  %v765_v6 = vand.u32 2147483647, %v514_v40 }
 0x10b   : > { %v1368_v50 = vpop.eup %1367  ;;  %v874_v51 = vsel %vm871_vm13, %v873_v48, %v869_v49  ;;  %1375 = vrcp.f32 %v1836_v53  ;;  %vm761_vm2 = vweird.f32 %v514_v40  ;;  %v767_v8 = vand.u32 2147483648, %v514_v40 }
 0x10c   : > { %1033 = vst [vmem:[%s1467_s21 + $0xb0] sm:$0xff] %v874_v51  ;;  %v982_v55 = vmul.f32 %v1368_v50, %v529_v34  ;;  %vm987_vm15 = vweird.f32 %v1368_v50  ;;  %vm1846_vm5 = vcmp.eq.f32.partialorder %v645_v61, 8.507059e+37  ;;  %v648_v63 = vor.u32 1.1754944e-38, %v647_v0 }
 0x10d   : > { %v1370_v58 = vpop.eup %1369  ;;  %vm988_vm3 = vmor %vm986_vm14, %vm987_vm15  ;;  %vm1853_vm7 = vcmp.eq.f32.partialorder %v765_v6, 8.507059e+37  ;;  %v768_v22 = vor.u32 1.1754944e-38, %v767_v8  ;;  %v885_v20 = vand.u32 2147483647, %v1834_v45  ;;  %v887_v25 = vand.u32 2147483648, %v1834_v45 }
 0x10e   : > { %v983_v59 = vsub.f32 1.0, %v982_v55  ;;  %v637_v54 = vmul.f32 %v1370_v58, %v506_v33  ;;  %vm642_vm4 = vweird.f32 %v1370_v58  ;;  %v1007_v27 = vand.u32 2147483648, %v1836_v53 }
 0x10f   : > { %v1372_v60 = vpop.eup %1371  ;;  %vm643_vm8 = vmor %vm641_vm1, %vm642_vm4  ;;  %v1005_v34 = vand.u32 2147483647, %v1836_v53  ;;  %vm881_vm12 = vweird.f32 %v1834_v45  ;;  %v888_v37 = vor.u32 1.1754944e-38, %v887_v25  ;;  %vm1001_vm14 = vweird.f32 %v1836_v53 }
 0x110   : > { %v984_v2 = vmul.f32 %v1368_v50, %v983_v59  ;;  %v757_v1 = vmul.f32 %v1372_v60, %v514_v40  ;;  %v638_v5 = vsub.f32 1.0, %v637_v54  ;;  %v1374_v3 = vpop.eup %1373  ;;  %vm762_vm6 = vweird.f32 %v1372_v60 }
 0x111   : > { %v1376_v12 = vpop.eup %1375  ;;  %v877_v15 = vmul.f32 %v1374_v3, %v1834_v45  ;;  %vm763_vm9 = vmor %vm761_vm2, %vm762_vm6  ;;  %vm882_vm10 = vweird.f32 %v1374_v3  ;;  %vm886_vm15 = vcmp.eq.f32.partialorder %v885_v20, 8.507059e+37  ;;  %v1008_v42 = vor.u32 1.1754944e-38, %v1007_v27 }
 0x112   : > { %v985_v7 = vadd.f32 %v1368_v50, %v984_v2  ;;  %v758_v52 = vsub.f32 1.0, %v757_v1  ;;  %v639_v9 = vmul.f32 %v1370_v58, %v638_v5  ;;  %v997_v21 = vmul.f32 %v1376_v12, %v1836_v53  ;;  %vm883_vm13 = vmor %vm881_vm12, %vm882_vm10 }
 0x113   : > { %v878_v17 = vsub.f32 1.0, %v877_v15  ;;  %vm1002_vm11 = vweird.f32 %v1376_v12  ;;  %vm1006_vm1 = vcmp.eq.f32.partialorder %v1005_v34, 8.507059e+37 }
 0x114   : > { %v989_v13 = vsel %vm988_vm3, %v1368_v50, %v985_v7  ;;  %v759_v14 = vmul.f32 %v1372_v60, %v758_v52  ;;  %v640_v18 = vadd.f32 %v1370_v58, %v639_v9  ;;  %v998_v24 = vsub.f32 1.0, %v997_v21 }
 0x115   : > { %v994_v16 = vsel %vm1841_vm0, %v993_v4, %v989_v13  ;;  %v879_v26 = vmul.f32 %v1374_v3, %v878_v17  ;;  %vm1003_vm0 = vmor %vm1001_vm14, %vm1002_vm11 }
 0x116   : > { %1041 = vst [vmem:[%s1467_s21 + $0xf0] sm:$0xff] %v994_v16  ;;  %v760_v11 = vadd.f32 %v1372_v60, %v759_v14  ;;  %v644_v23 = vsel %vm643_vm8, %v1370_v58, %v640_v18  ;;  %v999_v32 = vmul.f32 %v1376_v12, %v998_v24 }
 0x117   : > { %v649_v29 = vsel %vm1846_vm5, %v648_v63, %v644_v23  ;;  %v880_v28 = vadd.f32 %v1374_v3, %v879_v26 }
 0x118   : > { %v764_v30 = vsel %vm763_vm9, %v1372_v60, %v760_v11  ;;  %1018 = vst [vmem:[%s1467_s21 + $0x38] sm:$0xff] %v649_v29  ;;  %v1000_v35 = vadd.f32 %v1376_v12, %v999_v32 }
 0x119   : > { %v769_v31 = vsel %vm1853_vm7, %v768_v22, %v764_v30  ;;  %v884_v38 = vsel %vm883_vm13, %v1374_v3, %v880_v28 }
 0x11a   : > { %1026 = vst [vmem:[%s1467_s21 + $0x78] sm:$0xff] %v769_v31  ;;  %v889_v41 = vsel %vm886_vm15, %v888_v37, %v884_v38  ;;  %v1004_v43 = vsel %vm1003_vm0, %v1376_v12, %v1000_v35 }
 0x11b   : > { %1034 = vst [vmem:[%s1467_s21 + $0xb8] sm:$0xff] %v889_v41  ;;  %v1009_v39 = vsel %vm1006_vm1, %v1008_v42, %v1004_v43 }
 0x11c   : > { %1042 = vst [vmem:[%s1467_s21 + $0xf8] sm:$0xff] %v1009_v39 }
 0x11d PF: > { %s12_s9 = sadd.s32 1, %s1383_s9  }
 0x11e   : > { %p9_p4 = scmp.ge.s32.totalorder %s12_s9, 4  }
 0x120   :  { %11 = sbr.rel (!%p9_p4) target bundleno = 1 (0x1), region = 58 }

</bundles_post_ra>
